<compile_context>
chip_gen: v5e
topology: v5e:2x2
jax: 0.10.0
libtpu: 0.0.40
codegen_flags: <defaults>
</compile_context>

<pallas_src>
import functools
import math

import numpy as np
import jax
import jax.numpy as jnp
from jax import lax
from jax.experimental import pallas as pl
from jax.experimental.pallas import tpu as pltpu


# ----------------------------------------------------------------------------
# In-kernel helpers
# ----------------------------------------------------------------------------
def _layer_norm(x, gamma, beta, eps):
    # LayerNorm over the channel (lane) axis, matching the torch module (f32).
    mean = jnp.mean(x, axis=-1, keepdims=True)
    var = jnp.mean((x - mean) ** 2, axis=-1, keepdims=True)
    return (x - mean) * lax.rsqrt(var + eps) * gamma + beta


def _conv1d_same_from_pad(xp, w_ref, w_base, bias, kernel_size, T):
    """K-tap 'same' conv as K shifted bf16 MXU matmuls.

    xp:     (T + 2*pad, Cin) f32 value read from the persistent padded scratch
            (edge rows are zero).
    w_ref:  stacked tap weights, bf16, tap j of this layer at row (w_base + j).
    bias:   (1, Cout) f32.
    """
    bf16 = jnp.bfloat16
    acc = jnp.dot(xp[0:T].astype(bf16), w_ref[w_base + 0],
                  preferred_element_type=jnp.float32)
    for j in range(1, kernel_size):
        acc = acc + jnp.dot(xp[j:j + T].astype(bf16), w_ref[w_base + j],
                            preferred_element_type=jnp.float32)
    return acc + bias


# ----------------------------------------------------------------------------
# Pallas kernel: one (batch b, layer l) grid step == one full encoder layer
# ----------------------------------------------------------------------------
def _encoder_kernel(n_heads, k_channels, kernel_size, eps, weights_resident,
                    x_ref, mcol_ref, mrow_ref,
                    wqkv_ref, bqkv_ref, wo_ref, bo_ref, g1_ref, be1_ref,
                    w1_ref, cb1_ref, w2_ref, cb2_ref, g2_ref, be2_ref,
                    out_ref,
                    bias_sc, attn_sc, pad1_sc, pad2_sc):
    l = pl.program_id(1)
    n_layers = pl.num_programs(1)
    # Matrix weights: dynamic layer index when VMEM-resident, 0 when streamed.
    wl = l if weights_resident else 0

    mcol = mcol_ref[0]        # (T, 1) x_mask as a column (f32)
    mrow = mrow_ref[0]        # (1, T) x_mask as a row    (f32)

    # Layer 0 (per batch): seed carried state, precompute the additive attention
    # bias once, and zero the conv padding scratches (edge rows stay zero).
    @pl.when(l == 0)
    def _():
        out_ref[...] = x_ref[...]
        bias_sc[...] = jnp.where((mcol * mrow) == 0.0, -1e4, 0.0)
        pad1_sc[...] = jnp.zeros_like(pad1_sc)
        pad2_sc[...] = jnp.zeros_like(pad2_sc)

    x = out_ref[0]            # (T, C) carried hidden state (f32)
    T, C = x.shape
    H, Kc = n_heads, k_channels
    pad = kernel_size // 2
    inv_sqrt_k = 1.0 / math.sqrt(Kc)
    bf16 = jnp.bfloat16

    xm = x * mcol                               # f32
    xm_bf = xm.astype(bf16)

    # ---- MultiHeadAttention: fused QKV projection (one bf16 MXU matmul) -----
    qkv = jnp.dot(xm_bf, wqkv_ref[wl],
                  preferred_element_type=jnp.float32) + bqkv_ref[0]
    q_bf = (qkv[:, :C] * inv_sqrt_k).astype(bf16)   # fold 1/sqrt(Kc) into q
    k_bf = qkv[:, C:2 * C].astype(bf16)
    v_bf = qkv[:, 2 * C:].astype(bf16)

    bias = bias_sc[...]                         # (T, T) additive mask bias
    # Static unroll over heads (H is small); switch to lax.fori_loop if H*T^2
    # temporaries threaten VMEM at large T.
    for h in range(H):
        sl = slice(h * Kc, (h + 1) * Kc)
        s = lax.dot_general(q_bf[:, sl], k_bf[:, sl], (((1,), (1,)), ((), ())),
                            preferred_element_type=jnp.float32)
        s = s + bias
        m = jnp.max(s, axis=-1, keepdims=True)
        e = jnp.exp(s - m)
        p = e * pl.reciprocal(jnp.sum(e, axis=-1, keepdims=True), approx=True)
        oh = jnp.dot(p.astype(bf16), v_bf[:, sl],
                     preferred_element_type=jnp.float32)       # (T, Kc)
        attn_sc[:, sl] = oh.astype(bf16)        # assemble heads in a scratch

    # conv_o as one full-depth (T,C)@(C,C) bf16 matmul
    y = jnp.dot(attn_sc[...], wo_ref[wl],
                preferred_element_type=jnp.float32) + bo_ref[0]

    # residual + LayerNorm 1 (f32)
    x1 = _layer_norm(xm + y, g1_ref[0], be1_ref[0], eps)

    # ---- FFN: two 'same' convs via persistent padded scratches --------------
    pad1_sc[pad:pad + T, :] = x1 * mcol
    hdn = _conv1d_same_from_pad(pad1_sc[...], w1_ref, wl * kernel_size,
                                cb1_ref[0], kernel_size, T)
    hdn = jnp.maximum(hdn, 0.0)                 # activation=None -> relu
    pad2_sc[pad:pad + T, :] = hdn * mcol
    y2 = _conv1d_same_from_pad(pad2_sc[...], w2_ref, wl * kernel_size,
                               cb2_ref[0], kernel_size, T) * mcol

    # residual + LayerNorm 2 (f32)
    x2 = _layer_norm(x1 + y2, g2_ref[0], be2_ref[0], eps)

    # store carried state; final `x * x_mask` only after the last layer
    out_ref[0] = x2

    @pl.when(l == n_layers - 1)
    def _():
        out_ref[0] = x2 * mcol


# ----------------------------------------------------------------------------
# Wrapper: torch layout in/out, grid + BlockSpecs + VMEM budgeting
# ----------------------------------------------------------------------------
_W_ORDER = ("wqkv", "bqkv", "wo", "bo", "g1", "be1",
            "w1", "cb1", "w2", "cb2", "g2", "be2")
_MAT_NAMES = ("wqkv", "wo", "w1", "w2")       # large matmul weights (bf16)


def encoder_forward(x_bct, x_mask_b1t, params, *, n_heads, kernel_size, eps=1e-4):
    """Pallas implementation of Encoder.forward. x:(B,C,T), x_mask:(B,1,T) -> (B,C,T)."""
    assert kernel_size % 2 == 1, "odd kernel_size required (torch 'same' padding)"
    B, C, T = x_bct.shape
    L = params["wqkv"].shape[0]
    F = params["cb1"].shape[-1]
    assert C % n_heads == 0
    k_channels = C // n_heads
    pad = kernel_size // 2

    x_btc = jnp.transpose(x_bct, (0, 2, 1)).astype(jnp.float32)      # (B, T, C)
    mask = x_mask_b1t.reshape(B, T).astype(jnp.float32)
    mcol = mask.reshape(B, T, 1)
    mrow = mask.reshape(B, 1, T)

    # Fold the conv tap axis into the layer axis so the kernel only ever does a
    # single (possibly dynamic) first-axis index into the weight refs.
    w = dict(params)
    w["w1"] = params["w1"].reshape(L * kernel_size, C, F)
    w["w2"] = params["w2"].reshape(L * kernel_size, F, C)
    warrs = [w[name] for name in _W_ORDER]

    # --- VMEM budgeting: matrix weights resident (fetched once) vs streamed ---
    w_total = sum(int(a.size) * a.dtype.itemsize for a in warrs)
    mat_total = sum(int(w[n].size) * w[n].dtype.itemsize for n in _MAT_NAMES)
    vec_total = w_total - mat_total
    act_bytes = 2 * 2 * T * C * 4 + 2 * 2 * (T + T) * 4          # x/out blocks (2-buf)
    scratch_bytes = T * T * 4 + T * C * 2 + (T + 2 * pad) * (C + F) * 4
    headroom = 16 << 20                                          # in-kernel f32 temps
    budget = 40 << 20                                            # safe on v7x (64 MiB)
    resident = (2 * mat_total + act_bytes + scratch_bytes + headroom) <= budget
    w_in_flight = (2 * mat_total if resident else 2 * (mat_total // L)) \
        + 2 * max(vec_total // L, 1)
    vmem_limit = int(min(max(w_in_flight + act_bytes + scratch_bytes + headroom,
                             32 << 20), 56 << 20))

    def bmap(b, l):
        return (b, 0, 0)

    spec_x = pl.BlockSpec((1, T, C), bmap)
    spec_mcol = pl.BlockSpec((1, T, 1), bmap)
    spec_mrow = pl.BlockSpec((1, 1, T), bmap)

    def wspec(name, arr):
        if name in _MAT_NAMES and resident:
            # full stacked block, constant index -> DMA'd exactly once
            return pl.BlockSpec(tuple(arr.shape), lambda b, l: (0, 0, 0))
        lead = kernel_size if name in ("w1", "w2") else 1
        return pl.BlockSpec((lead,) + tuple(arr.shape[1:]),
                            lambda b, l: (l, 0, 0))

    in_specs = [spec_x, spec_mcol, spec_mrow] + [
        wspec(name, arr) for name, arr in zip(_W_ORDER, warrs)]
    out_spec = pl.BlockSpec((1, T, C), bmap)

    kernel = functools.partial(_encoder_kernel, n_heads, k_channels, kernel_size,
                               eps, resident)

    out_btc = pl.pallas_call(
        kernel,
        out_shape=jax.ShapeDtypeStruct((B, T, C), jnp.float32),
        grid_spec=pltpu.PrefetchScalarGridSpec(
            num_scalar_prefetch=0,
            grid=(B, L),
            in_specs=in_specs,
            out_specs=out_spec,
            scratch_shapes=[
                pltpu.VMEM((T, T), jnp.float32),                 # additive attn bias
                pltpu.VMEM((T, C), jnp.bfloat16),                # assembled head outs
                pltpu.VMEM((T + 2 * pad, C), jnp.float32),       # FFN conv1 pad buffer
                pltpu.VMEM((T + 2 * pad, F), jnp.float32),       # FFN conv2 pad buffer
            ]),
        compiler_params=pltpu.CompilerParams(
            dimension_semantics=("parallel", "arbitrary"),
            vmem_limit_bytes=vmem_limit),
    )(x_btc, mcol, mrow, *warrs)

    return jnp.transpose(out_btc, (0, 2, 1))


# ----------------------------------------------------------------------------
# Deterministic parameter construction (no checkpoints). Matmul weights are kept
# in bf16 (HBM + MXU dtype); biases / LayerNorm params stay f32.  Layouts are
# pre-transposed for right-multiplication: wqkv is [Wq|Wk|Wv] as (C_in, 3C);
# w1/w2 are the torch conv weights as (K, C_in, C_out).
# ----------------------------------------------------------------------------
def make_encoder_params(key, n_layers, hidden, filter_ch, kernel_size):
    L, C, Fc, K = n_layers, hidden, filter_ch, kernel_size
    ks = jax.random.split(key, 12)
    bf = jnp.bfloat16

    def nrm(k, shape, scale):
        return jax.random.normal(k, shape, jnp.float32) * scale

    return dict(
        wqkv=nrm(ks[0], (L, C, 3 * C), C ** -0.5).astype(bf),
        bqkv=nrm(ks[1], (L, 1, 3 * C), 0.02),
        wo=nrm(ks[2], (L, C, C), C ** -0.5).astype(bf),
        bo=nrm(ks[3], (L, 1, C), 0.02),
        g1=1.0 + nrm(ks[4], (L, 1, C), 0.1),
        be1=nrm(ks[5], (L, 1, C), 0.1),
        w1=nrm(ks[6], (L, K, C, Fc), (C * K) ** -0.5).astype(bf),
        cb1=nrm(ks[7], (L, 1, Fc), 0.02),
        w2=nrm(ks[8], (L, K, Fc, C), (Fc * K) ** -0.5).astype(bf),
        cb2=nrm(ks[9], (L, 1, C), 0.02),
        g2=1.0 + nrm(ks[10], (L, 1, C), 0.1),
        be2=nrm(ks[11], (L, 1, C), 0.1),
    )


# ----------------------------------------------------------------------------
# Pure-JAX reference: same math as the torch module (defaults), mirroring the
# kernel's bf16 matmul inputs / f32 accumulation so the tolerance can stay tight.
# ----------------------------------------------------------------------------
def encoder_ref(x_bct, x_mask_b1t, params, *, n_heads, kernel_size, eps=1e-4):
    B, C, T = x_bct.shape
    bf, f32 = jnp.bfloat16, jnp.float32
    x = jnp.transpose(x_bct, (0, 2, 1)).astype(f32)                  # (B, T, C)
    mask = x_mask_b1t.reshape(B, T).astype(f32)
    m = mask[:, :, None]                                             # (B, T, 1)
    am = m * mask[:, None, :]                                        # (B, T, T)
    L = params["wqkv"].shape[0]
    Kc = C // n_heads
    pad = kernel_size // 2

    def mm(a, wmat):
        return jnp.einsum("btc,cd->btd", a.astype(bf), wmat.astype(bf),
                          preferred_element_type=f32)

    def conv1d_same(h, wtap, b):
        hp = jnp.pad(h, ((0, 0), (pad, pad), (0, 0)))
        acc = 0.0
        for j in range(kernel_size):
            acc = acc + jnp.einsum("btc,cf->btf", hp[:, j:j + T].astype(bf),
                                   wtap[j].astype(bf), preferred_element_type=f32)
        return acc + b

    def ln(z, g, b):
        mu = jnp.mean(z, axis=-1, keepdims=True)
        var = jnp.mean((z - mu) ** 2, axis=-1, keepdims=True)
        return (z - mu) * lax.rsqrt(var + eps) * g + b

    for l in range(L):
        xm = x * m
        qkv = mm(xm, params["wqkv"][l]) + params["bqkv"][l]
        q = qkv[..., :C] / math.sqrt(Kc)
        k = qkv[..., C:2 * C]
        v = qkv[..., 2 * C:]
        qh = q.reshape(B, T, n_heads, Kc).transpose(0, 2, 1, 3).astype(bf)
        kh = k.reshape(B, T, n_heads, Kc).transpose(0, 2, 1, 3).astype(bf)
        vh = v.reshape(B, T, n_heads, Kc).transpose(0, 2, 1, 3).astype(bf)
        s = jnp.einsum("bhtd,bhsd->bhts", qh, kh, preferred_element_type=f32)
        s = jnp.where(am[:, None] == 0.0, -1e4, s)
        p = jax.nn.softmax(s, axis=-1)
        o = jnp.einsum("bhts,bhsd->bhtd", p.astype(bf), vh,
                       preferred_element_type=f32)
        o = o.transpose(0, 2, 1, 3).reshape(B, T, C)
        y = mm(o, params["wo"][l]) + params["bo"][l]
        x = ln(xm + y, params["g1"][l], params["be1"][l])
        hdn = jnp.maximum(conv1d_same(x * m, params["w1"][l], params["cb1"][l]), 0.0)
        y2 = conv1d_same(hdn * m, params["w2"][l], params["cb2"][l]) * m
        x = ln(x + y2, params["g2"][l], params["be2"][l])
    x = x * m
    return jnp.transpose(x, (0, 2, 1))


if __name__ == "__main__":
    # Small but lane-aligned shapes: hidden=128, filter=256, heads=2, T=32, B=2, 2 layers
    B, C, T = 2, 128, 32
    filter_channels, n_heads, n_layers, kernel_size = 256, 2, 2, 3

    key = jax.random.PRNGKey(0)
    k_x, k_p = jax.random.split(key)
    x = jax.random.normal(k_x, (B, C, T), dtype=jnp.float32)
    lengths = jnp.array([T, 3 * T // 4])
    x_mask = (jnp.arange(T)[None, :] < lengths[:, None]).astype(jnp.float32).reshape(B, 1, T)

    params = make_encoder_params(k_p, n_layers, C, filter_channels, kernel_size)

    out = encoder_forward(x, x_mask, params, n_heads=n_heads, kernel_size=kernel_size)
    out = jax.block_until_ready(out)

    ref = jax.block_until_ready(
        encoder_ref(x, x_mask, params, n_heads=n_heads, kernel_size=kernel_size))

    # bf16 matmuls + approx softmax reciprocal -> loosened tolerance vs the f32 check
    np.testing.assert_allclose(np.asarray(out), np.asarray(ref), rtol=2e-2, atol=2e-2)
    assert out.shape == (B, C, T)
    print("KERNEL_OK")
</pallas_src>

<mosaic_0001>
module attributes {stable_mosaic.version = 11 : i64} {
  func.func @_encoder_kernel(%arg0: i32, %arg1: i32, %arg2: memref<1x32x128xf32, #tpu.memory_space<vmem>>, %arg3: memref<1x32x1xf32, #tpu.memory_space<vmem>>, %arg4: memref<1x1x32xf32, #tpu.memory_space<vmem>>, %arg5: memref<2x128x384xbf16, #tpu.memory_space<vmem>>, %arg6: memref<1x1x384xf32, #tpu.memory_space<vmem>>, %arg7: memref<2x128x128xbf16, #tpu.memory_space<vmem>>, %arg8: memref<1x1x128xf32, #tpu.memory_space<vmem>>, %arg9: memref<1x1x128xf32, #tpu.memory_space<vmem>>, %arg10: memref<1x1x128xf32, #tpu.memory_space<vmem>>, %arg11: memref<6x128x256xbf16, #tpu.memory_space<vmem>>, %arg12: memref<1x1x256xf32, #tpu.memory_space<vmem>>, %arg13: memref<6x256x128xbf16, #tpu.memory_space<vmem>>, %arg14: memref<1x1x128xf32, #tpu.memory_space<vmem>>, %arg15: memref<1x1x128xf32, #tpu.memory_space<vmem>>, %arg16: memref<1x1x128xf32, #tpu.memory_space<vmem>>, %arg17: memref<1x32x128xf32, #tpu.memory_space<vmem>>, %arg18: memref<32x32xf32, #tpu.memory_space<vmem>>, %arg19: memref<32x128xbf16, #tpu.memory_space<vmem>>, %arg20: memref<34x128xf32, #tpu.memory_space<vmem>>, %arg21: memref<34x256xf32, #tpu.memory_space<vmem>>) attributes {dimension_semantics = [#tpu.dimension_semantics<parallel>, #tpu.dimension_semantics<arbitrary>], iteration_bounds = array<i64: 2, 2>, scalar_prefetch = 0 : i64, scratch_operands = 4 : i64, tpu.core_type = #tpu.core_type<tc>, window_params = [{transform_indices = @transform_0, window_bounds = array<i64: 1, 32, 128>}, {transform_indices = @transform_1, window_bounds = array<i64: 1, 32, 1>}, {transform_indices = @transform_2, window_bounds = array<i64: 1, 1, 32>}, {pipeline_mode = #tpu.pipeline_mode<synchronous>, transform_indices = @transform_3, window_bounds = array<i64: 2, 128, 384>}, {transform_indices = @transform_4, window_bounds = array<i64: 1, 1, 384>}, {pipeline_mode = #tpu.pipeline_mode<synchronous>, transform_indices = @transform_5, window_bounds = array<i64: 2, 128, 128>}, {transform_indices = @transform_6, window_bounds = array<i64: 1, 1, 128>}, {transform_indices = @transform_7, window_bounds = array<i64: 1, 1, 128>}, {transform_indices = @transform_8, window_bounds = array<i64: 1, 1, 128>}, {pipeline_mode = #tpu.pipeline_mode<synchronous>, transform_indices = @transform_9, window_bounds = array<i64: 6, 128, 256>}, {transform_indices = @transform_10, window_bounds = array<i64: 1, 1, 256>}, {pipeline_mode = #tpu.pipeline_mode<synchronous>, transform_indices = @transform_11, window_bounds = array<i64: 6, 256, 128>}, {transform_indices = @transform_12, window_bounds = array<i64: 1, 1, 128>}, {transform_indices = @transform_13, window_bounds = array<i64: 1, 1, 128>}, {transform_indices = @transform_14, window_bounds = array<i64: 1, 1, 128>}, {transform_indices = @transform_15, window_bounds = array<i64: 1, 32, 128>}]} {
    %c0 = arith.constant 0 : index
    %c0_0 = arith.constant 0 : index
    %c0_1 = arith.constant 0 : index
    %0 = vector.load %arg3[%c0, %c0_0, %c0_1] : memref<1x32x1xf32, #tpu.memory_space<vmem>>, vector<1x32x1xf32>
    %1 = vector.shape_cast %0 : vector<1x32x1xf32> to vector<32x1xf32>
    %c0_2 = arith.constant 0 : index
    %c0_3 = arith.constant 0 : index
    %c0_4 = arith.constant 0 : index
    %2 = vector.load %arg4[%c0_2, %c0_3, %c0_4] : memref<1x1x32xf32, #tpu.memory_space<vmem>>, vector<1x1x32xf32>
    %3 = vector.shape_cast %2 : vector<1x1x32xf32> to vector<1x32xf32>
    %c0_i32 = arith.constant 0 : i32
    %4 = arith.cmpi eq, %arg1, %c0_i32 : i32
    %5 = arith.extui %4 : i1 to i32
    %c0_i32_5 = arith.constant 0 : i32
    %6 = arith.cmpi ne, %5, %c0_i32_5 : i32
    scf.if %6 {
      %c0_100 = arith.constant 0 : index
      %c0_101 = arith.constant 0 : index
      %c0_102 = arith.constant 0 : index
      %204 = vector.load %arg2[%c0_100, %c0_101, %c0_102] : memref<1x32x128xf32, #tpu.memory_space<vmem>>, vector<1x32x128xf32>
      %c0_103 = arith.constant 0 : index
      %c0_104 = arith.constant 0 : index
      %c0_105 = arith.constant 0 : index
      %205 = vector.load %arg17[%c0_103, %c0_104, %c0_105] : memref<1x32x128xf32, #tpu.memory_space<vmem>>, vector<1x32x128xf32>
      tpu.vector_store %arg17[%c0_103, %c0_104, %c0_105], %204 {strides = array<i32>} : memref<1x32x128xf32, #tpu.memory_space<vmem>>, vector<1x32x128xf32>,
      %206 = vector.broadcast %1 : vector<32x1xf32> to vector<32x32xf32>
      %207 = vector.broadcast %3 : vector<1x32xf32> to vector<32x32xf32>
      %208 = arith.mulf %206, %207 : vector<32x32xf32>
      %cst_106 = arith.constant 0.000000e+00 : f32
      %209 = vector.broadcast %cst_106 : f32 to vector<32x32xf32>
      %210 = arith.cmpf oeq, %208, %209 : vector<32x32xf32>
      %cst_107 = arith.constant -1.000000e+04 : f32
      %cst_108 = arith.constant 0.000000e+00 : f32
      %211 = vector.broadcast %cst_107 : f32 to vector<32x32xf32>
      %212 = vector.broadcast %cst_108 : f32 to vector<32x32xf32>
      %213 = arith.select %210, %211, %212 : vector<32x32xi1>, vector<32x32xf32>
      %c0_109 = arith.constant 0 : index
      %c0_110 = arith.constant 0 : index
      %214 = vector.load %arg18[%c0_109, %c0_110] : memref<32x32xf32, #tpu.memory_space<vmem>>, vector<32x32xf32>
      tpu.vector_store %arg18[%c0_109, %c0_110], %213 {strides = array<i32>} : memref<32x32xf32, #tpu.memory_space<vmem>>, vector<32x32xf32>,
      %cst_111 = arith.constant 0.000000e+00 : f32
      %215 = vector.broadcast %cst_111 : f32 to vector<34x128xf32>
      %c0_112 = arith.constant 0 : index
      %c0_113 = arith.constant 0 : index
      %216 = vector.load %arg20[%c0_112, %c0_113] : memref<34x128xf32, #tpu.memory_space<vmem>>, vector<34x128xf32>
      tpu.vector_store %arg20[%c0_112, %c0_113], %215 {strides = array<i32>} : memref<34x128xf32, #tpu.memory_space<vmem>>, vector<34x128xf32>,
      %cst_114 = arith.constant 0.000000e+00 : f32
      %217 = vector.broadcast %cst_114 : f32 to vector<34x256xf32>
      %c0_115 = arith.constant 0 : index
      %c0_116 = arith.constant 0 : index
      %218 = vector.load %arg21[%c0_115, %c0_116] : memref<34x256xf32, #tpu.memory_space<vmem>>, vector<34x256xf32>
      tpu.vector_store %arg21[%c0_115, %c0_116], %217 {strides = array<i32>} : memref<34x256xf32, #tpu.memory_space<vmem>>, vector<34x256xf32>,
    } else {
    }
    %c0_6 = arith.constant 0 : index
    %c0_7 = arith.constant 0 : index
    %c0_8 = arith.constant 0 : index
    %7 = vector.load %arg17[%c0_6, %c0_7, %c0_8] : memref<1x32x128xf32, #tpu.memory_space<vmem>>, vector<1x32x128xf32>
    %8 = vector.shape_cast %7 : vector<1x32x128xf32> to vector<32x128xf32>
    %9 = vector.broadcast %1 : vector<32x1xf32> to vector<32x128xf32>
    %10 = arith.mulf %8, %9 : vector<32x128xf32>
    %11 = arith.truncf %10 : vector<32x128xf32> to vector<32x128xbf16>
    %12 = arith.index_cast %arg1 : i32 to index
    %c0_9 = arith.constant 0 : index
    %c0_10 = arith.constant 0 : index
    %13 = vector.load %arg5[%12, %c0_9, %c0_10] : memref<2x128x384xbf16, #tpu.memory_space<vmem>>, vector<1x128x384xbf16>
    %14 = vector.shape_cast %13 : vector<1x128x384xbf16> to vector<128x384xbf16>
    %cst = arith.constant dense<0.000000e+00> : vector<32x384xf32>
    %15 = tpu.matmul %11, %14, %cst {dimension_numbers = #tpu.dot_dimension_numbers<[1], [0], [0], [1], [0, 0, 1, 1], [], []>} : vector<32x128xbf16>, vector<128x384xbf16>, vector<32x384xf32> -> vector<32x384xf32>
    %c0_11 = arith.constant 0 : index
    %c0_12 = arith.constant 0 : index
    %c0_13 = arith.constant 0 : index
    %16 = vector.load %arg6[%c0_11, %c0_12, %c0_13] : memref<1x1x384xf32, #tpu.memory_space<vmem>>, vector<1x1x384xf32>
    %17 = vector.shape_cast %16 : vector<1x1x384xf32> to vector<1x384xf32>
    %18 = vector.broadcast %17 : vector<1x384xf32> to vector<32x384xf32>
    %19 = arith.addf %15, %18 : vector<32x384xf32>
    %20 = vector.extract_strided_slice %19 {offsets = [0, 0], sizes = [32, 128], strides = [1, 1]} : vector<32x384xf32> to vector<32x128xf32>
    %cst_14 = arith.constant 1.250000e-01 : f32
    %21 = vector.broadcast %cst_14 : f32 to vector<32x128xf32>
    %22 = arith.mulf %20, %21 : vector<32x128xf32>
    %23 = arith.truncf %22 : vector<32x128xf32> to vector<32x128xbf16>
    %24 = vector.extract_strided_slice %19 {offsets = [0, 128], sizes = [32, 128], strides = [1, 1]} : vector<32x384xf32> to vector<32x128xf32>
    %25 = arith.truncf %24 : vector<32x128xf32> to vector<32x128xbf16>
    %26 = vector.extract_strided_slice %19 {offsets = [0, 256], sizes = [32, 128], strides = [1, 1]} : vector<32x384xf32> to vector<32x128xf32>
    %27 = arith.truncf %26 : vector<32x128xf32> to vector<32x128xbf16>
    %c0_15 = arith.constant 0 : index
    %c0_16 = arith.constant 0 : index
    %28 = vector.load %arg18[%c0_15, %c0_16] : memref<32x32xf32, #tpu.memory_space<vmem>>, vector<32x32xf32>
    %29 = vector.extract_strided_slice %23 {offsets = [0, 0], sizes = [32, 64], strides = [1, 1]} : vector<32x128xbf16> to vector<32x64xbf16>
    %30 = vector.extract_strided_slice %25 {offsets = [0, 0], sizes = [32, 64], strides = [1, 1]} : vector<32x128xbf16> to vector<32x64xbf16>
    %cst_17 = arith.constant dense<0.000000e+00> : vector<32x32xf32>
    %31 = tpu.matmul %29, %30, %cst_17 {dimension_numbers = #tpu.dot_dimension_numbers<[1], [1], [0], [0], [0, 0, 1, 0], [], []>} : vector<32x64xbf16>, vector<32x64xbf16>, vector<32x32xf32> -> vector<32x32xf32>
    %32 = arith.addf %31, %28 : vector<32x32xf32>
    %cst_18 = arith.constant dense<0xFF800000> : vector<32xf32>
    %33 = vector.multi_reduction <maximumf>, %32, %cst_18 [1] : vector<32x32xf32> to vector<32xf32>
    %34 = vector.shape_cast %33 : vector<32xf32> to vector<32x1xf32>
    %35 = vector.broadcast %34 : vector<32x1xf32> to vector<32x32xf32>
    %36 = arith.subf %32, %35 : vector<32x32xf32>
    %37 = math.exp %36 : vector<32x32xf32>
    %cst_19 = arith.constant dense<0.000000e+00> : vector<32xf32>
    %38 = vector.multi_reduction <add>, %37, %cst_19 [1] : vector<32x32xf32> to vector<32xf32>
    %39 = vector.shape_cast %38 : vector<32xf32> to vector<32x1xf32>
    %40 = tpu.reciprocal %39 {approx = true} : vector<32x1xf32> -> vector<32x1xf32>
    %41 = vector.broadcast %40 : vector<32x1xf32> to vector<32x32xf32>
    %42 = arith.mulf %37, %41 : vector<32x32xf32>
    %43 = arith.truncf %42 : vector<32x32xf32> to vector<32x32xbf16>
    %44 = vector.extract_strided_slice %27 {offsets = [0, 0], sizes = [32, 64], strides = [1, 1]} : vector<32x128xbf16> to vector<32x64xbf16>
    %cst_20 = arith.constant dense<0.000000e+00> : vector<32x64xf32>
    %45 = tpu.matmul %43, %44, %cst_20 {dimension_numbers = #tpu.dot_dimension_numbers<[1], [0], [0], [1], [0, 0, 1, 1], [], []>} : vector<32x32xbf16>, vector<32x64xbf16>, vector<32x64xf32> -> vector<32x64xf32>
    %46 = arith.truncf %45 : vector<32x64xf32> to vector<32x64xbf16>
    %c0_21 = arith.constant 0 : index
    %c0_22 = arith.constant 0 : index
    %47 = vector.load %arg19[%c0_21, %c0_22] : memref<32x128xbf16, #tpu.memory_space<vmem>>, vector<32x64xbf16>
    tpu.vector_store %arg19[%c0_21, %c0_22], %46 {strides = array<i32>} : memref<32x128xbf16, #tpu.memory_space<vmem>>, vector<32x64xbf16>,
    %48 = vector.extract_strided_slice %23 {offsets = [0, 64], sizes = [32, 64], strides = [1, 1]} : vector<32x128xbf16> to vector<32x64xbf16>
    %49 = vector.extract_strided_slice %25 {offsets = [0, 64], sizes = [32, 64], strides = [1, 1]} : vector<32x128xbf16> to vector<32x64xbf16>
    %cst_23 = arith.constant dense<0.000000e+00> : vector<32x32xf32>
    %50 = tpu.matmul %48, %49, %cst_23 {dimension_numbers = #tpu.dot_dimension_numbers<[1], [1], [0], [0], [0, 0, 1, 0], [], []>} : vector<32x64xbf16>, vector<32x64xbf16>, vector<32x32xf32> -> vector<32x32xf32>
    %51 = arith.addf %50, %28 : vector<32x32xf32>
    %cst_24 = arith.constant dense<0xFF800000> : vector<32xf32>
    %52 = vector.multi_reduction <maximumf>, %51, %cst_24 [1] : vector<32x32xf32> to vector<32xf32>
    %53 = vector.shape_cast %52 : vector<32xf32> to vector<32x1xf32>
    %54 = vector.broadcast %53 : vector<32x1xf32> to vector<32x32xf32>
    %55 = arith.subf %51, %54 : vector<32x32xf32>
    %56 = math.exp %55 : vector<32x32xf32>
    %cst_25 = arith.constant dense<0.000000e+00> : vector<32xf32>
    %57 = vector.multi_reduction <add>, %56, %cst_25 [1] : vector<32x32xf32> to vector<32xf32>
    %58 = vector.shape_cast %57 : vector<32xf32> to vector<32x1xf32>
    %59 = tpu.reciprocal %58 {approx = true} : vector<32x1xf32> -> vector<32x1xf32>
    %60 = vector.broadcast %59 : vector<32x1xf32> to vector<32x32xf32>
    %61 = arith.mulf %56, %60 : vector<32x32xf32>
    %62 = arith.truncf %61 : vector<32x32xf32> to vector<32x32xbf16>
    %63 = vector.extract_strided_slice %27 {offsets = [0, 64], sizes = [32, 64], strides = [1, 1]} : vector<32x128xbf16> to vector<32x64xbf16>
    %cst_26 = arith.constant dense<0.000000e+00> : vector<32x64xf32>
    %64 = tpu.matmul %62, %63, %cst_26 {dimension_numbers = #tpu.dot_dimension_numbers<[1], [0], [0], [1], [0, 0, 1, 1], [], []>} : vector<32x32xbf16>, vector<32x64xbf16>, vector<32x64xf32> -> vector<32x64xf32>
    %65 = arith.truncf %64 : vector<32x64xf32> to vector<32x64xbf16>
    %c0_27 = arith.constant 0 : index
    %c64 = arith.constant 64 : index
    %66 = vector.load %arg19[%c0_27, %c64] : memref<32x128xbf16, #tpu.memory_space<vmem>>, vector<32x64xbf16>
    tpu.vector_store %arg19[%c0_27, %c64], %65 {strides = array<i32>} : memref<32x128xbf16, #tpu.memory_space<vmem>>, vector<32x64xbf16>,
    %c0_28 = arith.constant 0 : index
    %c0_29 = arith.constant 0 : index
    %67 = vector.load %arg19[%c0_28, %c0_29] : memref<32x128xbf16, #tpu.memory_space<vmem>>, vector<32x128xbf16>
    %68 = arith.index_cast %arg1 : i32 to index
    %c0_30 = arith.constant 0 : index
    %c0_31 = arith.constant 0 : index
    %69 = vector.load %arg7[%68, %c0_30, %c0_31] : memref<2x128x128xbf16, #tpu.memory_space<vmem>>, vector<1x128x128xbf16>
    %70 = vector.shape_cast %69 : vector<1x128x128xbf16> to vector<128x128xbf16>
    %cst_32 = arith.constant dense<0.000000e+00> : vector<32x128xf32>
    %71 = tpu.matmul %67, %70, %cst_32 {dimension_numbers = #tpu.dot_dimension_numbers<[1], [0], [0], [1], [0, 0, 1, 1], [], []>} : vector<32x128xbf16>, vector<128x128xbf16>, vector<32x128xf32> -> vector<32x128xf32>
    %c0_33 = arith.constant 0 : index
    %c0_34 = arith.constant 0 : index
    %c0_35 = arith.constant 0 : index
    %72 = vector.load %arg8[%c0_33, %c0_34, %c0_35] : memref<1x1x128xf32, #tpu.memory_space<vmem>>, vector<1x1x128xf32>
    %73 = vector.shape_cast %72 : vector<1x1x128xf32> to vector<1x128xf32>
    %74 = vector.broadcast %73 : vector<1x128xf32> to vector<32x128xf32>
    %75 = arith.addf %71, %74 : vector<32x128xf32>
    %76 = arith.addf %10, %75 : vector<32x128xf32>
    %c0_36 = arith.constant 0 : index
    %c0_37 = arith.constant 0 : index
    %c0_38 = arith.constant 0 : index
    %77 = vector.load %arg9[%c0_36, %c0_37, %c0_38] : memref<1x1x128xf32, #tpu.memory_space<vmem>>, vector<1x1x128xf32>
    %78 = vector.shape_cast %77 : vector<1x1x128xf32> to vector<1x128xf32>
    %c0_39 = arith.constant 0 : index
    %c0_40 = arith.constant 0 : index
    %c0_41 = arith.constant 0 : index
    %79 = vector.load %arg10[%c0_39, %c0_40, %c0_41] : memref<1x1x128xf32, #tpu.memory_space<vmem>>, vector<1x1x128xf32>
    %80 = vector.shape_cast %79 : vector<1x1x128xf32> to vector<1x128xf32>
    %cst_42 = arith.constant dense<0.000000e+00> : vector<32xf32>
    %81 = vector.multi_reduction <add>, %76, %cst_42 [1] : vector<32x128xf32> to vector<32xf32>
    %82 = vector.shape_cast %81 : vector<32xf32> to vector<32x1xf32>
    %cst_43 = arith.constant 1.280000e+02 : f32
    %83 = vector.broadcast %cst_43 : f32 to vector<32x1xf32>
    %84 = arith.divf %82, %83 : vector<32x1xf32>
    %85 = vector.broadcast %84 : vector<32x1xf32> to vector<32x128xf32>
    %86 = arith.subf %76, %85 : vector<32x128xf32>
    %87 = arith.mulf %86, %86 : vector<32x128xf32>
    %cst_44 = arith.constant dense<0.000000e+00> : vector<32xf32>
    %88 = vector.multi_reduction <add>, %87, %cst_44 [1] : vector<32x128xf32> to vector<32xf32>
    %89 = vector.shape_cast %88 : vector<32xf32> to vector<32x1xf32>
    %cst_45 = arith.constant 1.280000e+02 : f32
    %90 = vector.broadcast %cst_45 : f32 to vector<32x1xf32>
    %91 = arith.divf %89, %90 : vector<32x1xf32>
    %92 = vector.broadcast %84 : vector<32x1xf32> to vector<32x128xf32>
    %93 = arith.subf %76, %92 : vector<32x128xf32>
    %cst_46 = arith.constant 9.99999974E-5 : f32
    %94 = vector.broadcast %cst_46 : f32 to vector<32x1xf32>
    %95 = arith.addf %91, %94 : vector<32x1xf32>
    %96 = math.rsqrt %95 : vector<32x1xf32>
    %97 = vector.broadcast %96 : vector<32x1xf32> to vector<32x128xf32>
    %98 = arith.mulf %93, %97 : vector<32x128xf32>
    %99 = vector.broadcast %78 : vector<1x128xf32> to vector<32x128xf32>
    %100 = arith.mulf %98, %99 : vector<32x128xf32>
    %101 = vector.broadcast %80 : vector<1x128xf32> to vector<32x128xf32>
    %102 = arith.addf %100, %101 : vector<32x128xf32>
    %103 = vector.broadcast %1 : vector<32x1xf32> to vector<32x128xf32>
    %104 = arith.mulf %102, %103 : vector<32x128xf32>
    %c1 = arith.constant 1 : index
    %c0_47 = arith.constant 0 : index
    %105 = vector.load %arg20[%c1, %c0_47] : memref<34x128xf32, #tpu.memory_space<vmem>>, vector<32x128xf32>
    tpu.vector_store %arg20[%c1, %c0_47], %104 {strides = array<i32>} : memref<34x128xf32, #tpu.memory_space<vmem>>, vector<32x128xf32>,
    %c0_48 = arith.constant 0 : index
    %c0_49 = arith.constant 0 : index
    %106 = vector.load %arg20[%c0_48, %c0_49] : memref<34x128xf32, #tpu.memory_space<vmem>>, vector<34x128xf32>
    %c3_i32 = arith.constant 3 : i32
    %107 = arith.muli %arg1, %c3_i32 : i32
    %c0_50 = arith.constant 0 : index
    %c0_51 = arith.constant 0 : index
    %c0_52 = arith.constant 0 : index
    %108 = vector.load %arg12[%c0_50, %c0_51, %c0_52] : memref<1x1x256xf32, #tpu.memory_space<vmem>>, vector<1x1x256xf32>
    %109 = vector.shape_cast %108 : vector<1x1x256xf32> to vector<1x256xf32>
    %110 = vector.extract_strided_slice %106 {offsets = [0, 0], sizes = [32, 128], strides = [1, 1]} : vector<34x128xf32> to vector<32x128xf32>
    %111 = arith.truncf %110 : vector<32x128xf32> to vector<32x128xbf16>
    %c0_i32_53 = arith.constant 0 : i32
    %112 = arith.addi %107, %c0_i32_53 : i32
    %113 = arith.index_cast %112 : i32 to index
    %c0_54 = arith.constant 0 : index
    %c0_55 = arith.constant 0 : index
    %114 = vector.load %arg11[%113, %c0_54, %c0_55] : memref<6x128x256xbf16, #tpu.memory_space<vmem>>, vector<1x128x256xbf16>
    %115 = vector.shape_cast %114 : vector<1x128x256xbf16> to vector<128x256xbf16>
    %cst_56 = arith.constant dense<0.000000e+00> : vector<32x256xf32>
    %116 = tpu.matmul %111, %115, %cst_56 {dimension_numbers = #tpu.dot_dimension_numbers<[1], [0], [0], [1], [0, 0, 1, 1], [], []>} : vector<32x128xbf16>, vector<128x256xbf16>, vector<32x256xf32> -> vector<32x256xf32>
    %117 = vector.extract_strided_slice %106 {offsets = [1, 0], sizes = [32, 128], strides = [1, 1]} : vector<34x128xf32> to vector<32x128xf32>
    %118 = arith.truncf %117 : vector<32x128xf32> to vector<32x128xbf16>
    %c1_i32 = arith.constant 1 : i32
    %119 = arith.addi %107, %c1_i32 : i32
    %120 = arith.index_cast %119 : i32 to index
    %c0_57 = arith.constant 0 : index
    %c0_58 = arith.constant 0 : index
    %121 = vector.load %arg11[%120, %c0_57, %c0_58] : memref<6x128x256xbf16, #tpu.memory_space<vmem>>, vector<1x128x256xbf16>
    %122 = vector.shape_cast %121 : vector<1x128x256xbf16> to vector<128x256xbf16>
    %cst_59 = arith.constant dense<0.000000e+00> : vector<32x256xf32>
    %123 = tpu.matmul %118, %122, %cst_59 {dimension_numbers = #tpu.dot_dimension_numbers<[1], [0], [0], [1], [0, 0, 1, 1], [], []>} : vector<32x128xbf16>, vector<128x256xbf16>, vector<32x256xf32> -> vector<32x256xf32>
    %124 = arith.addf %116, %123 : vector<32x256xf32>
    %125 = vector.extract_strided_slice %106 {offsets = [2, 0], sizes = [32, 128], strides = [1, 1]} : vector<34x128xf32> to vector<32x128xf32>
    %126 = arith.truncf %125 : vector<32x128xf32> to vector<32x128xbf16>
    %c2_i32 = arith.constant 2 : i32
    %127 = arith.addi %107, %c2_i32 : i32
    %128 = arith.index_cast %127 : i32 to index
    %c0_60 = arith.constant 0 : index
    %c0_61 = arith.constant 0 : index
    %129 = vector.load %arg11[%128, %c0_60, %c0_61] : memref<6x128x256xbf16, #tpu.memory_space<vmem>>, vector<1x128x256xbf16>
    %130 = vector.shape_cast %129 : vector<1x128x256xbf16> to vector<128x256xbf16>
    %cst_62 = arith.constant dense<0.000000e+00> : vector<32x256xf32>
    %131 = tpu.matmul %126, %130, %cst_62 {dimension_numbers = #tpu.dot_dimension_numbers<[1], [0], [0], [1], [0, 0, 1, 1], [], []>} : vector<32x128xbf16>, vector<128x256xbf16>, vector<32x256xf32> -> vector<32x256xf32>
    %132 = arith.addf %124, %131 : vector<32x256xf32>
    %133 = vector.broadcast %109 : vector<1x256xf32> to vector<32x256xf32>
    %134 = arith.addf %132, %133 : vector<32x256xf32>
    %cst_63 = arith.constant 0.000000e+00 : f32
    %135 = vector.broadcast %cst_63 : f32 to vector<32x256xf32>
    %136 = arith.maximumf %134, %135 : vector<32x256xf32>
    %137 = vector.broadcast %1 : vector<32x1xf32> to vector<32x256xf32>
    %138 = arith.mulf %136, %137 : vector<32x256xf32>
    %c1_64 = arith.constant 1 : index
    %c0_65 = arith.constant 0 : index
    %139 = vector.load %arg21[%c1_64, %c0_65] : memref<34x256xf32, #tpu.memory_space<vmem>>, vector<32x256xf32>
    tpu.vector_store %arg21[%c1_64, %c0_65], %138 {strides = array<i32>} : memref<34x256xf32, #tpu.memory_space<vmem>>, vector<32x256xf32>,
    %c0_66 = arith.constant 0 : index
    %c0_67 = arith.constant 0 : index
    %140 = vector.load %arg21[%c0_66, %c0_67] : memref<34x256xf32, #tpu.memory_space<vmem>>, vector<34x256xf32>
    %c3_i32_68 = arith.constant 3 : i32
    %141 = arith.muli %arg1, %c3_i32_68 : i32
    %c0_69 = arith.constant 0 : index
    %c0_70 = arith.constant 0 : index
    %c0_71 = arith.constant 0 : index
    %142 = vector.load %arg14[%c0_69, %c0_70, %c0_71] : memref<1x1x128xf32, #tpu.memory_space<vmem>>, vector<1x1x128xf32>
    %143 = vector.shape_cast %142 : vector<1x1x128xf32> to vector<1x128xf32>
    %144 = vector.extract_strided_slice %140 {offsets = [0, 0], sizes = [32, 256], strides = [1, 1]} : vector<34x256xf32> to vector<32x256xf32>
    %145 = arith.truncf %144 : vector<32x256xf32> to vector<32x256xbf16>
    %c0_i32_72 = arith.constant 0 : i32
    %146 = arith.addi %141, %c0_i32_72 : i32
    %147 = arith.index_cast %146 : i32 to index
    %c0_73 = arith.constant 0 : index
    %c0_74 = arith.constant 0 : index
    %148 = vector.load %arg13[%147, %c0_73, %c0_74] : memref<6x256x128xbf16, #tpu.memory_space<vmem>>, vector<1x256x128xbf16>
    %149 = vector.shape_cast %148 : vector<1x256x128xbf16> to vector<256x128xbf16>
    %cst_75 = arith.constant dense<0.000000e+00> : vector<32x128xf32>
    %150 = tpu.matmul %145, %149, %cst_75 {dimension_numbers = #tpu.dot_dimension_numbers<[1], [0], [0], [1], [0, 0, 1, 1], [], []>} : vector<32x256xbf16>, vector<256x128xbf16>, vector<32x128xf32> -> vector<32x128xf32>
    %151 = vector.extract_strided_slice %140 {offsets = [1, 0], sizes = [32, 256], strides = [1, 1]} : vector<34x256xf32> to vector<32x256xf32>
    %152 = arith.truncf %151 : vector<32x256xf32> to vector<32x256xbf16>
    %c1_i32_76 = arith.constant 1 : i32
    %153 = arith.addi %141, %c1_i32_76 : i32
    %154 = arith.index_cast %153 : i32 to index
    %c0_77 = arith.constant 0 : index
    %c0_78 = arith.constant 0 : index
    %155 = vector.load %arg13[%154, %c0_77, %c0_78] : memref<6x256x128xbf16, #tpu.memory_space<vmem>>, vector<1x256x128xbf16>
    %156 = vector.shape_cast %155 : vector<1x256x128xbf16> to vector<256x128xbf16>
    %cst_79 = arith.constant dense<0.000000e+00> : vector<32x128xf32>
    %157 = tpu.matmul %152, %156, %cst_79 {dimension_numbers = #tpu.dot_dimension_numbers<[1], [0], [0], [1], [0, 0, 1, 1], [], []>} : vector<32x256xbf16>, vector<256x128xbf16>, vector<32x128xf32> -> vector<32x128xf32>
    %158 = arith.addf %150, %157 : vector<32x128xf32>
    %159 = vector.extract_strided_slice %140 {offsets = [2, 0], sizes = [32, 256], strides = [1, 1]} : vector<34x256xf32> to vector<32x256xf32>
    %160 = arith.truncf %159 : vector<32x256xf32> to vector<32x256xbf16>
    %c2_i32_80 = arith.constant 2 : i32
    %161 = arith.addi %141, %c2_i32_80 : i32
    %162 = arith.index_cast %161 : i32 to index
    %c0_81 = arith.constant 0 : index
    %c0_82 = arith.constant 0 : index
    %163 = vector.load %arg13[%162, %c0_81, %c0_82] : memref<6x256x128xbf16, #tpu.memory_space<vmem>>, vector<1x256x128xbf16>
    %164 = vector.shape_cast %163 : vector<1x256x128xbf16> to vector<256x128xbf16>
    %cst_83 = arith.constant dense<0.000000e+00> : vector<32x128xf32>
    %165 = tpu.matmul %160, %164, %cst_83 {dimension_numbers = #tpu.dot_dimension_numbers<[1], [0], [0], [1], [0, 0, 1, 1], [], []>} : vector<32x256xbf16>, vector<256x128xbf16>, vector<32x128xf32> -> vector<32x128xf32>
    %166 = arith.addf %158, %165 : vector<32x128xf32>
    %167 = vector.broadcast %143 : vector<1x128xf32> to vector<32x128xf32>
    %168 = arith.addf %166, %167 : vector<32x128xf32>
    %169 = vector.broadcast %1 : vector<32x1xf32> to vector<32x128xf32>
    %170 = arith.mulf %168, %169 : vector<32x128xf32>
    %171 = arith.addf %102, %170 : vector<32x128xf32>
    %c0_84 = arith.constant 0 : index
    %c0_85 = arith.constant 0 : index
    %c0_86 = arith.constant 0 : index
    %172 = vector.load %arg15[%c0_84, %c0_85, %c0_86] : memref<1x1x128xf32, #tpu.memory_space<vmem>>, vector<1x1x128xf32>
    %173 = vector.shape_cast %172 : vector<1x1x128xf32> to vector<1x128xf32>
    %c0_87 = arith.constant 0 : index
    %c0_88 = arith.constant 0 : index
    %c0_89 = arith.constant 0 : index
    %174 = vector.load %arg16[%c0_87, %c0_88, %c0_89] : memref<1x1x128xf32, #tpu.memory_space<vmem>>, vector<1x1x128xf32>
    %175 = vector.shape_cast %174 : vector<1x1x128xf32> to vector<1x128xf32>
    %cst_90 = arith.constant dense<0.000000e+00> : vector<32xf32>
    %176 = vector.multi_reduction <add>, %171, %cst_90 [1] : vector<32x128xf32> to vector<32xf32>
    %177 = vector.shape_cast %176 : vector<32xf32> to vector<32x1xf32>
    %cst_91 = arith.constant 1.280000e+02 : f32
    %178 = vector.broadcast %cst_91 : f32 to vector<32x1xf32>
    %179 = arith.divf %177, %178 : vector<32x1xf32>
    %180 = vector.broadcast %179 : vector<32x1xf32> to vector<32x128xf32>
    %181 = arith.subf %171, %180 : vector<32x128xf32>
    %182 = arith.mulf %181, %181 : vector<32x128xf32>
    %cst_92 = arith.constant dense<0.000000e+00> : vector<32xf32>
    %183 = vector.multi_reduction <add>, %182, %cst_92 [1] : vector<32x128xf32> to vector<32xf32>
    %184 = vector.shape_cast %183 : vector<32xf32> to vector<32x1xf32>
    %cst_93 = arith.constant 1.280000e+02 : f32
    %185 = vector.broadcast %cst_93 : f32 to vector<32x1xf32>
    %186 = arith.divf %184, %185 : vector<32x1xf32>
    %187 = vector.broadcast %179 : vector<32x1xf32> to vector<32x128xf32>
    %188 = arith.subf %171, %187 : vector<32x128xf32>
    %cst_94 = arith.constant 9.99999974E-5 : f32
    %189 = vector.broadcast %cst_94 : f32 to vector<32x1xf32>
    %190 = arith.addf %186, %189 : vector<32x1xf32>
    %191 = math.rsqrt %190 : vector<32x1xf32>
    %192 = vector.broadcast %191 : vector<32x1xf32> to vector<32x128xf32>
    %193 = arith.mulf %188, %192 : vector<32x128xf32>
    %194 = vector.broadcast %173 : vector<1x128xf32> to vector<32x128xf32>
    %195 = arith.mulf %193, %194 : vector<32x128xf32>
    %196 = vector.broadcast %175 : vector<1x128xf32> to vector<32x128xf32>
    %197 = arith.addf %195, %196 : vector<32x128xf32>
    %c0_95 = arith.constant 0 : index
    %c0_96 = arith.constant 0 : index
    %c0_97 = arith.constant 0 : index
    %198 = vector.load %arg17[%c0_95, %c0_96, %c0_97] : memref<1x32x128xf32, #tpu.memory_space<vmem>>, vector<1x32x128xf32>
    %199 = vector.shape_cast %198 : vector<1x32x128xf32> to vector<32x128xf32>
    %200 = vector.shape_cast %197 : vector<32x128xf32> to vector<1x32x128xf32>
    tpu.vector_store %arg17[%c0_95, %c0_96, %c0_97], %200 {strides = array<i32>} : memref<1x32x128xf32, #tpu.memory_space<vmem>>, vector<1x32x128xf32>,
    %c1_i32_98 = arith.constant 1 : i32
    %201 = arith.cmpi eq, %arg1, %c1_i32_98 : i32
    %202 = arith.extui %201 : i1 to i32
    %c0_i32_99 = arith.constant 0 : i32
    %203 = arith.cmpi ne, %202, %c0_i32_99 : i32
    scf.if %203 {
      %204 = vector.broadcast %1 : vector<32x1xf32> to vector<32x128xf32>
      %205 = arith.mulf %197, %204 : vector<32x128xf32>
      %c0_100 = arith.constant 0 : index
      %c0_101 = arith.constant 0 : index
      %c0_102 = arith.constant 0 : index
      %206 = vector.load %arg17[%c0_100, %c0_101, %c0_102] : memref<1x32x128xf32, #tpu.memory_space<vmem>>, vector<1x32x128xf32>
      %207 = vector.shape_cast %206 : vector<1x32x128xf32> to vector<32x128xf32>
      %208 = vector.shape_cast %205 : vector<32x128xf32> to vector<1x32x128xf32>
      tpu.vector_store %arg17[%c0_100, %c0_101, %c0_102], %208 {strides = array<i32>} : memref<1x32x128xf32, #tpu.memory_space<vmem>>, vector<1x32x128xf32>,
    } else {
    }
    return
  }
  func.func @transform_0(%arg0: i32, %arg1: i32) -> (i32, i32, i32) {
    %c0_i32 = arith.constant 0 : i32
    %c0_i32_0 = arith.constant 0 : i32
    %c0_i32_1 = arith.constant 0 : i32
    return %arg0, %c0_i32, %c0_i32_0 : i32, i32, i32
  }
  func.func @transform_1(%arg0: i32, %arg1: i32) -> (i32, i32, i32) {
    %c0_i32 = arith.constant 0 : i32
    %c0_i32_0 = arith.constant 0 : i32
    %c0_i32_1 = arith.constant 0 : i32
    return %arg0, %c0_i32, %c0_i32_0 : i32, i32, i32
  }
  func.func @transform_2(%arg0: i32, %arg1: i32) -> (i32, i32, i32) {
    %c0_i32 = arith.constant 0 : i32
    %c0_i32_0 = arith.constant 0 : i32
    %c0_i32_1 = arith.constant 0 : i32
    return %arg0, %c0_i32, %c0_i32_0 : i32, i32, i32
  }
  func.func @transform_3(%arg0: i32, %arg1: i32) -> (i32, i32, i32) {
    %c0_i32 = arith.constant 0 : i32
    %c0_i32_0 = arith.constant 0 : i32
    %c0_i32_1 = arith.constant 0 : i32
    %c0_i32_2 = arith.constant 0 : i32
    return %c0_i32, %c0_i32_0, %c0_i32_1 : i32, i32, i32
  }
  func.func @transform_4(%arg0: i32, %arg1: i32) -> (i32, i32, i32) {
    %c0_i32 = arith.constant 0 : i32
    %c0_i32_0 = arith.constant 0 : i32
    %c0_i32_1 = arith.constant 0 : i32
    return %arg1, %c0_i32, %c0_i32_0 : i32, i32, i32
  }
  func.func @transform_5(%arg0: i32, %arg1: i32) -> (i32, i32, i32) {
    %c0_i32 = arith.constant 0 : i32
    %c0_i32_0 = arith.constant 0 : i32
    %c0_i32_1 = arith.constant 0 : i32
    %c0_i32_2 = arith.constant 0 : i32
    return %c0_i32, %c0_i32_0, %c0_i32_1 : i32, i32, i32
  }
  func.func @transform_6(%arg0: i32, %arg1: i32) -> (i32, i32, i32) {
    %c0_i32 = arith.constant 0 : i32
    %c0_i32_0 = arith.constant 0 : i32
    %c0_i32_1 = arith.constant 0 : i32
    return %arg1, %c0_i32, %c0_i32_0 : i32, i32, i32
  }
  func.func @transform_7(%arg0: i32, %arg1: i32) -> (i32, i32, i32) {
    %c0_i32 = arith.constant 0 : i32
    %c0_i32_0 = arith.constant 0 : i32
    %c0_i32_1 = arith.constant 0 : i32
    return %arg1, %c0_i32, %c0_i32_0 : i32, i32, i32
  }
  func.func @transform_8(%arg0: i32, %arg1: i32) -> (i32, i32, i32) {
    %c0_i32 = arith.constant 0 : i32
    %c0_i32_0 = arith.constant 0 : i32
    %c0_i32_1 = arith.constant 0 : i32
    return %arg1, %c0_i32, %c0_i32_0 : i32, i32, i32
  }
  func.func @transform_9(%arg0: i32, %arg1: i32) -> (i32, i32, i32) {
    %c0_i32 = arith.constant 0 : i32
    %c0_i32_0 = arith.constant 0 : i32
    %c0_i32_1 = arith.constant 0 : i32
    %c0_i32_2 = arith.constant 0 : i32
    return %c0_i32, %c0_i32_0, %c0_i32_1 : i32, i32, i32
  }
  func.func @transform_10(%arg0: i32, %arg1: i32) -> (i32, i32, i32) {
    %c0_i32 = arith.constant 0 : i32
    %c0_i32_0 = arith.constant 0 : i32
    %c0_i32_1 = arith.constant 0 : i32
    return %arg1, %c0_i32, %c0_i32_0 : i32, i32, i32
  }
  func.func @transform_11(%arg0: i32, %arg1: i32) -> (i32, i32, i32) {
    %c0_i32 = arith.constant 0 : i32
    %c0_i32_0 = arith.constant 0 : i32
    %c0_i32_1 = arith.constant 0 : i32
    %c0_i32_2 = arith.constant 0 : i32
    return %c0_i32, %c0_i32_0, %c0_i32_1 : i32, i32, i32
  }
  func.func @transform_12(%arg0: i32, %arg1: i32) -> (i32, i32, i32) {
    %c0_i32 = arith.constant 0 : i32
    %c0_i32_0 = arith.constant 0 : i32
    %c0_i32_1 = arith.constant 0 : i32
    return %arg1, %c0_i32, %c0_i32_0 : i32, i32, i32
  }
  func.func @transform_13(%arg0: i32, %arg1: i32) -> (i32, i32, i32) {
    %c0_i32 = arith.constant 0 : i32
    %c0_i32_0 = arith.constant 0 : i32
    %c0_i32_1 = arith.constant 0 : i32
    return %arg1, %c0_i32, %c0_i32_0 : i32, i32, i32
  }
  func.func @transform_14(%arg0: i32, %arg1: i32) -> (i32, i32, i32) {
    %c0_i32 = arith.constant 0 : i32
    %c0_i32_0 = arith.constant 0 : i32
    %c0_i32_1 = arith.constant 0 : i32
    return %arg1, %c0_i32, %c0_i32_0 : i32, i32, i32
  }
  func.func @transform_15(%arg0: i32, %arg1: i32) -> (i32, i32, i32) {
    %c0_i32 = arith.constant 0 : i32
    %c0_i32_0 = arith.constant 0 : i32
    %c0_i32_1 = arith.constant 0 : i32
    return %arg0, %c0_i32, %c0_i32_0 : i32, i32, i32
  }
}

</mosaic_0001>

<bundles_post_ra>
// kernel: tpu_custom_call.1
= control target key start
LH: loop header
LB: loop body
LE: loop exit
PB: predicated region body
PF: predicated region fallthrough
CT: control target
= control target key end

     0   :  { %s5526_s0 = inlined_call_operand.vmem [shape: f32[2,32,128], index: 0, kind: input, shape index: {}]   ;;  %s5527_s1 = inlined_call_operand.vmem [shape: f32[2,32,1], index: 1, kind: input, shape index: {}]   ;;  %s5528_s2 = inlined_call_operand.hbm [shape: f32[2,1,32], index: 2, kind: input, shape index: {}]   ;;  %s5529_s3 = inlined_call_operand.hbm [shape: bf16[2,128,384], index: 3, kind: input, shape index: {}]   ;;  %s5530_s4 = inlined_call_operand.hbm [shape: f32[2,1,384], index: 4, kind: input, shape index: {}]   ;;  %s5531_s5 = inlined_call_operand.hbm [shape: bf16[2,128,128], index: 5, kind: input, shape index: {}]   ;;  %s5532_s6 = inlined_call_operand.vmem [shape: f32[2,1,128], index: 6, kind: input, shape index: {}]   ;;  %s5533_s7 = inlined_call_operand.vmem [shape: f32[2,1,128], index: 7, kind: input, shape index: {}]   ;;  %s5534_s8 = inlined_call_operand.hbm [shape: f32[2,1,128], index: 8, kind: input, shape index: {}]   ;;  %s5535_s9 = inlined_call_operand.hbm [shape: bf16[6,128,256], index: 9, kind: input, shape index: {}]   ;;  %s5536_s10 = inlined_call_operand.vmem [shape: f32[2,1,256], index: 10, kind: input, shape index: {}]   ;;  %s5537_s11 = inlined_call_operand.hbm [shape: bf16[6,256,128], index: 11, kind: input, shape index: {}]   ;;  %s5538_s12 = inlined_call_operand.vmem [shape: f32[2,1,128], index: 12, kind: input, shape index: {}]   ;;  %s5539_s13 = inlined_call_operand.vmem [shape: f32[2,1,128], index: 13, kind: input, shape index: {}]   ;;  %s5540_s14 = inlined_call_operand.vmem [shape: f32[2,1,128], index: 14, kind: input, shape index: {}]   ;;  %s5541_s15 = inlined_call_operand.hbm [shape: f32[2,32,128], index: 15, kind: output, shape index: {}]  }
   0x1   :  { %5560 = sst [smem:[#allocation39_spill]] %s5526_s0 }
   0x2   :  { %5561 = sst [smem:[#allocation40_spill]] %s5527_s1 }
   0x3   :  { %5562 = sst [smem:[#allocation41_spill]] %s5528_s2 }
   0x4   :  { %5563 = sst [smem:[#allocation42_spill]] %s5529_s3 }
   0x5   :  { %5564 = sst [smem:[#allocation43_spill]] %s5530_s4 }
   0x6   :  { %5565 = sst [smem:[#allocation44_spill]] %s5531_s5 }
   0x7   :  { %5566 = sst [smem:[#allocation45_spill]] %s5532_s6 }
   0x8   :  { %5567 = sst [smem:[#allocation46_spill]] %s5533_s7 }
   0x9   :  { %5568 = sst [smem:[#allocation47_spill]] %s5534_s8 }
   0xa   :  { %5569 = sst [smem:[#allocation48_spill]] %s5535_s9 }
   0xb   :  { %5570 = sst [smem:[#allocation49_spill]] %s5536_s10 }
   0xc   :  { %5571 = sst [smem:[#allocation50_spill]] %s5537_s11 }
   0xd   :  { %5572 = sst [smem:[#allocation51_spill]] %s5538_s12 }
   0xe   :  { %5573 = sst [smem:[#allocation52_spill]] %s5539_s13 }
   0xf   :  { %5574 = sst [smem:[#allocation53_spill]] %s5540_s14 }
  0x10   :  { %5575 = sst [smem:[#allocation54_spill]] %s5541_s15 }
  0x11   :  { %20 = vsyncpa [#allocation7], 0 }
  0x12   :  { %22 = vsyncpa [#allocation7 + $0x1], 0 }
  0x13   :  { %23 = vsyncpa [#allocation10], 0 }
  0x14   :  { %24 = vsyncpa [#allocation14], 0 }
  0x15   :  { %26 = vsyncpa [#allocation14 + $0x1], 0 }
  0x16   :  { %27 = vsyncpa [#allocation17], 0 }
  0x17   :  { %28 = vsyncpa [#allocation8], 0 }
  0x18   :  { %30 = vsyncpa [#allocation8 + $0x1], 0  ;;  %s4654_s18 = smov 0   ;;  %s4656_s19 = smov 0  }
  0x19   :  { %s4658_s20 = smov 0   ;;  %s4660_s21 = smov 0  }
  0x1a   :  { %s4662_s22 = smov 0   ;;  %s4664_s23 = smov 0  }
  0x1b   :  { %s4666_s24 = smov 0   ;;  %s4668_s25 = smov 0  }
  0x1c   :  { %s4670_s26 = smov 0   ;;  %s4672_s27 = smov 0  }
  0x1d   :  { %s4674_s28 = smov 0  }
  0x1e LB: > { %5576 = sst [smem:[#allocation27_spill]] %s4527_s21  ;;  %s4710_s29 = sadd.s32 4294967295, %s4555_s28   ;;  %s4555_s28 = sphi %s4674_s28, %s36_s28   ;;  %s4551_s27 = sphi %s4672_s27, %s5642_s27   ;;  %s4547_s26 = sphi %s4670_s26, %s5641_s26   ;;  %s4543_s25 = sphi %s4668_s25, %s5640_s25   ;;  %s4539_s24 = sphi %s4666_s24, %s5639_s24   ;;  %s4535_s23 = sphi %s4664_s23, %s5638_s23   ;;  %s4531_s22 = sphi %s4662_s22, %s5637_s22   ;;  %s4527_s21 = sphi %s4660_s21, %s5636_s21   ;;  %s4523_s20 = sphi %s4658_s20, %s5645_s20   ;;  %s4519_s19 = sphi %s4656_s19, %s5644_s19   ;;  %s4515_s18 = sphi %s4654_s18, %s5643_s18  }
  0x1f   : > { %5577 = sst [smem:[#allocation28_spill]] %s4531_s22  ;;  %p3175_p0 = scmp.ge.s32.totalorder %s4555_s28, 1 }
  0x20   : > { %5578 = sst [smem:[#allocation29_spill]] %s4535_s23  ;;  %p121_p1 = scmp.eq.s32.totalorder %s4710_s29, 0 }
  0x21   : > { %5579 = sst [smem:[#allocation30_spill]] %s4539_s24  ;;  %p449_p2 = scmp.lt.s32.totalorder %s4555_s28, 5 }
  0x22   : > { %5580 = sst [smem:[#allocation31_spill]] %s4543_s25  ;;  %s4557_s14 = smov [#allocation9]  }
  0x23   : > { %5581 = sst [smem:[#allocation32_spill]] %s4547_s26  ;;  %p4718_p3 = pnand %p3175_p0, %p449_p2 }
  0x24   : > { %5582 = sst [smem:[#allocation33_spill]] %s4551_s27  ;;  %s462_s13 = sshll.u32 %s4557_s14, 4  ;;  %s463_s13 = int_to_ptr.vmem [resolvable:$true] %s462_s13 }
  0x25   : > { %s5583_s3 = sld [smem:[#allocation42_spill]]  ;;  %p3997_p4 = pneg %p4718_p3 }
  0x26   : > { %s5584_s15 = scalar_select %p4718_p3, 1, 0 }
  0x27   : > { %p4726_p5 = pnand %p3997_p4, %p121_p1  ;;  %s5586_s9 = sld [smem:[#allocation48_spill]] }
  0x28   : > { %s4558_s14 = smov 192   ;;  %s4559_s12 = smov 12  }
  0x29   : > { %s5585_s30 = scalar_select %p4726_p5, 1, 0 }
  0x2a   : > { %s4560_s7 = smov [#allocation15]   ;;  %s4561_s16 = smov 128  }
  0x2b   : > { %s460_s17 = sshll.u32 %s5583_s3, 4  ;;  %s490_s3 = sshll.u32 %s4560_s7, 4  ;;  %s461_s17 = int_to_ptr.hbm [resolvable:$true] %s460_s17  ;;  %s491_s3 = int_to_ptr.vmem [resolvable:$true] %s490_s3 }
  0x2c   : > { %4000 = dma.hbm_to_vmem [thread:$0]  (!%p4726_p5), %s461_s17, 6144, %s463_s13, [#allocation10], %s4558_s14, %s4558_s14, %s4559_s12  }
  0x2d   : > { %s488_s10 = sshll.u32 %s5586_s9, 4  ;;  %s4562_s9 = smov 8   ;;  %s489_s10 = int_to_ptr.hbm [resolvable:$true] %s488_s10 }
  0x2e   : > { %4006 = dma.hbm_to_vmem [thread:$0]  (!%p4726_p5), %s489_s10, 12288, %s491_s3, [#allocation14], %s4561_s16, %s4561_s16, %s4562_s9  }
  0x2f   : > { %s3174_s6 = sadd.s32 4294967294, %s4555_s28   ;;  %p5543_p6 = scmp.ne.s32.totalorder %s4535_s23, %s4531_s22 }
  0x30   : > { %p115_p7 = scmp.eq.s32.totalorder %s4555_s28, 0  ;;  %p120_p8 = scmp.ne.s32.totalorder %s4531_s22, %s4527_s21 }
  0x31   : > { %p161_p9 = scmp.ne.s32.totalorder %s4523_s20, %s4519_s19  ;;  %p167_p10 = scmp.ne.s32.totalorder %s4519_s19, %s4515_s18 }
  0x32   : > { %p4752_p11 = por %p115_p7, %p5543_p6  ;;  %p4758_p12 = por %p121_p1, %p120_p8 }
  0x33   : > { %p4762_p13 = por %p161_p9, %p115_p7  ;;  %p4768_p0 = por %p167_p10, %p121_p1 }
  0x34   : > { %p436_p2 = scmp.eq.s32.totalorder %s4710_s29, 3  ;;  %p442_p4 = scmp.eq.s32.totalorder %s3174_s6, 3 }
  0x35   : > { %p4028_p6 = scmp.lt.s32.totalorder %s4555_s28, 4  ;;  %p5591_p3 = scmp.ne.s32.totalorder %s4535_s23, %s4531_s22 }
  0x36   : > { %p4782_p7 = por %p442_p4, %p120_p8  ;;  %s536_s14 = sand.u32 1, %s4535_s23  }
  0x37   : > { %p4778_p5 = por %p436_p2, %p5591_p3  ;;  %s5596_s2 = sld [smem:[#allocation41_spill]] }
  0x38   : > { %s5594_s17 = scalar_select %p4782_p7, 1, 0 }
  0x39   : > { %s5592_s18 = scalar_select %p4778_p5, 1, 0 }
  0x3a   : > { %5595 = sst [smem:[#allocation35_spill]] %s5594_s17  ;;  %s537_s21 = scalar_lea.vmem [#allocation6], %s536_s14 }
  0x3b   : > { %5593 = sst [smem:[#allocation34_spill]] %s5592_s18  ;;  %s544_s6 = sshll.u32 %s537_s21, 4  ;;  %s545_s6 = int_to_ptr.vmem [resolvable:$true] %s544_s6 }
  0x3c   : > { %p4011_p3 = pnand %p4028_p6, %p4752_p11  ;;  %p4795_p9 = pnand %p4028_p6, %p4762_p13 }
  0x3d   : > { %s540_s0 = scalar_lea.hbm %s5596_s2, %s4551_s27  ;;  %s5598_s5 = sld [smem:[#allocation44_spill]] }
  0x3e   : > { %s542_s1 = sshll.u32 %s540_s0, 4  ;;  %s5599_s3 = sand.u32 1, %s4555_s28   ;;  %s543_s1 = int_to_ptr.hbm [resolvable:$true] %s542_s1 }
  0x3f   : > { %s4804_s0 = scalar_lea.sflag [#allocation7], %s5599_s3  ;;  %s4563_s21 = smov [#allocation12]  }
  0x40   : > { %4013 = dma.hbm_to_vmem [thread:$0]  (!%p4011_p3), %s543_s1, 16, %s545_s6, %s4804_s0  }
  0x41   : > { %s476_s7 = sshll.u32 %s4563_s21, 4  ;;  %s4564_s10 = smov 64   ;;  %s477_s7 = int_to_ptr.vmem [resolvable:$true] %s476_s7 }
  0x42   : > { %s4565_s14 = smov 4   ;;  %p5600_p6 = scmp.ne.s32.totalorder %s5585_s30, 0 }
  0x43   : > { %s474_s24 = sshll.u32 %s5598_s5, 4  ;;  %s5601_s11 = sld [smem:[#allocation50_spill]]  ;;  %s475_s24 = int_to_ptr.hbm [resolvable:$true] %s474_s24 }
  0x44   : > { %4003 = dma.hbm_to_vmem [thread:$0]  (!%p5600_p6), %s475_s24, 2048, %s477_s7, [#allocation10], %s4564_s10, %s4564_s10, %s4565_s14  }
  0x45   : > { %s4566_s3 = smov [#allocation16]   ;;  %s154_s6 = sadd.s32 1, %s4523_s20 }
  0x46   : > { %s504_s1 = sshll.u32 %s4566_s3, 4  ;;  %s45_s21 = sadd.s32 1, %s4547_s26  ;;  %s505_s1 = int_to_ptr.vmem [resolvable:$true] %s504_s1 }
  0x47   : > { %s553_s2 = sand.u32 1, %s4523_s20   ;;  %p46_p8 = scmp.ge.s32.totalorder %s45_s21, 2 }
  0x48   : > { %s3970_s5 = smul.u32 3, %s553_s2  ;;  %s5603_s24 = sadd.s32 1, %s4551_s27 }
  0x49   : > { %s502_s16 = sshll.u32 %s5601_s11, 4  ;;  %s3971_s25 = smul.u32 3, %s4547_s26  ;;  %s503_s16 = int_to_ptr.hbm [resolvable:$true] %s502_s16 }
  0x4a   : > { %4009 = dma.hbm_to_vmem [thread:$0]  (!%p5600_p6), %s503_s16, 12288, %s505_s1, [#allocation17], %s4564_s10, %s4564_s10, %s4565_s14  }
  0x4b   : > { %s5647_s21 = smov (%p46_p8, %s45_s21), 0  ;;  %s5649_s24 = smov (!%p46_p8, %s5603_s24), %s4551_s27 }
  0x4c   : > { %5602 = sst [smem:[#allocation36_spill]] %s5647_s21  ;;  %s151_s30 = ssub.s32 %s4547_s26, %s5647_s21 }
  0x4d   : > { %p50_p10 = scmp.ge.s32.totalorder %s5649_s24, 2  ;;  %p152_p11 = scmp.eq.s32.totalorder %s151_s30, 0 }
  0x4e   : > { %s5604_s4 = sld [smem:[#allocation43_spill]]  ;;  %s555_s18 = scalar_lea.vmem [#allocation11], %s3970_s5 }
  0x4f   : > { %s563_s17 = sshll.u32 %s555_s18, 4  ;;  %s5651_s24 = smov (%p50_p10, %s5649_s24), 0  ;;  %s564_s17 = int_to_ptr.vmem [resolvable:$true] %s563_s17 }
  0x50   : > { %5605 = sst [smem:[#allocation37_spill]] %s5651_s24  ;;  %s104_s3 = ssub.s32 %s4551_s27, %s5651_s24 }
  0x51   : > { %s4831_s16 = scalar_select %p152_p11, %s4523_s20, %s154_s6  }
  0x52   : > { %p105_p13 = scmp.eq.s32.totalorder %s104_s3, 0  ;;  %s5606_s8 = sld [smem:[#allocation47_spill]] }
  0x53   : > { %s5607_s7 = sadd.s32 1, %s4535_s23  ;;  %s585_s10 = scalar_lea.vmem [#allocation13], %s553_s2 }
  0x54   : > { %s559_s14 = scalar_lea.hbm %s5604_s4, %s3971_s25  ;;  %s592_s18 = sshll.u32 %s585_s10, 4  ;;  %s593_s18 = int_to_ptr.vmem [resolvable:$true] %s592_s18 }
  0x55   : > { %s561_s1 = sshll.u32 %s559_s14, 4  ;;  %s5609_s6 = sand.u32 1, %s4555_s28   ;;  %s562_s1 = int_to_ptr.hbm [resolvable:$true] %s561_s1 }
  0x56   : > { %s4842_s25 = scalar_select %p105_p13, %s4535_s23, %s5607_s7  }
  0x57   : > { %4016 = dma.hbm_to_vmem [thread:$0]  (!%p4795_p9), %s562_s1, 48, %s564_s17, %s4804_s0  }
  0x58   : > { %s588_s21 = scalar_lea.hbm %s5606_s8, %s4547_s26  ;;  %5608 = sst [smem:[#allocation38_spill]] %s4842_s25 }
  0x59   : > { %s590_s5 = sshll.u32 %s588_s21, 4  ;;  %s583_s4 = scalar_lea.sflag [#allocation14], %s5609_s6  ;;  %s591_s5 = int_to_ptr.hbm [resolvable:$true] %s590_s5 }
  0x5a   : > { %4019 = dma.hbm_to_vmem [thread:$0]  (!%p4795_p9), %s591_s5, 16, %s593_s18, %s583_s4  }
  0x5b   : > { %p5610_p2 = scmp.ne.s32.totalorder %s5584_s15, 0 }
  0x5c   : > { %s628_s11 = sand.u32 (!%p5610_p2), 1, %s4710_s29   ;;  %s4855_s14 = sand.u32 (!%p5610_p2), 1, %s4531_s22  }
  0x5d   : > { %626 = sbr.rel (%p5610_p2) target bundleno = 2447 (0x98f), region = 80  ;;  %s629_s0 = scalar_lea.sflag (!%p5610_p2), [#allocation7], %s628_s11 }
  0x62   : > { %4482 = dma.done.wait (%p4758_p12), %s629_s0, 16  }
  0x63   : > { %4484 = vsyncadd (%p4758_p12), %s629_s0, 4294967280 }
  0x64   : > { %4486 = dma.done.wait (%p121_p1), [#allocation10], 6144  }
  0x65   : > { %4488 = vsyncadd (%p121_p1), [#allocation10], 4294961152  ;;  %s644_s2 = sand.u32 1, %s4519_s19  }
  0x66   : > { %s4867_s4 = smul.u32 3, %s644_s2 }
  0x67   : > { %4490 = dma.done.wait (%p4768_p0), %s629_s0, 48  }
  0x68   : > { %4492 = vsyncadd (%p4768_p0), %s629_s0, 4294967248 }
  0x69   : > { %4494 = dma.done.wait (%p121_p1), [#allocation10], 2048  }
  0x6a   : > { %4496 = vsyncadd (%p121_p1), [#allocation10], 4294965248  ;;  %s658_s9 = scalar_lea.sflag [#allocation14], %s628_s11  ;;  %s4878_s13 = scalar_lea.vmem [#allocation13], %s644_s2 }
  0x6b   : > { %4498 = dma.done.wait (%p4768_p0), %s658_s9, 16  }
  0x6c   : > { %4500 = vsyncadd (%p4768_p0), %s658_s9, 4294967280 }
  0x6d   : > { %4502 = dma.done.wait (%p121_p1), [#allocation14], 12288  }
  0x6e   : > { %4504 = vsyncadd (%p121_p1), [#allocation14], 4294955008 }
  0x6f   : > { %4506 = dma.done.wait (%p121_p1), [#allocation17], 12288  }
  0x70   : > { %4508 = vsyncadd (%p121_p1), [#allocation17], 4294955008  ;;  %s5611_s17 = sld [smem:[#allocation31_spill]]  ;;  %s3186_s12 = sshll.u32 %s4855_s14, 5 }
  0x71   : > { %s5612_s3 = sld [smem:[#allocation30_spill]]  ;;  %s4943_s22 = scalar_lea.vmem [#allocation18], %s3186_s12 }
  0x72   : > { %s5613_s5 = sld [smem:[#allocation39_spill]] }
  0x73   : > { %s5614_s11 = sld [smem:[#allocation40_spill]] }
  0x74   : > { %s5620_s2 = sld [smem:[#allocation52_spill]] }
  0x75   : > { %s5621_s25 = sld [smem:[#allocation53_spill]] }
  0x76   : > { %p755_p12 = scmp.lt.s32.totalorder %s5611_s17, 1 }
  0x77   : > { %p765_p0 = scmp.lt.s32.totalorder %s5612_s3, 1  ;;  %p3192_p1 = scmp.ne.s32.totalorder %s5612_s3, 0 }
  0x78   : > { %s5653_s17 = smov (!%p755_p12, %s5611_s17), 1 }
  0x79   : > { %s4897_s1 = scalar_select %p765_p0, %s5612_s3, 1 }
  0x7a   : > { %s3833_s29 = sshll.u32 %s5653_s17, 5 }
  0x7b   : > { %s4902_s10 = scalar_lea.vmem %s5613_s5, %s3833_s29  ;;  %s764_s0 = scalar_lea.vmem %s5614_s11, %s3833_s29 }
  0x7c   : > { %v4915_v0 = vld [vmem:[%s764_s0] sm:$0xff]  ;;  %v4917_v1 = vld [vmem:[%s764_s0 + $0x8] sm:$0xff]  ;;  %v4919_v2 = vld [vmem:[%s764_s0 + $0x10] sm:$0xff]  ;;  %s3191_s17 = sshll.u32 %s4897_s1, 1  ;;  %s5617_s5 = sld [smem:[#allocation51_spill]] }
  0x7d   : > { %v4926_v3 = vld [vmem:[%s764_s0 + $0x18] sm:$0xff]  ;;  %s5618_s29 = scalar_lea.vmem [#allocation6], %s4855_s14  ;;  %s5619_s11 = sld [smem:[#allocation49_spill]] }
  0x7e   : > { %v789_v4 = vld [vmem:[%s5618_s29] sm:$0x1]  ;;  %s780_s9 = scalar_lea.vmem %s5620_s2, %s4897_s1  ;;  %s783_s23 = scalar_lea.vmem %s5621_s25, %s4897_s1 }
  0x7f   : > { %793 = sbr.rel (%p3192_p1) target bundleno = 263 (0x107), region = 112 }
  0x82   : > { %s777_s18 = scalar_lea.vmem %s5617_s5, %s4897_s1 }
  0x83   : > { %s4933_s8 = scalar_lea.vmem %s5619_s11, %s3191_s17 }
  0x84   : > { %v4567_v5 = vmov 0   ;;  %v4568_v6 = vmov 0.0   ;;  %v794_v7 = vld [vmem:[%s4902_s10] sm:$0xff]  ;;  %v795_v8 = vld [vmem:[%s4902_s10 + $0x8] sm:$0xff]  ;;  %v796_v9 = vld [vmem:[%s4902_s10 + $0x10] sm:$0xff]  ;;  %v823_v11 = vperm.slane %v789_v4, 0 }
  0x85   : > { %4140 = vset.pattern.permute.xlu1 %v4567_v5  ;;  %4139 = vset.pattern.permute.xlu0 %v4567_v5  ;;  %842 = vst [vmem:[#allocation4] sm:$0xff] %v4568_v6  ;;  %v797_v10 = vld [vmem:[%s4902_s10 + $0x18] sm:$0xff]  ;;  %vm837_vm0 = vcmask 261120  }
  0x86   : > { %814 = vperm.xlu1 %4140, %v4919_v2   ;;  %804 = vperm.xlu0 %4139, %v4915_v0   ;;  %843 = vst [vmem:[#allocation4 + $0x8] sm:$0xff] %v4568_v6 }
  0x87   : > { %844 = vst [vmem:[#allocation4 + $0x10] sm:$0xff] %v4568_v6 }
  0x88   : > { %845 = vst [vmem:[#allocation4 + $0x18] sm:$0xff] %v4568_v6 }
  0x89   : > { %846 = vst [vmem:[#allocation4 + $0x20] sm:$0x3] %v4568_v6 }
  0x8a   : > { %847 = vst [vmem:[#allocation5 + $0x30] sm:$0xff] %v4568_v6 }
  0x8b   : > { %848 = vst [vmem:[#allocation5] sm:$0xff] %v4568_v6 }
  0x8c   : > { %855 = vst [vmem:[#allocation5 + $0x40] sm:$0x3] %v4568_v6 }
  0x8d   : > { %856 = vst [vmem:[#allocation5 + $0x38] sm:$0x3] %v4568_v6 }
  0x8e   : > { %819 = vperm.xlu1 %4140, %v4926_v3   ;;  %809 = vperm.xlu0 %4139, %v4917_v1   ;;  %798 = vst [vmem:[%s4943_s22] sm:$0xff] %v794_v7 }
  0x8f   : > { %799 = vst [vmem:[%s4943_s22 + $0x8] sm:$0xff] %v795_v8 }
  0x90   : > { %800 = vst [vmem:[%s4943_s22 + $0x10] sm:$0xff] %v796_v9 }
  0x91   : > { %801 = vst [vmem:[%s4943_s22 + $0x18] sm:$0xff] %v797_v10 }
  0xf8   : > { %v815_v12 = vpop.permute.xlu1 %814  ;;  %v805_v13 = vpop.permute.xlu0 %804 }
  0xf9   : > { %v827_v14 = vmul.f32 %v823_v11, %v815_v12  ;;  %v825_v15 = vmul.f32 %v823_v11, %v805_v13 }
  0xfb   : > { %vm831_vm1 = vcmp.eq.f32.partialorder %v827_v14, 0.0  ;;  %vm829_vm2 = vcmp.eq.f32.partialorder %v825_v15, 0.0 }
  0xfc   : > { %v835_v16 = vsel %vm831_vm1, -10000.0, %v4568_v6  ;;  %v833_v17 = vsel %vm829_vm2, -10000.0, %v4568_v6 }
  0xfd   : > { %840 = vst.msk [vmem:[#allocation2 + $0x10] sm:$0xff] %vm837_vm0, %v835_v16 }
  0xfe   : > { %838 = vst.msk [vmem:[#allocation2] sm:$0xff] %vm837_vm0, %v833_v17 }
 0x100   : > { %v820_v18 = vpop.permute.xlu1 %819  ;;  %v810_v19 = vpop.permute.xlu0 %809 }
 0x101   : > { %v828_v20 = vmul.f32 %v823_v11, %v820_v18  ;;  %v826_v21 = vmul.f32 %v823_v11, %v810_v19 }
 0x103   : > { %vm832_vm3 = vcmp.eq.f32.partialorder %v828_v20, 0.0  ;;  %vm830_vm4 = vcmp.eq.f32.partialorder %v826_v21, 0.0 }
 0x104   : > { %v836_v22 = vsel %vm832_vm3, -10000.0, %v4568_v6  ;;  %v834_v23 = vsel %vm830_vm4, -10000.0, %v4568_v6 }
 0x105   : > { %841 = vst.msk [vmem:[#allocation2 + $0x18] sm:$0xff] %vm837_vm0, %v836_v22 }
 0x106   : > { %839 = vst.msk [vmem:[#allocation2 + $0x8] sm:$0xff] %vm837_vm0, %v834_v23 }
 0x107 PF: > { %s5622_s26 = sld [smem:[#allocation30_spill]]  ;;  %v4569_v24 = vmov 0   ;;  %s5623_s3 = scalar_lea.vmem [#allocation11], %s4867_s4  ;;  %vm1155_vm5 = vcmask 523264   ;;  %vm1187_vm6 = vcmask 261120   ;;  %vm1275_vm7 = vcmask 519168  }
 0x108   : > { %4141 = vset.pattern.permute.xlu0 %v4569_v24  ;;  %4142 = vset.pattern.permute.xlu1 %v4569_v24  ;;  %s4570_s4 = smov 64   ;;  %vm1416_vm8 = vcmask 1043968   ;;  %s5624_s30 = sld [smem:[#allocation45_spill]] }
 0x109   : > { %863 = vperm.xlu0 %4141, %v4915_v0   ;;  %873 = vperm.xlu1 %4142, %v4919_v2   ;;  %s5626_s11 = sld [smem:[#allocation46_spill]] }
 0x10d   : > { %s3835_s25 = smul.u32 192, %s5622_s26  ;;  %s3862_s12 = sshll.u32 %s5622_s26, 6 }
 0x10e   : > { %s1427_s10 = scalar_lea.vmem [#allocation12], %s3862_s12  ;;  %s5625_s7 = scalar_lea.vmem %s5624_s30, %s4897_s1 }
 0x10f   : > { %s4965_s21 = scalar_lea.vmem [#allocation9], %s3835_s25  ;;  %s3871_s5 = smul.u32 384, %s5622_s26 }
 0x110   : > { %v3280_v25 = vld [vmem:[%s4965_s21 + $0xa8] sm:$0xf]  ;;  %v3858_v26 = vld [vmem:[%s4965_s21 + $0xb0] sm:$0xf0]  ;;  %v3857_v27 = vld [vmem:[%s4965_s21 + $0xac] sm:$0xf]  ;;  %s5627_s27 = scalar_lea.vmem %s5626_s11, %s4897_s1 }
 0x111   : > { %v3281_v28 = vor.u32 %v3858_v26, %v3280_v25  ;;  %v3282_v29 = vld [vmem:[%s4965_s21 + $0xb4] sm:$0xf0]  ;;  %v3288_v30 = vld [vmem:[%s4965_s21 + $0xb0] sm:$0xf]  ;;  %v3859_v31 = vld [vmem:[%s4965_s21 + $0xb8] sm:$0xf0]  ;;  %868 = vperm.xlu0 %4141, %v4917_v1   ;;  %878 = vperm.xlu1 %4142, %v4926_v3  }
 0x112   : > { %v3285_v32 = vor.u32 %v3857_v27, %v3282_v29  ;;  %v3289_v33 = vor.u32 %v3859_v31, %v3288_v30  ;;  %v3268_v34 = vld [vmem:[%s4965_s21 + $0x90] sm:$0xf]  ;;  %v3855_v35 = vld [vmem:[%s4965_s21 + $0x98] sm:$0xf0]  ;;  %v3854_v36 = vld [vmem:[%s4965_s21 + $0x94] sm:$0xf] }
 0x113   : > { %1058 = vmatpush.bf16.msra.mxu0 %v3281_v28  ;;  %v3270_v37 = vld [vmem:[%s4965_s21 + $0x9c] sm:$0xf0]  ;;  %v3276_v38 = vld [vmem:[%s4965_s21 + $0x98] sm:$0xf]  ;;  %v3856_v39 = vld [vmem:[%s4965_s21 + $0xa0] sm:$0xf0]  ;;  %v3269_v40 = vor.u32 %v3855_v35, %v3268_v34 }
 0x114   : > { %1077 = vmatpush.bf16.msra.mxu1 %v3285_v32  ;;  %1096 = vmatpush.bf16.msra.mxu2 %v3289_v33  ;;  %v3273_v41 = vor.u32 %v3854_v36, %v3270_v37  ;;  %v3256_v42 = vld [vmem:[%s4965_s21 + $0x78] sm:$0xf]  ;;  %v3277_v43 = vor.u32 %v3856_v39, %v3276_v38  ;;  %v3852_v44 = vld [vmem:[%s4965_s21 + $0x80] sm:$0xf0]  ;;  %v3851_v45 = vld [vmem:[%s4965_s21 + $0x7c] sm:$0xf] }
 0x115   : > { %v3258_v46 = vld [vmem:[%s4965_s21 + $0x84] sm:$0xf0]  ;;  %v3264_v47 = vld [vmem:[%s4965_s21 + $0x80] sm:$0xf]  ;;  %v3853_v48 = vld [vmem:[%s4965_s21 + $0x88] sm:$0xf0]  ;;  %v3257_v49 = vor.u32 %v3852_v44, %v3256_v42 }
 0x116   : > { %v3261_v50 = vor.u32 %v3851_v45, %v3258_v46  ;;  %v3244_v51 = vld [vmem:[%s4965_s21 + $0x60] sm:$0xf]  ;;  %v3265_v52 = vor.u32 %v3853_v48, %v3264_v47  ;;  %v3849_v53 = vld [vmem:[%s4965_s21 + $0x68] sm:$0xf0]  ;;  %v3848_v54 = vld [vmem:[%s4965_s21 + $0x64] sm:$0xf] }
 0x117   : > { %1059 = vmatpush.bf16.msra.mxu0 %v3269_v40  ;;  %v3246_v55 = vld [vmem:[%s4965_s21 + $0x6c] sm:$0xf0]  ;;  %v3252_v56 = vld [vmem:[%s4965_s21 + $0x68] sm:$0xf]  ;;  %v3850_v57 = vld [vmem:[%s4965_s21 + $0x70] sm:$0xf0]  ;;  %v3245_v58 = vor.u32 %v3849_v53, %v3244_v51 }
 0x118   : > { %1078 = vmatpush.bf16.msra.mxu1 %v3273_v41  ;;  %1097 = vmatpush.bf16.msra.mxu2 %v3277_v43  ;;  %v3249_v59 = vor.u32 %v3848_v54, %v3246_v55  ;;  %v3232_v60 = vld [vmem:[%s4965_s21 + $0x48] sm:$0xf]  ;;  %v3253_v61 = vor.u32 %v3850_v57, %v3252_v56  ;;  %v3846_v62 = vld [vmem:[%s4965_s21 + $0x50] sm:$0xf0]  ;;  %v3845_v63 = vld [vmem:[%s4965_s21 + $0x4c] sm:$0xf] }
 0x119   : > { %v3234_v0 = vld [vmem:[%s4965_s21 + $0x54] sm:$0xf0]  ;;  %v3240_v1 = vld [vmem:[%s4965_s21 + $0x50] sm:$0xf]  ;;  %v3847_v2 = vld [vmem:[%s4965_s21 + $0x58] sm:$0xf0]  ;;  %v3233_v3 = vor.u32 %v3846_v62, %v3232_v60 }
 0x11a   : > { %v3237_v4 = vor.u32 %v3845_v63, %v3234_v0  ;;  %v3241_v5 = vor.u32 %v3847_v2, %v3240_v1  ;;  %v3220_v6 = vld [vmem:[%s4965_s21 + $0x30] sm:$0xf]  ;;  %v3843_v7 = vld [vmem:[%s4965_s21 + $0x38] sm:$0xf0]  ;;  %v3842_v8 = vld [vmem:[%s4965_s21 + $0x34] sm:$0xf] }
 0x11b   : > { %1060 = vmatpush.bf16.msra.mxu0 %v3257_v49  ;;  %v3221_v9 = vor.u32 %v3843_v7, %v3220_v6  ;;  %v3222_v10 = vld [vmem:[%s4965_s21 + $0x3c] sm:$0xf0]  ;;  %v3228_v11 = vld [vmem:[%s4965_s21 + $0x38] sm:$0xf]  ;;  %v3844_v12 = vld [vmem:[%s4965_s21 + $0x40] sm:$0xf0] }
 0x11c   : > { %1079 = vmatpush.bf16.msra.mxu1 %v3261_v50  ;;  %1098 = vmatpush.bf16.msra.mxu2 %v3265_v52  ;;  %v3225_v13 = vor.u32 %v3842_v8, %v3222_v10  ;;  %v3229_v14 = vor.u32 %v3844_v12, %v3228_v11  ;;  %v3208_v15 = vld [vmem:[%s4965_s21 + $0x18] sm:$0xf]  ;;  %v3840_v16 = vld [vmem:[%s4965_s21 + $0x20] sm:$0xf0]  ;;  %v3839_v17 = vld [vmem:[%s4965_s21 + $0x1c] sm:$0xf] }
 0x11d   : > { %v3209_v18 = vor.u32 %v3840_v16, %v3208_v15  ;;  %v3210_v19 = vld [vmem:[%s4965_s21 + $0x24] sm:$0xf0]  ;;  %v3216_v20 = vld [vmem:[%s4965_s21 + $0x20] sm:$0xf]  ;;  %v3841_v21 = vld [vmem:[%s4965_s21 + $0x28] sm:$0xf0] }
 0x11e   : > { %v3213_v22 = vor.u32 %v3839_v17, %v3210_v19  ;;  %v3217_v23 = vor.u32 %v3841_v21, %v3216_v20  ;;  %v3196_v24 = vld [vmem:[%s4965_s21] sm:$0xf]  ;;  %v3837_v25 = vld [vmem:[%s4965_s21 + $0x8] sm:$0xf0]  ;;  %v3836_v26 = vld [vmem:[%s4965_s21 + $0x4] sm:$0xf] }
 0x11f   : > { %1061 = vmatpush.bf16.msra.mxu0 %v3245_v58  ;;  %v3197_v27 = vor.u32 %v3837_v25, %v3196_v24  ;;  %v3198_v28 = vld [vmem:[%s4965_s21 + $0xc] sm:$0xf0]  ;;  %v3204_v29 = vld [vmem:[%s4965_s21 + $0x8] sm:$0xf]  ;;  %v3838_v30 = vld [vmem:[%s4965_s21 + $0x10] sm:$0xf0] }
 0x120   : > { %1080 = vmatpush.bf16.msra.mxu1 %v3249_v59  ;;  %1099 = vmatpush.bf16.msra.mxu2 %v3253_v61  ;;  %v3201_v31 = vor.u32 %v3836_v26, %v3198_v28  ;;  %v3205_v32 = vor.u32 %v3838_v30, %v3204_v29  ;;  %v857_v34 = vld [vmem:[%s4943_s22] sm:$0xff]  ;;  %v858_v35 = vld [vmem:[%s4943_s22 + $0x8] sm:$0xff]  ;;  %v859_v42 = vld [vmem:[%s4943_s22 + $0x10] sm:$0xff]  ;;  %s5132_s29 = scalar_lea.vmem [#allocation15], %s3871_s5  ;;  %p3827_p4 = scmp.ne.s32.totalorder %s5622_s26, 1 }
 0x121   : > { %v860_v43 = vld [vmem:[%s4943_s22 + $0x18] sm:$0xff] }
 0x122   : > { %v922_v47 = vld [vmem:[%s5623_s3] sm:$0x7] }
 0x123   : > { %1062 = vmatpush.bf16.msra.mxu0 %v3233_v3  ;;  %v924_v48 = vperm.slane %v922_v47, 0  ;;  %v925_v2 = vperm.slane %v922_v47, 1  ;;  %v926_v17 = vperm.slane %v922_v47, 2 }
 0x124   : > { %1081 = vmatpush.bf16.msra.mxu1 %v3237_v4  ;;  %1100 = vmatpush.bf16.msra.mxu2 %v3241_v5 }
 0x127   : > { %1063 = vmatpush.bf16.msra.mxu0 %v3221_v9 }
 0x128   : > { %1082 = vmatpush.bf16.msra.mxu1 %v3225_v13  ;;  %1101 = vmatpush.bf16.msra.mxu2 %v3229_v14 }
 0x12b   : > { %1064 = vmatpush.bf16.msra.mxu0 %v3209_v18 }
 0x12c   : > { %1083 = vmatpush.bf16.msra.mxu1 %v3213_v22  ;;  %1102 = vmatpush.bf16.msra.mxu2 %v3217_v23 }
 0x12f   : > { %1065 = vmatpush.bf16.msra.mxu0 %v3197_v27 }
 0x130   : > { %1084 = vmatpush.bf16.msra.mxu1 %v3201_v31  ;;  %1103 = vmatpush.bf16.msra.mxu2 %v3205_v32 }
 0x17b   : > { %v5017_v33 = vpop.permute.xlu0 %863  ;;  %v5029_v39 = vpop.permute.xlu1 %873 }
 0x17c   : > { %v5024_v37 = vmul.f32 %v5017_v33, %v857_v34  ;;  %v5038_v44 = vmul.f32 %v5029_v39, %v859_v42 }
 0x183   : > { %v5021_v36 = vpop.permute.xlu0 %868  ;;  %v5033_v41 = vpop.permute.xlu1 %878 }
 0x184   : > { %v5027_v38 = vmul.f32 %v5021_v36, %v858_v35  ;;  %v5041_v45 = vmul.f32 %v5033_v41, %v860_v43 }
 0x186   : > { %v885_v40 = vpack.c.bf16 %v5027_v38, %v5024_v37  ;;  %v886_v46 = vpack.c.bf16 %v5041_v45, %v5038_v44 }
 0x188   : > { %1066 = vmatmul.bf16.vlgmr.msra.gmra.mxu0 %v885_v40  ;;  %1085 = vmatmul.bf16.vlgmr.msra.gmra.mxu1 %v885_v40 }
 0x189   : > { %1104 = vmatmul.bf16.vlgmr.msra.gmra.mxu2 %v885_v40 }
 0x198   : > { %1071 = vmatmul.bf16.gmra.mxu0 %v886_v46  ;;  %1090 = vmatmul.bf16.gmra.mxu1 %v886_v46 }
 0x199   : > { %1109 = vmatmul.bf16.gmra.mxu2 %v886_v46 }
 0x205   : > { %v1067_v49 = vpop.f32.mrf.mxu0  ;;  %v1086_v50 = vpop.f32.mrf.mxu1 }
 0x206   : > { %v1068_v51 = vadd.f32 %v1067_v49, %v924_v48  ;;  %v1087_v13 = vadd.f32 %v1086_v50, %v925_v2 }
 0x208   : > { %v1115_v52 = vmul.f32 0.125, %v1068_v51  ;;  %v1123_v22 = vpack.c.bf16 %v1087_v13, %v1087_v13  ;;  %v1133_v13 = vld [vmem:[#allocation2 + $0x10] sm:$0xff] }
 0x20a   : > { %v1119_v57 = vpack.c.bf16 %v1115_v52, %v1115_v52  ;;  %v1149_v35 = vunpack.c.l.b16 %v1123_v22 }
 0x20c   : > { %v1105_v53 = vpop.f32.mrf.mxu2  ;;  %v1139_v60 = vunpack.c.l.b16 %v1119_v57 }
 0x20d   : > { %v1069_v54 = vpop.f32.mrf.mxu0  ;;  %v1088_v55 = vpop.f32.mrf.mxu1  ;;  %v1106_v40 = vadd.f32 %v1105_v53, %v926_v17 }
 0x20e   : > { %v1070_v56 = vadd.f32 %v1069_v54, %v924_v48  ;;  %v1089_v9 = vadd.f32 %v1088_v55, %v925_v2 }
 0x210   : > { %v1116_v58 = vmul.f32 0.125, %v1070_v56  ;;  %v1124_v18 = vpack.c.bf16 %v1089_v9, %v1089_v9 }
 0x212   : > { %v1120_v59 = vpack.c.bf16 %v1116_v58, %v1116_v58  ;;  %v1150_v29 = vunpack.c.l.b16 %v1124_v18 }
 0x214   : > { %v1140_v61 = vunpack.c.l.b16 %v1120_v59  ;;  %v1107_v62 = vpop.f32.mrf.mxu2  ;;  %v1153_v43 = vpack.c.b16 %v1150_v29, %v1149_v35 }
 0x215   : > { %v1072_v63 = vpop.f32.mrf.mxu0  ;;  %v1091_v0 = vpop.f32.mrf.mxu1  ;;  %v1108_v30 = vadd.f32 %v1107_v62, %v926_v17 }
 0x216   : > { %v1143_v1 = vpack.c.b16 %v1140_v61, %v1139_v60  ;;  %v1073_v3 = vadd.f32 %v1072_v63, %v924_v48  ;;  %v1092_v4 = vadd.f32 %v1091_v0, %v925_v2  ;;  %v1163_v51 = vsel %vm1155_vm5, %v1153_v43, 0  ;;  %v1131_v63 = vld [vmem:[#allocation2] sm:$0xff] }
 0x217   : > { %v1128_v46 = vpack.c.bf16 %v1108_v30, %v1108_v30 }
 0x218   : > { %1280 = vrot.lane.b32.xlu0 %v1143_v1, %s4570_s4  ;;  %v1117_v5 = vmul.f32 0.125, %v1073_v3  ;;  %v1125_v10 = vpack.c.bf16 %v1092_v4, %v1092_v4 }
 0x219   : > { %v1239_v50 = vunpack.c.l.b16 %v1128_v46 }
 0x21a   : > { %v1121_v14 = vpack.c.bf16 %v1117_v5, %v1117_v5  ;;  %v1151_v19 = vunpack.c.l.b16 %v1125_v10  ;;  %v1132_v5 = vld [vmem:[#allocation2 + $0x8] sm:$0xff]  ;;  %v1134_v10 = vld [vmem:[#allocation2 + $0x18] sm:$0xff] }
 0x21c   : > { %v1110_v6 = vpop.f32.mrf.mxu2  ;;  %v1141_v23 = vunpack.c.l.b16 %v1121_v14 }
 0x21d   : > { %v1074_v7 = vpop.f32.mrf.mxu0  ;;  %v1093_v8 = vpop.f32.mrf.mxu1  ;;  %v1111_v24 = vadd.f32 %v1110_v6, %v926_v17 }
 0x21e   : > { %v1075_v11 = vadd.f32 %v1074_v7, %v924_v48  ;;  %v1094_v12 = vadd.f32 %v1093_v8, %v925_v2  ;;  %v1127_v48 = vpack.c.bf16 %v1106_v40, %v1106_v40 }
 0x21f   : > { %v1129_v42 = vpack.c.bf16 %v1111_v24, %v1111_v24 }
 0x220   : > { %v1118_v15 = vmul.f32 0.125, %v1075_v11  ;;  %v1126_v16 = vpack.c.bf16 %v1094_v12, %v1094_v12  ;;  %v1238_v54 = vunpack.c.l.b16 %v1127_v48 }
 0x221   : > { %v1240_v49 = vunpack.c.l.b16 %v1129_v42 }
 0x222   : > { %v1122_v20 = vpack.c.bf16 %v1118_v15, %v1118_v15  ;;  %v1152_v21 = vunpack.c.l.b16 %v1126_v16  ;;  %v5053_v55 = vpack.c.b16 %v1239_v50, %v1238_v54 }
 0x224   : > { %v1142_v25 = vunpack.c.l.b16 %v1122_v20  ;;  %v1112_v26 = vpop.f32.mrf.mxu2  ;;  %v1154_v27 = vpack.c.b16 %v1152_v21, %v1151_v19 }
 0x225   : > { %v1113_v28 = vadd.f32 %v1112_v26, %v926_v17 }
 0x226   : > { %1286 = vrot.lane.b32.xlu2 %v1154_v27, %s4570_s4  ;;  %v1166_v31 = vsel %vm1155_vm5, %v1154_v27, 0  ;;  %v1144_v32 = vpack.c.b16 %v1142_v25, %v1141_v23 }
 0x227   : > { %v1130_v34 = vpack.c.bf16 %v1113_v28, %v1113_v28  ;;  %1174 = vmatpush.bf16.xpose.msra.mxu3 %v1166_v31 }
 0x228   : > { %1282 = vrot.lane.b32.xlu1 %v1144_v32, %s4570_s4 }
 0x229   : > { %v1241_v47 = vunpack.c.l.b16 %v1130_v34 }
 0x22b   : > { %v1243_v52 = vpack.c.b16 %v1241_v47, %v1240_v49 }
 0x22e   : > { %1284 = vrot.lane.b32.xlu2 %v1153_v43, %s4570_s4 }
 0x22f   : > { %1175 = vmatpush.bf16.xpose.msra.mxu3 %v1163_v51 }
 0x236   : > { %3290 = vmatmul.msk.bf16.vlgmr.msra.gmra.mxu3 %vm1155_vm5, %v1143_v1 }
 0x237   : > { %1258 = vmatpush.bf16.msrb.mxu3 %v1243_v52 }
 0x23b   : > { %1259 = vmatpush.bf16.msrb.mxu3 %v5053_v55 }
 0x246   : > { %3291 = vmatmul.msk.bf16.gmra.mxu3 %vm1155_vm5, %v1144_v32 }
 0x280   : > { %v1287_v53 = vpop.permute.xlu2 %1286 }
 0x281   : > { %v1298_v56 = vsel %vm1155_vm5, %v1287_v53, 0 }
 0x282   : > { %1306 = vmatpush.bf16.xpose.msrb.mxu0 %v1298_v56 }
 0x288   : > { %v1285_v57 = vpop.permute.xlu2 %1284 }
 0x289   : > { %v1295_v58 = vsel %vm1155_vm5, %v1285_v57, 0 }
 0x28a   : > { %1307 = vmatpush.bf16.xpose.msrb.mxu0 %v1295_v58  ;;  %v1281_v59 = vpop.permute.xlu0 %1280 }
 0x291   : > { %3294 = vmatmul.msk.bf16.vlgmr.msrb.gmra.mxu0 %vm1155_vm5, %v1281_v59 }
 0x29a   : > { %v1283_v60 = vpop.permute.xlu1 %1282 }
 0x2a1   : > { %3295 = vmatmul.msk.bf16.gmra.mxu0 %vm1155_vm5, %v1283_v60 }
 0x2b9   : > { %v1177_v61 = vpop.f32.mrf.mxu3 }
 0x2ba   : > { %v1178_v4 = vadd.f32 %v1177_v61, %v1131_v63 }
 0x2bc   : > { %v1188_v9 = vsel %vm1187_vm6, %v1178_v4, -inf }
 0x2c1   : > { %v1179_v62 = vpop.f32.mrf.mxu3 }
 0x2c2   : > { %v5065_v12 = vadd.f32 %v1179_v62, %v1132_v5 }
 0x2c4   : > { %v1191_v18 = vsel %vm1187_vm6, %v5065_v12, -inf }
 0x2c9   : > { %v1182_v2 = vpop.f32.mrf.mxu3 }
 0x2ca   : > { %v1183_v20 = vadd.f32 %v1182_v2, %v1133_v13 }
 0x2cc   : > { %v1194_v23 = vsel %vm1187_vm6, %v1183_v20, -inf }
 0x2d1   : > { %v1184_v11 = vpop.f32.mrf.mxu3 }
 0x2d2   : > { %v1185_v14 = vadd.f32 %v1184_v11, %v1134_v10 }
 0x2d4   : > { %v1197_v19 = vsel %vm1187_vm6, %v1185_v14, -inf }
 0x30e   : > { %v1309_v0 = vpop.f32.mrf.mxu0 }
 0x30f   : > { %v1310_v1 = vadd.f32 %v1309_v0, %v1131_v63 }
 0x311   : > { %v1319_v3 = vsel %vm1187_vm6, %v1310_v1, -inf }
 0x312   : > { %1320 = vmax.xlane.f32.xlu2 %v1319_v3 }
 0x316   : > { %v1311_v6 = vpop.f32.mrf.mxu0 }
 0x317   : > { %v1312_v7 = vadd.f32 %v1311_v6, %v1132_v5 }
 0x319   : > { %v1322_v8 = vsel %vm1187_vm6, %v1312_v7, -inf }
 0x31a   : > { %1323 = vmax.xlane.f32.xlu0 %v1322_v8  ;;  %1189 = vmax.xlane.f32.xlu2 %v1188_v9 }
 0x31e   : > { %v1314_v15 = vpop.f32.mrf.mxu0 }
 0x31f   : > { %v1315_v16 = vadd.f32 %v1314_v15, %v1133_v13 }
 0x321   : > { %v1325_v17 = vsel %vm1187_vm6, %v1315_v16, -inf }
 0x322   : > { %1326 = vmax.xlane.f32.xlu1 %v1325_v17  ;;  %1192 = vmax.xlane.f32.xlu0 %v1191_v18 }
 0x323   : > { %1198 = vmax.xlane.f32.xlu2 %v1197_v19 }
 0x326   : > { %v1316_v21 = vpop.f32.mrf.mxu0 }
 0x327   : > { %v1317_v22 = vadd.f32 %v1316_v21, %v1134_v10 }
 0x329   : > { %v1328_v24 = vsel %vm1187_vm6, %v1317_v22, -inf }
 0x32a   : > { %1195 = vmax.xlane.f32.xlu1 %v1194_v23 }
 0x32b   : > { %1329 = vmax.xlane.f32.xlu2 %v1328_v24 }
 0x343   : > { %1367 = vrot.lane.b32.xlu2 %v1243_v52, %s4570_s4 }
 0x385   : > { %v1321_v25 = vpop.xlane.xlu2 %1320 }
 0x386   : > { %v1331_v26 = vsub.f32 %v1310_v1, %v1321_v25 }
 0x388   : > { %v1335_v27 = vmul.f32 1.442695, %v1331_v26 }
 0x38a   : > { %4149 = vpow2.f32 %v1335_v27 }
 0x38d   : > { %v1324_v28 = vpop.xlane.xlu0 %1323  ;;  %v1190_v29 = vpop.xlane.xlu2 %1189 }
 0x38e   : > { %v1332_v30 = vsub.f32 %v1312_v7, %v1324_v28  ;;  %v1200_v53 = vsub.f32 %v1178_v4, %v1190_v29 }
 0x390   : > { %v4150_v31 = vpop.eup %4149  ;;  %v1337_v32 = vmul.f32 1.442695, %v1332_v30  ;;  %v1204_v58 = vmul.f32 1.442695, %v1200_v53 }
 0x391   : > { %v1343_v34 = vsel %vm1187_vm6, %v4150_v31, 0.0 }
 0x392   : > { %4151 = vpow2.f32 %v1337_v32  ;;  %1344 = vadd.xlane.f32.xlu0 %v1343_v34 }
 0x395   : > { %v1327_v35 = vpop.xlane.xlu1 %1326  ;;  %v1193_v5 = vpop.xlane.xlu0 %1192 }
 0x396   : > { %v1333_v40 = vsub.f32 %v1315_v16, %v1327_v35  ;;  %v1199_v42 = vpop.xlane.xlu2 %1198  ;;  %v1201_v6 = vsub.f32 %v5065_v12, %v1193_v5  ;;  %v3864_v5 = vld [vmem:[%s1427_s10 + $0x8] sm:$0xff] }
 0x397   : > { %v1203_v62 = vsub.f32 %v1185_v14, %v1199_v42 }
 0x398   : > { %v4152_v43 = vpop.eup %4151  ;;  %v1339_v46 = vmul.f32 1.442695, %v1333_v40  ;;  %v1206_v7 = vmul.f32 1.442695, %v1201_v6  ;;  %v3863_v6 = vld [vmem:[%s1427_s10] sm:$0xff] }
 0x399   : > { %v1346_v47 = vsel %vm1187_vm6, %v4152_v43, 0.0  ;;  %v1210_v1 = vmul.f32 1.442695, %v1203_v62 }
 0x39a   : > { %4153 = vpow2.f32 %v1339_v46  ;;  %1347 = vadd.xlane.f32.xlu1 %v1346_v47 }
 0x39d   : > { %v1196_v48 = vpop.xlane.xlu1 %1195 }
 0x39e   : > { %v1202_v49 = vsub.f32 %v1183_v20, %v1196_v48  ;;  %v1330_v50 = vpop.xlane.xlu2 %1329 }
 0x39f   : > { %v1334_v51 = vsub.f32 %v1317_v22, %v1330_v50 }
 0x3a0   : > { %v4154_v52 = vpop.eup %4153  ;;  %v1208_v54 = vmul.f32 1.442695, %v1202_v49 }
 0x3a1   : > { %v1341_v56 = vmul.f32 1.442695, %v1334_v51  ;;  %v1349_v57 = vsel %vm1187_vm6, %v4154_v52, 0.0 }
 0x3a2   : > { %4155 = vpow2.f32 %v1208_v54  ;;  %1350 = vadd.xlane.f32.xlu1 %v1349_v57  ;;  %v3869_v57 = vld [vmem:[%s1427_s10 + $0x30] sm:$0xff] }
 0x3a3   : > { %4157 = vpow2.f32 %v1341_v56  ;;  %v3870_v56 = vld [vmem:[%s1427_s10 + $0x38] sm:$0xff] }
 0x3a4   : > { %4159 = vpow2.f32 %v1204_v58  ;;  %1508 = vmatpush.bf16.msrb.mxu2 %v3870_v56  ;;  %v3886_v56 = vld [vmem:[%s5132_s29 + $0x74] sm:$0xf] }
 0x3a5   : > { %4161 = vpow2.f32 %v1210_v1 }
 0x3a6   : > { %v1368_v59 = vpop.permute.xlu2 %1367  ;;  %1365 = vrot.lane.b32.xlu0 %v5053_v55, %s4570_s4  ;;  %4163 = vpow2.f32 %v1206_v7 }
 0x3a7   : > { %1383 = vmatpush.bf16.msrb.mxu1 %v1368_v59 }
 0x3a8   : > { %v4156_v60 = vpop.eup %4155  ;;  %1509 = vmatpush.bf16.msrb.mxu2 %v3869_v57 }
 0x3a9   : > { %v4158_v61 = vpop.eup %4157  ;;  %v1218_v63 = vsel %vm1187_vm6, %v4156_v60, 0.0 }
 0x3aa   : > { %1219 = vadd.xlane.f32.xlu2 %v1218_v63  ;;  %v1352_v0 = vsel %vm1187_vm6, %v4158_v61, 0.0  ;;  %v4160_v2 = vpop.eup %4159 }
 0x3ab   : > { %1353 = vadd.xlane.f32.xlu1 %v1352_v0  ;;  %v1212_v3 = vsel %vm1187_vm6, %v4160_v2, 0.0  ;;  %v4162_v4 = vpop.eup %4161 }
 0x3ac   : > { %v1221_v55 = vsel %vm1187_vm6, %v4162_v4, 0.0  ;;  %v4164_v8 = vpop.eup %4163 }
 0x3ad   : > { %v1215_v9 = vsel %vm1187_vm6, %v4164_v8, 0.0 }
 0x3b3   : > { %1213 = vadd.xlane.f32.xlu1 %v1212_v3 }
 0x3bb   : > { %1222 = vadd.xlane.f32.xlu1 %v1221_v55  ;;  %v3865_v55 = vld [vmem:[%s1427_s10 + $0x10] sm:$0xff] }
 0x3d0   : > { %1216 = vadd.xlane.f32.xlu0 %v1215_v9 }
 0x405   : > { %v1345_v10 = vpop.xlane.xlu0 %1344 }
 0x40d   : > { %v1348_v11 = vpop.xlane.xlu1 %1347 }
 0x40e   : > { %4165 = vrcp.f32 %v1348_v11 }
 0x40f   : > { %4167 = vrcp.f32 %v1345_v10 }
 0x414   : > { %v4166_v13 = vpop.eup %4165 }
 0x415   : > { %v4168_v14 = vpop.eup %4167  ;;  %v1351_v15 = vpop.xlane.xlu1 %1350  ;;  %v1360_v16 = vmul.f32 %v4166_v13, %v4152_v43 }
 0x416   : > { %v1359_v17 = vmul.f32 %v4168_v14, %v4150_v31  ;;  %4169 = vrcp.f32 %v1351_v15  ;;  %v4143_v14 = vld [vmem:[%s5625_s7] ss:$0 sm:$0xff] }
 0x418   : > { %v1366_v18 = vpop.permute.xlu0 %1365  ;;  %v1363_v19 = vpack.c.bf16 %v1360_v16, %v1359_v17 }
 0x419   : > { %1384 = vmatpush.bf16.msrb.mxu1 %v1366_v18 }
 0x41c   : > { %3296 = vmatmul.msk.bf16.vlgmr.msrb.gmra.mxu1 %vm1187_vm6, %v1363_v19  ;;  %v4170_v20 = vpop.eup %4169 }
 0x41d   : > { %v1361_v23 = vmul.f32 %v4170_v20, %v4154_v52  ;;  %v1220_v34 = vpop.xlane.xlu2 %1219 }
 0x41e   : > { %v1354_v12 = vpop.xlane.xlu1 %1353 }
 0x41f   : > { %4171 = vrcp.f32 %v1354_v12 }
 0x425   : > { %v4172_v21 = vpop.eup %4171 }
 0x426   : > { %v1362_v22 = vmul.f32 %v4172_v21, %v4158_v61  ;;  %v1214_v25 = vpop.xlane.xlu1 %1213  ;;  %v3867_v61 = vld [vmem:[%s1427_s10 + $0x20] sm:$0xff] }
 0x427   : > { %4173 = vrcp.f32 %v1214_v25 }
 0x428   : > { %v1364_v24 = vpack.c.bf16 %v1362_v22, %v1361_v23 }
 0x42c   : > { %3297 = vmatmul.msk.bf16.gmra.mxu1 %vm1187_vm6, %v1364_v24 }
 0x42d   : > { %v4174_v27 = vpop.eup %4173 }
 0x42e   : > { %v1228_v29 = vmul.f32 %v4174_v27, %v4160_v2  ;;  %v1223_v31 = vpop.xlane.xlu1 %1222 }
 0x443   : > { %v1217_v26 = vpop.xlane.xlu0 %1216 }
 0x444   : > { %4175 = vrcp.f32 %v1217_v26  ;;  %v4571_v26 = vmov 128.0  }
 0x445   : > { %4177 = vrcp.f32 %v1223_v31 }
 0x446   : > { %4179 = vrcp.f32 %v1220_v34 }
 0x447   : > { %4181 = vrcp.f32 %v4571_v26  ;;  %v3443_v26 = vld [vmem:[%s5132_s29 + $0x28] sm:$0xf0] }
 0x44a   : > { %v4176_v28 = vpop.eup %4175 }
 0x44b   : > { %v1229_v30 = vmul.f32 %v4176_v28, %v4164_v8  ;;  %v4178_v35 = vpop.eup %4177 }
 0x44c   : > { %v4180_v40 = vpop.eup %4179  ;;  %v1231_v42 = vmul.f32 %v4178_v35, %v4162_v4  ;;  %v3866_v4 = vld [vmem:[%s1427_s10 + $0x18] sm:$0xff] }
 0x44d   : > { %v1232_v32 = vpack.c.bf16 %v1229_v30, %v1228_v29  ;;  %v1230_v43 = vmul.f32 %v4180_v40, %v4156_v60  ;;  %v3868_v60 = vld [vmem:[%s1427_s10 + $0x28] sm:$0xff]  ;;  %v4182_v27 = vpop.eup %4181 }
 0x44e   : > { %1510 = vmatpush.bf16.msrb.mxu2 %v3868_v60  ;;  %vm1546_vm9 = vweird.f32 %v4182_v27  ;;  %v3473_v60 = vld [vmem:[%s5132_s29 + $0x60] sm:$0xf] }
 0x44f   : > { %3292 = vmatmul.msk.bf16.vlgmr.msrb.gmra.mxu3 %vm1187_vm6, %v1232_v32  ;;  %v1233_v46 = vpack.c.bf16 %v1231_v42, %v1230_v43 }
 0x452   : > { %1511 = vmatpush.bf16.msrb.mxu2 %v3867_v61  ;;  %v3885_v61 = vld [vmem:[%s5132_s29 + $0x64] sm:$0xf0] }
 0x456   : > { %1512 = vmatpush.bf16.msrb.mxu2 %v3866_v4  ;;  %v3882_v4 = vld [vmem:[%s5132_s29 + $0x54] sm:$0xf] }
 0x45a   : > { %1513 = vmatpush.bf16.msrb.mxu2 %v3865_v55 }
 0x45e   : > { %1514 = vmatpush.bf16.msrb.mxu2 %v3864_v5  ;;  %v3467_v5 = vld [vmem:[%s5132_s29 + $0x58] sm:$0xf0] }
 0x45f   : > { %3293 = vmatmul.msk.bf16.gmra.mxu3 %vm1187_vm6, %v1233_v46  ;;  %vm1691_vm6 = vsmask.f32 7424 }
 0x462   : > { %1515 = vmatpush.bf16.msrb.mxu2 %v3863_v6  ;;  %v3470_v6 = vor.u32 %v3882_v4, %v3467_v5  ;;  %v3898_v5 = vld [vmem:[%s5132_s29 + $0xd4] sm:$0xf] }
 0x499   : > { %v1386_v47 = vpop.f32.mrf.mxu1 }
 0x49a   : > { %v1396_v48 = vpack.c.bf16 %v1386_v47, %v1386_v47 }
 0x49c   : > { %1404 = vrot.lane.b32.xlu1 %v1396_v48, %s4570_s4 }
 0x4a1   : > { %v1388_v49 = vpop.f32.mrf.mxu1 }
 0x4a2   : > { %v1397_v50 = vpack.c.bf16 %v1388_v49, %v1388_v49 }
 0x4a4   : > { %1406 = vrot.lane.b32.xlu1 %v1397_v50, %s4570_s4 }
 0x4a9   : > { %v1391_v51 = vpop.f32.mrf.mxu1 }
 0x4aa   : > { %v1398_v52 = vpack.c.bf16 %v1391_v51, %v1391_v51 }
 0x4ac   : > { %1408 = vrot.lane.b32.xlu0 %v1398_v52, %s4570_s4 }
 0x4b1   : > { %v1393_v54 = vpop.f32.mrf.mxu1 }
 0x4b2   : > { %v1399_v53 = vpack.c.bf16 %v1393_v54, %v1393_v54  ;;  %v3481_v54 = vld [vmem:[%s5132_s29 + $0x70] sm:$0xf] }
 0x4b4   : > { %1410 = vrot.lane.b32.xlu2 %v1399_v53, %s4570_s4  ;;  %v3887_v53 = vld [vmem:[%s5132_s29 + $0x74] sm:$0xf0] }
 0x4b5   : > { %v3482_v57 = vor.u32 %v3887_v53, %v3481_v54 }
 0x4b7   : > { %1912 = vmatpush.bf16.msra.mxu1 %v3482_v57  ;;  %v3900_v57 = vld [vmem:[%s5132_s29 + $0xe4] sm:$0xf] }
 0x4d2   : > { %v1261_v58 = vpop.f32.mrf.mxu3 }
 0x4d3   : > { %v1271_v59 = vpack.c.bf16 %v1261_v58, %v1261_v58  ;;  %v3483_v58 = vld [vmem:[%s5132_s29 + $0x78] sm:$0xf0] }
 0x4d5   : > { %1276 = vst.msk [vmem:[#allocation3] sm:$0xf] %vm1275_vm7, %v1271_v59  ;;  %v3486_v59 = vor.u32 %v3886_v56, %v3483_v58  ;;  %v3411_v58 = vld [vmem:[%s5132_s29 + $0xe8] sm:$0xf0] }
 0x4d7   : > { %1931 = vmatpush.bf16.msra.mxu2 %v3486_v59 }
 0x4da   : > { %v1263_v62 = vpop.f32.mrf.mxu3 }
 0x4db   : > { %v1272_v63 = vpack.c.bf16 %v1263_v62, %v1263_v62  ;;  %v3884_v62 = vld [vmem:[%s5132_s29 + $0x64] sm:$0xf] }
 0x4dd   : > { %1277 = vst.msk [vmem:[#allocation3 + $0x4] sm:$0xf] %vm1275_vm7, %v1272_v63  ;;  %v3474_v63 = vor.u32 %v3885_v61, %v3473_v60  ;;  %v3414_v60 = vor.u32 %v3900_v57, %v3411_v58  ;;  %v3425_v61 = vld [vmem:[%s5132_s29] sm:$0xf] }
 0x4df   : > { %1913 = vmatpush.bf16.msra.mxu1 %v3474_v63 }
 0x4e2   : > { %v1266_v0 = vpop.f32.mrf.mxu3 }
 0x4e3   : > { %v1273_v1 = vpack.c.bf16 %v1266_v0, %v1266_v0  ;;  %v3475_v0 = vld [vmem:[%s5132_s29 + $0x68] sm:$0xf0] }
 0x4e5   : > { %1278 = vst.msk [vmem:[#allocation3 + $0x8] sm:$0xf] %vm1275_vm7, %v1273_v1  ;;  %v3478_v1 = vor.u32 %v3884_v62, %v3475_v0  ;;  %v3873_v62 = vld [vmem:[%s5132_s29 + $0x4] sm:$0xf0] }
 0x4e6   : > { %v3426_v0 = vor.u32 %v3873_v62, %v3425_v61  ;;  %v3371_v61 = vld [vmem:[%s5132_s29 + $0x98] sm:$0xf0] }
 0x4e7   : > { %1932 = vmatpush.bf16.msra.mxu2 %v3478_v1  ;;  %v3872_v1 = vld [vmem:[%s5132_s29 + $0x4] sm:$0xf] }
 0x4ea   : > { %v1268_v2 = vpop.f32.mrf.mxu3 }
 0x4eb   : > { %v1274_v3 = vpack.c.bf16 %v1268_v2, %v1268_v2  ;;  %v3465_v2 = vld [vmem:[%s5132_s29 + $0x50] sm:$0xf]  ;;  %1933 = vmatpush.bf16.msra.mxu2 %v3470_v6  ;;  %v3403_v6 = vld [vmem:[%s5132_s29 + $0xd8] sm:$0xf0] }
 0x4ed   : > { %1279 = vst.msk [vmem:[#allocation3 + $0xc] sm:$0xf] %vm1275_vm7, %v1274_v3  ;;  %v3883_v3 = vld [vmem:[%s5132_s29 + $0x54] sm:$0xf0]  ;;  %vm1973_vm7 = vcmask 1046528  }
 0x4ee   : > { %v3466_v55 = vor.u32 %v3883_v3, %v3465_v2  ;;  %v3427_v2 = vld [vmem:[%s5132_s29 + $0x8] sm:$0xf0]  ;;  %v3401_v3 = vld [vmem:[%s5132_s29 + $0xd0] sm:$0xf] }
 0x4ef   : > { %v3430_v4 = vor.u32 %v3872_v1, %v3427_v2 }
 0x4f0   : > { %1914 = vmatpush.bf16.msra.mxu1 %v3466_v55  ;;  %v3899_v55 = vld [vmem:[%s5132_s29 + $0xd4] sm:$0xf0] }
 0x50e   : > { %v1405_v7 = vpop.permute.xlu1 %1404  ;;  %v1411_v8 = vpop.permute.xlu2 %1410 }
 0x50f   : > { %1417 = vst.msk [vmem:[#allocation3] sm:$0xf] %vm1416_vm8, %v1405_v7  ;;  %v3457_v7 = vld [vmem:[%s5132_s29 + $0x40] sm:$0xf] }
 0x510   : > { %1420 = vst.msk [vmem:[#allocation3 + $0xc] sm:$0xf] %vm1416_vm8, %v1411_v8  ;;  %v3881_v8 = vld [vmem:[%s5132_s29 + $0x44] sm:$0xf0] }
 0x516   : > { %v1407_v9 = vpop.permute.xlu1 %1406 }
 0x517   : > { %1418 = vst.msk [vmem:[#allocation3 + $0x4] sm:$0xf] %vm1416_vm8, %v1407_v9  ;;  %v3880_v9 = vld [vmem:[%s5132_s29 + $0x44] sm:$0xf] }
 0x51e   : > { %v1409_v10 = vpop.permute.xlu0 %1408  ;;  %v3860_v11 = vld [vmem:[#allocation3] sm:$0xff] }
 0x51f   : > { %1419 = vst.msk [vmem:[#allocation3 + $0x8] sm:$0xf] %vm1416_vm8, %v1409_v10  ;;  %1516 = vmatmul.bf16.vlgmr.msrb.gmra.mxu2 %v3860_v11  ;;  %v3458_v10 = vor.u32 %v3881_v8, %v3457_v7  ;;  %v3459_v11 = vld [vmem:[%s5132_s29 + $0x48] sm:$0xf0]  ;;  %vm2144_vm8 = vcmask 1040384  }
 0x521   : > { %1915 = vmatpush.bf16.msra.mxu1 %v3458_v10  ;;  %v3406_v10 = vor.u32 %v3898_v5, %v3403_v6  ;;  %v3361_v6 = vld [vmem:[%s5132_s29 + $0x80] sm:$0xf] }
 0x526   : > { %v3861_v13 = vld [vmem:[#allocation3 + $0x8] sm:$0xff] }
 0x52f   : > { %1521 = vmatmul.bf16.gmra.mxu2 %v3861_v13  ;;  %v3462_v13 = vor.u32 %v3880_v9, %v3459_v11  ;;  %v3402_v9 = vor.u32 %v3899_v55, %v3401_v3 }
 0x531   : > { %1934 = vmatpush.bf16.msra.mxu2 %v3462_v13 }
 0x5a2   : > { %v1517_v15 = vpop.f32.mrf.mxu2 }
 0x5a3   : > { %v1518_v16 = vadd.f32 %v4143_v14, %v1517_v15 }
 0x5a5   : > { %v1527_v17 = vadd.f32 %v1518_v16, %v5024_v37  ;;  %v1542_v37 = vmul.f32 128.0, %v4182_v27  ;;  %v3449_v16 = vld [vmem:[%s5132_s29 + $0x30] sm:$0xf] }
 0x5a7   : > { %1533 = vadd.xlane.f32.xlu1 %v1527_v17  ;;  %v1543_v28 = vsub.f32 1.0, %v1542_v37  ;;  %v3903_v37 = vld [vmem:[%s5132_s29 + $0xf4] sm:$0xf0] }
 0x5a9   : > { %v1544_v29 = vmul.f32 %v4182_v27, %v1543_v28 }
 0x5aa   : > { %v1519_v18 = vpop.f32.mrf.mxu2 }
 0x5ab   : > { %v1520_v19 = vadd.f32 %v4143_v14, %v1519_v18  ;;  %v1545_v30 = vadd.f32 %v4182_v27, %v1544_v29  ;;  %v3878_v18 = vld [vmem:[%s5132_s29 + $0x34] sm:$0xf] }
 0x5ad   : > { %v1528_v12 = vadd.f32 %v1520_v19, %v5027_v38  ;;  %v5107_v38 = vsel %vm1546_vm9, %v4182_v27, %v1545_v30  ;;  %v3417_v27 = vld [vmem:[%s5132_s29 + $0xf0] sm:$0xf]  ;;  %v3902_v30 = vld [vmem:[%s5132_s29 + $0xf4] sm:$0xf] }
 0x5ae   : > { %v3418_v29 = vor.u32 %v3903_v37, %v3417_v27  ;;  %v3385_v27 = vld [vmem:[%s5132_s29 + $0xb0] sm:$0xf]  ;;  %v3895_v37 = vld [vmem:[%s5132_s29 + $0xb4] sm:$0xf0] }
 0x5af   : > { %1535 = vadd.xlane.f32.xlu0 %v1528_v12 }
 0x5b0   : > { %1794 = vmatpush.bf16.msra.mxu3 %v3418_v29 }
 0x5b2   : > { %v1522_v20 = vpop.f32.mrf.mxu2 }
 0x5b3   : > { %v1523_v21 = vadd.f32 %v4143_v14, %v1522_v20 }
 0x5b5   : > { %v1529_v22 = vadd.f32 %v1523_v21, %v5038_v44 }
 0x5b7   : > { %1537 = vadd.xlane.f32.xlu2 %v1529_v22 }
 0x5ba   : > { %v1524_v23 = vpop.f32.mrf.mxu2 }
 0x5bb   : > { %v1525_v24 = vadd.f32 %v4143_v14, %v1524_v23  ;;  %v3877_v23 = vld [vmem:[%s5132_s29 + $0x24] sm:$0xf0] }
 0x5bd   : > { %v1530_v25 = vadd.f32 %v1525_v24, %v5041_v45  ;;  %v3876_v24 = vld [vmem:[%s5132_s29 + $0x24] sm:$0xf] }
 0x5be   : > { %v3446_v28 = vor.u32 %v3876_v24, %v3443_v26  ;;  %v5201_v24 = vld [vmem:[%s5627_s27] ss:$0 sm:$0xff] }
 0x5bf   : > { %1539 = vadd.xlane.f32.xlu1 %v1530_v25 }
 0x61a   : > { %v1534_v31 = vpop.xlane.xlu1 %1533 }
 0x61b   : > { %v1548_v32 = vmul.f32 %v5107_v38, %v1534_v31  ;;  %v3419_v31 = vld [vmem:[%s5132_s29 + $0xf8] sm:$0xf0] }
 0x61d   : > { %v5110_v44 = vsub.f32 %v1527_v17, %v1548_v32  ;;  %v3879_v17 = vld [vmem:[%s5132_s29 + $0x34] sm:$0xf0] }
 0x61e   : > { %v3450_v19 = vor.u32 %v3879_v17, %v3449_v16 }
 0x61f   : > { %v1556_v34 = vmul.f32 %v5110_v44, %v5110_v44 }
 0x620   : > { %1916 = vmatpush.bf16.msra.mxu1 %v3450_v19  ;;  %v3896_v19 = vld [vmem:[%s5132_s29 + $0xc4] sm:$0xf] }
 0x621   : > { %1560 = vadd.xlane.f32.xlu1 %v1556_v34  ;;  %v3422_v34 = vor.u32 %v3902_v30, %v3419_v31  ;;  %v3386_v30 = vor.u32 %v3895_v37, %v3385_v27  ;;  %v3387_v31 = vld [vmem:[%s5132_s29 + $0xb8] sm:$0xf0] }
 0x622   : > { %v1536_v45 = vpop.xlane.xlu0 %1535 }
 0x623   : > { %v1549_v35 = vmul.f32 %v5107_v38, %v1536_v45  ;;  %1813 = vmatpush.bf16.msra.mxu0 %v3422_v34  ;;  %v3893_v34 = vld [vmem:[%s5132_s29 + $0xa4] sm:$0xf0] }
 0x625   : > { %v5115_v40 = vsub.f32 %v1528_v12, %v1549_v35  ;;  %v3451_v12 = vld [vmem:[%s5132_s29 + $0x38] sm:$0xf0]  ;;  %v3433_v35 = vld [vmem:[%s5132_s29 + $0x10] sm:$0xf] }
 0x626   : > { %v3454_v21 = vor.u32 %v3878_v18, %v3451_v12  ;;  %v3395_v12 = vld [vmem:[%s5132_s29 + $0xc8] sm:$0xf0] }
 0x627   : > { %v1557_v42 = vmul.f32 %v5115_v40, %v5115_v40  ;;  %1814 = vmatpush.bf16.msra.mxu0 %v3414_v60  ;;  %v3890_v60 = vld [vmem:[%s5132_s29 + $0x94] sm:$0xf] }
 0x628   : > { %1935 = vmatpush.bf16.msra.mxu2 %v3454_v21 }
 0x629   : > { %1562 = vadd.xlane.f32.xlu1 %v1557_v42  ;;  %v3875_v42 = vld [vmem:[%s5132_s29 + $0x14] sm:$0xf0] }
 0x62a   : > { %v1538_v43 = vpop.xlane.xlu2 %1537 }
 0x62b   : > { %v1550_v46 = vmul.f32 %v5107_v38, %v1538_v43  ;;  %v3874_v43 = vld [vmem:[%s5132_s29 + $0x14] sm:$0xf]  ;;  %1815 = vmatpush.bf16.msra.mxu0 %v3406_v10 }
 0x62c   : > { %1936 = vmatpush.bf16.msra.mxu2 %v3446_v28  ;;  %v3894_v28 = vld [vmem:[%s5132_s29 + $0xb4] sm:$0xf] }
 0x62d   : > { %v5120_v47 = vsub.f32 %v1529_v22, %v1550_v46  ;;  %v3441_v22 = vld [vmem:[%s5132_s29 + $0x20] sm:$0xf]  ;;  %v3434_v46 = vor.u32 %v3875_v42, %v3433_v35  ;;  %v3390_v42 = vor.u32 %v3894_v28, %v3387_v31 }
 0x62e   : > { %v3554_v28 = vld [vmem:[%s5132_s29 + $0x160] sm:$0xf] }
 0x62f   : > { %v1558_v48 = vmul.f32 %v5120_v47, %v5120_v47 }
 0x631   : > { %1564 = vadd.xlane.f32.xlu0 %v1558_v48  ;;  %v3435_v48 = vld [vmem:[%s5132_s29 + $0x18] sm:$0xf0] }
 0x632   : > { %v1540_v49 = vpop.xlane.xlu1 %1539  ;;  %v3438_v53 = vor.u32 %v3874_v43, %v3435_v48  ;;  %v3892_v43 = vld [vmem:[%s5132_s29 + $0xa4] sm:$0xf] }
 0x633   : > { %v1551_v50 = vmul.f32 %v5107_v38, %v1540_v49  ;;  %v3409_v49 = vld [vmem:[%s5132_s29 + $0xe0] sm:$0xf] }
 0x634   : > { %1937 = vmatpush.bf16.msra.mxu2 %v3438_v53  ;;  %v3369_v53 = vld [vmem:[%s5132_s29 + $0x90] sm:$0xf] }
 0x635   : > { %v5125_v51 = vsub.f32 %v1530_v25, %v1551_v50  ;;  %v3442_v25 = vor.u32 %v3877_v23, %v3441_v22  ;;  %v3901_v50 = vld [vmem:[%s5132_s29 + $0xe4] sm:$0xf0]  ;;  %v3398_v23 = vor.u32 %v3896_v19, %v3395_v12 }
 0x636   : > { %v3410_v56 = vor.u32 %v3901_v50, %v3409_v49 }
 0x637   : > { %v1559_v52 = vmul.f32 %v5125_v51, %v5125_v51  ;;  %1917 = vmatpush.bf16.msra.mxu1 %v3442_v25  ;;  %v5204_v25 = vld [vmem:[%s4878_s13] ss:$0 sm:$0xff]  ;;  %1816 = vmatpush.bf16.msra.mxu0 %v3398_v23  ;;  %s5307_s13 = scalar_lea.vmem [#allocation16], %s3871_s5 }
 0x638   : > { %1795 = vmatpush.bf16.msra.mxu3 %v3410_v56  ;;  %1938 = vmatpush.bf16.msra.mxu2 %v3430_v4  ;;  %v3891_v56 = vld [vmem:[%s5132_s29 + $0x94] sm:$0xf0]  ;;  %v3374_v4 = vor.u32 %v3890_v60, %v3371_v61  ;;  %v3538_v60 = vld [vmem:[%s5132_s29 + $0x140] sm:$0xf]  ;;  %v3913_v61 = vld [vmem:[%s5132_s29 + $0x144] sm:$0xf0] }
 0x639   : > { %1566 = vadd.xlane.f32.xlu2 %v1559_v52  ;;  %v3370_v1 = vor.u32 %v3891_v56, %v3369_v53 }
 0x63b   : > { %1918 = vmatpush.bf16.msra.mxu1 %v3434_v46  ;;  %v3379_v46 = vld [vmem:[%s5132_s29 + $0xa8] sm:$0xf0]  ;;  %1817 = vmatpush.bf16.msra.mxu0 %v3390_v42 }
 0x63c   : > { %1796 = vmatpush.bf16.msra.mxu3 %v3402_v9 }
 0x63f   : > { %1919 = vmatpush.bf16.msra.mxu1 %v3426_v0 }
 0x694   : > { %v1561_v14 = vpop.xlane.xlu1 %1560 }
 0x695   : > { %v1568_v15 = vmul.f32 %v1561_v14, %v5107_v38  ;;  %v3393_v14 = vld [vmem:[%s5132_s29 + $0xc0] sm:$0xf] }
 0x697   : > { %v5155_v20 = vadd.f32 0.0001, %v1568_v15  ;;  %v3897_v15 = vld [vmem:[%s5132_s29 + $0xc4] sm:$0xf0] }
 0x698   : > { %v3394_v18 = vor.u32 %v3897_v15, %v3393_v14 }
 0x699   : > { %4183 = vrsqrt.f32 %v5155_v20  ;;  %vm1582_vm11 = vweird.f32 %v5155_v20 }
 0x69a   : > { %1797 = vmatpush.bf16.msra.mxu3 %v3394_v18 }
 0x69c   : > { %v1563_v32 = vpop.xlane.xlu1 %1562 }
 0x69d   : > { %v1569_v45 = vmul.f32 %v1563_v32, %v5107_v38  ;;  %v3377_v32 = vld [vmem:[%s5132_s29 + $0xa0] sm:$0xf] }
 0x69e   : > { %1798 = vmatpush.bf16.msra.mxu3 %v3386_v30 }
 0x69f   : > { %v4184_v52 = vpop.eup %4183  ;;  %v5173_v54 = vadd.f32 0.0001, %v1569_v45 }
 0x6a0   : > { %v1577_v59 = vmul.f32 %v4184_v52, %v5155_v20  ;;  %vm1583_vm10 = vweird.f32 %v4184_v52 }
 0x6a1   : > { %4185 = vrsqrt.f32 %v5173_v54  ;;  %vm1584_vm12 = vmor %vm1582_vm11, %vm1583_vm10  ;;  %vm1592_vm14 = vweird.f32 %v5173_v54 }
 0x6a2   : > { %v1578_v63 = vmul.f32 %v4184_v52, %v1577_v59 }
 0x6a4   : > { %v1579_v7 = vmul.f32 0.5, %v1578_v63  ;;  %v1565_v8 = vpop.xlane.xlu0 %1564 }
 0x6a5   : > { %v1570_v11 = vmul.f32 %v1565_v8, %v5107_v38  ;;  %v3888_v8 = vld [vmem:[%s5132_s29 + $0x84] sm:$0xf] }
 0x6a6   : > { %v1580_v13 = vsub.f32 1.5, %v1579_v7  ;;  %v3889_v7 = vld [vmem:[%s5132_s29 + $0x84] sm:$0xf0] }
 0x6a7   : > { %v4186_v16 = vpop.eup %4185  ;;  %v5190_v17 = vadd.f32 0.0001, %v1570_v11  ;;  %v3362_v10 = vor.u32 %v3889_v7, %v3361_v6  ;;  %v3363_v11 = vld [vmem:[%s5132_s29 + $0x88] sm:$0xf0]  ;;  %v3532_v6 = vld [vmem:[%s5132_s29 + $0x138] sm:$0xf0] }
 0x6a8   : > { %v1581_v21 = vmul.f32 %v4184_v52, %v1580_v13  ;;  %v1587_v22 = vmul.f32 %v4186_v16, %v5173_v54  ;;  %vm1593_vm13 = vweird.f32 %v4186_v16 }
 0x6a9   : > { %4187 = vrsqrt.f32 %v5190_v17  ;;  %vm1594_vm15 = vmor %vm1592_vm14, %vm1593_vm13  ;;  %vm1602_vm1 = vweird.f32 %v5190_v17 }
 0x6aa   : > { %v1585_v20 = vsel %vm1584_vm12, %v4184_v52, %v1581_v21  ;;  %v1588_v26 = vmul.f32 %v4186_v16, %v1587_v22  ;;  %v3382_v52 = vor.u32 %v3892_v43, %v3379_v46  ;;  %v3562_v21 = vld [vmem:[%s5132_s29 + $0x170] sm:$0xf]  ;;  %v3919_v22 = vld [vmem:[%s5132_s29 + $0x174] sm:$0xf0]  ;;  %v3914_v46 = vld [vmem:[%s5132_s29 + $0x154] sm:$0xf] }
 0x6ab   : > { %v1616_v29 = vmul.f32 %v1585_v20, %v5110_v44  ;;  %v3378_v44 = vor.u32 %v3893_v34, %v3377_v32  ;;  %v3918_v20 = vld [vmem:[%s5132_s29 + $0x174] sm:$0xf]  ;;  %v3916_v32 = vld [vmem:[%s5132_s29 + $0x164] sm:$0xf]  ;;  %v3556_v34 = vld [vmem:[%s5132_s29 + $0x168] sm:$0xf0] }
 0x6ac   : > { %v1589_v45 = vmul.f32 0.5, %v1588_v26  ;;  %v1567_v35 = vpop.xlane.xlu2 %1566  ;;  %1818 = vmatpush.bf16.msra.mxu0 %v3382_v52  ;;  %v3564_v26 = vld [vmem:[%s5132_s29 + $0x178] sm:$0xf0]  ;;  %v3915_v43 = vld [vmem:[%s5132_s29 + $0x154] sm:$0xf0] }
 0x6ad   : > { %v1623_v48 = vmul.f32 %v5201_v24, %v1616_v29  ;;  %v1571_v49 = vmul.f32 %v1567_v35, %v5107_v38  ;;  %1799 = vmatpush.bf16.msra.mxu3 %v3378_v44  ;;  %v3567_v37 = vor.u32 %v3918_v20, %v3564_v26  ;;  %v3917_v29 = vld [vmem:[%s5132_s29 + $0x164] sm:$0xf0]  ;;  %v3546_v35 = vld [vmem:[%s5132_s29 + $0x150] sm:$0xf]  ;;  %v3506_v26 = vld [vmem:[%s5132_s29 + $0x100] sm:$0xf] }
 0x6ae   : > { %v1590_v50 = vsub.f32 1.5, %v1589_v45  ;;  %v3555_v31 = vor.u32 %v3917_v29, %v3554_v28  ;;  %v3547_v56 = vor.u32 %v3915_v43, %v3546_v35  ;;  %v3508_v28 = vld [vmem:[%s5132_s29 + $0x108] sm:$0xf0] }
 0x6af   : > { %v4188_v57 = vpop.eup %4187  ;;  %v5222_v58 = vadd.f32 %v5204_v25, %v1623_v48  ;;  %v5224_v59 = vadd.f32 0.0001, %v1571_v49  ;;  %v3548_v48 = vld [vmem:[%s5132_s29 + $0x158] sm:$0xf0] }
 0x6b0   : > { %v1591_v62 = vmul.f32 %v4186_v16, %v1590_v50  ;;  %v1597_v63 = vmul.f32 %v4188_v57, %v5190_v17  ;;  %vm1603_vm0 = vweird.f32 %v4188_v57  ;;  %1819 = vmatpush.bf16.msra.mxu0 %v3374_v4  ;;  %v3563_v17 = vor.u32 %v3919_v22, %v3562_v21 }
 0x6b1   : > { %v1634_v0 = vmul.f32 %v5222_v58, %v5017_v33  ;;  %4189 = vrsqrt.f32 %v5224_v59  ;;  %1800 = vmatpush.bf16.msra.mxu3 %v3370_v1  ;;  %vm1604_vm2 = vmor %vm1602_vm1, %vm1603_vm0  ;;  %vm1612_vm4 = vweird.f32 %v5224_v59 }
 0x6b2   : > { %v1595_v2 = vsel %vm1594_vm15, %v4186_v16, %v1591_v62  ;;  %v1598_v3 = vmul.f32 %v4188_v57, %v1597_v63  ;;  %v3912_v63 = vld [vmem:[%s5132_s29 + $0x144] sm:$0xf] }
 0x6b3   : > { %1638 = vst [vmem:[#allocation4 + $0x1] sm:$0xff] %v1634_v0  ;;  %v1617_v54 = vmul.f32 %v1595_v2, %v5115_v40  ;;  %v3366_v40 = vor.u32 %v3888_v8, %v3363_v11  ;;  %v3540_v0 = vld [vmem:[%s5132_s29 + $0x148] sm:$0xf0]  ;;  %v3539_v2 = vor.u32 %v3913_v61, %v3538_v60  ;;  %v3522_v8 = vld [vmem:[%s5132_s29 + $0x120] sm:$0xf]  ;;  %v3936_v61 = vld [vmem:[%s5307_s13 + $0x78] sm:$0xff] }
 0x6b4   : > { %v1599_v55 = vmul.f32 0.5, %v1598_v3 }
 0x6b5   : > { %v1624_v5 = vmul.f32 %v5201_v24, %v1617_v54  ;;  %1801 = vmatpush.bf16.msra.mxu3 %v3362_v10  ;;  %1820 = vmatpush.bf16.msra.mxu0 %v3366_v40  ;;  %v3911_v54 = vld [vmem:[%s5132_s29 + $0x134] sm:$0xf0]  ;;  %v3524_v10 = vld [vmem:[%s5132_s29 + $0x128] sm:$0xf0] }
 0x6b6   : > { %v1600_v9 = vsub.f32 1.5, %v1599_v55 }
 0x6b7   : > { %v4190_v13 = vpop.eup %4189  ;;  %v5241_v14 = vadd.f32 %v5204_v25, %v1624_v5  ;;  %v3910_v5 = vld [vmem:[%s5132_s29 + $0x134] sm:$0xf] }
 0x6b8   : > { %v1601_v15 = vmul.f32 %v4188_v57, %v1600_v9  ;;  %v1607_v16 = vmul.f32 %v4190_v13, %v5224_v59  ;;  %vm1613_vm3 = vweird.f32 %v4190_v13  ;;  %v3535_v7 = vor.u32 %v3910_v5, %v3532_v6  ;;  %v3909_v9 = vld [vmem:[%s5132_s29 + $0x124] sm:$0xf0]  ;;  %v3931_v5 = vld [vmem:[%s5307_s13 + $0x50] sm:$0xff]  ;;  %v3952_v6 = vld [vmem:[%s5307_s13 + $0xf8] sm:$0xff] }
 0x6b9   : > { %v1635_v18 = vmul.f32 %v5241_v14, %v5021_v36  ;;  %2061 = vmatpush.bf16.msrb.mxu3 %v3563_v17  ;;  %2080 = vmatpush.bf16.msrb.mxu0 %v3567_v37  ;;  %vm1614_vm5 = vmor %vm1612_vm4, %vm1613_vm3  ;;  %v3904_v37 = vld [vmem:[%s5132_s29 + $0x104] sm:$0xf] }
 0x6ba   : > { %v1605_v19 = vsel %vm1604_vm2, %v4188_v57, %v1601_v15  ;;  %v1608_v12 = vmul.f32 %v4190_v13, %v1607_v16  ;;  %v1642_v44 = vld [vmem:[#allocation4] sm:$0xff]  ;;  %v3551_v57 = vor.u32 %v3914_v46, %v3548_v48  ;;  %v3907_v16 = vld [vmem:[%s5132_s29 + $0x114] sm:$0xf0]  ;;  %2423 = vmatpush.bf16.msrb.mxu2 %v3952_v6 }
 0x6bb   : > { %1639 = vst [vmem:[#allocation4 + $0x9] sm:$0xff] %v1635_v18  ;;  %v1618_v23 = vmul.f32 %v1605_v19, %v5120_v47  ;;  %v3559_v47 = vor.u32 %v3916_v32, %v3556_v34  ;;  %v3514_v15 = vld [vmem:[%s5132_s29 + $0x110] sm:$0xf]  ;;  %v3906_v18 = vld [vmem:[%s5132_s29 + $0x114] sm:$0xf] }
 0x6bc   : > { %v1609_v27 = vmul.f32 0.5, %v1608_v12  ;;  %v3516_v19 = vld [vmem:[%s5132_s29 + $0x118] sm:$0xf0]  ;;  %v3515_v22 = vor.u32 %v3907_v16, %v3514_v15  ;;  %v3950_v15 = vld [vmem:[%s5307_s13 + $0xe8] sm:$0xff] }
 0x6bd   : > { %v1625_v30 = vmul.f32 %v5201_v24, %v1618_v23  ;;  %2062 = vmatpush.bf16.msrb.mxu3 %v3555_v31  ;;  %2081 = vmatpush.bf16.msrb.mxu0 %v3559_v47  ;;  %v3519_v23 = vor.u32 %v3906_v18, %v3516_v19  ;;  %v3922_v16 = vld [vmem:[%s5307_s13 + $0x8] sm:$0xff]  ;;  %v3943_v19 = vld [vmem:[%s5307_s13 + $0xb0] sm:$0xff] }
 0x6be   : > { %v1610_v45 = vsub.f32 1.5, %v1609_v27  ;;  %v3905_v27 = vld [vmem:[%s5132_s29 + $0x104] sm:$0xf0] }
 0x6bf   : > { %v5259_v42 = vadd.f32 %v5204_v25, %v1625_v30  ;;  %v3507_v34 = vor.u32 %v3905_v27, %v3506_v26  ;;  %v3948_v26 = vld [vmem:[%s5307_s13 + $0xd8] sm:$0xff] }
 0x6c0   : > { %v1611_v49 = vmul.f32 %v4190_v13, %v1610_v45  ;;  %v3511_v45 = vor.u32 %v3904_v37, %v3508_v28  ;;  %v3941_v28 = vld [vmem:[%s5307_s13 + $0xa0] sm:$0xff] }
 0x6c1   : > { %v1636_v50 = vmul.f32 %v5259_v42, %v5029_v39  ;;  %2063 = vmatpush.bf16.msrb.mxu3 %v3547_v56  ;;  %2082 = vmatpush.bf16.msrb.mxu0 %v3551_v57 }
 0x6c2   : > { %v1615_v52 = vsel %vm1614_vm5, %v4190_v13, %v1611_v49  ;;  %v1643_v53 = vld [vmem:[#allocation4 + $0x8] sm:$0xff]  ;;  %v3523_v13 = vor.u32 %v3909_v9, %v3522_v8  ;;  %v3930_v9 = vld [vmem:[%s5307_s13 + $0x48] sm:$0xff] }
 0x6c3   : > { %1640 = vst [vmem:[#allocation4 + $0x11] sm:$0xff] %v1636_v50  ;;  %v1619_v62 = vmul.f32 %v1615_v52, %v5125_v51  ;;  %v5270_v59 = vpack.c.bf16 %v1643_v53, %v1642_v44  ;;  %v3543_v51 = vor.u32 %v3912_v63, %v3540_v0  ;;  %v3934_v63 = vld [vmem:[%s5307_s13 + $0x68] sm:$0xff] }
 0x6c5   : > { %v1626_v1 = vmul.f32 %v5201_v24, %v1619_v62  ;;  %1920 = vmatmul.bf16.vlgmr.msra.gmra.mxu1 %v5270_v59  ;;  %1939 = vmatmul.bf16.vlgmr.msra.gmra.mxu2 %v5270_v59  ;;  %v3530_v24 = vld [vmem:[%s5132_s29 + $0x130] sm:$0xf]  ;;  %v1695_v11 = vshll.u32 %v5270_v59, 16  ;;  %v1693_v29 = vshrl.u32 %v5270_v59, 16  ;;  %v1974_v53 = vrot.slane %v5270_v59, 1  ;;  %v3928_v59 = vld [vmem:[%s5307_s13 + $0x38] sm:$0xff] }
 0x6c6   : > { %2064 = vmatpush.bf16.msrb.mxu3 %v3539_v2  ;;  %2083 = vmatpush.bf16.msrb.mxu0 %v3543_v51  ;;  %v3531_v55 = vor.u32 %v3911_v54, %v3530_v24  ;;  %v3935_v62 = vld [vmem:[%s5307_s13 + $0x70] sm:$0xff]  ;;  %v3933_v2 = vld [vmem:[%s5307_s13 + $0x60] sm:$0xff]  ;;  %v3926_v51 = vld [vmem:[%s5307_s13 + $0x28] sm:$0xff] }
 0x6c7   : > { %v5278_v3 = vadd.f32 %v5204_v25, %v1626_v1  ;;  %v3908_v25 = vld [vmem:[%s5132_s29 + $0x124] sm:$0xf]  ;;  %v1697_v20 = vrot.slane %v1695_v11, 1  ;;  %v3927_v1 = vld [vmem:[%s5307_s13 + $0x30] sm:$0xff]  ;;  %v3932_v24 = vld [vmem:[%s5307_s13 + $0x58] sm:$0xff] }
 0x6c8   : > { %v3527_v40 = vor.u32 %v3908_v25, %v3524_v10  ;;  %v3951_v10 = vld [vmem:[%s5307_s13 + $0xf0] sm:$0xff] }
 0x6c9   : > { %v1637_v4 = vmul.f32 %v5278_v3, %v5033_v41  ;;  %v1698_v31 = vor.u32 %v1697_v20, %v1693_v29  ;;  %v3923_v11 = vld [vmem:[%s5307_s13 + $0x10] sm:$0xff]  ;;  %2424 = vmatpush.bf16.msrb.mxu2 %v3951_v10  ;;  %v1648_v20 = vld [vmem:[%s4933_s8] sm:$0x3] }
 0x6ca   : > { %2065 = vmatpush.bf16.msrb.mxu3 %v3531_v55  ;;  %2084 = vmatpush.bf16.msrb.mxu0 %v3535_v7  ;;  %v1644_v12 = vld [vmem:[#allocation4 + $0x10] sm:$0xff]  ;;  %v3924_v7 = vld [vmem:[%s5307_s13 + $0x18] sm:$0xff] }
 0x6cb   : > { %1641 = vst [vmem:[#allocation4 + $0x19] sm:$0xff] %v1637_v4  ;;  %v3925_v55 = vld [vmem:[%s5307_s13 + $0x20] sm:$0xff] }
 0x6cd   : > { %2425 = vmatpush.bf16.msrb.mxu2 %v3950_v15 }
 0x6ce   : > { %2066 = vmatpush.bf16.msrb.mxu3 %v3523_v13  ;;  %2085 = vmatpush.bf16.msrb.mxu0 %v3527_v40  ;;  %v3944_v13 = vld [vmem:[%s5307_s13 + $0xb8] sm:$0xff]  ;;  %v3929_v40 = vld [vmem:[%s5307_s13 + $0x40] sm:$0xff] }
 0x6cf   : > { %2404 = vmatpush.bf16.msrb.mxu1 %v3944_v13 }
 0x6d2   : > { %v1645_v21 = vld [vmem:[#allocation4 + $0x18] sm:$0xff]  ;;  %2067 = vmatpush.bf16.msrb.mxu3 %v3515_v22  ;;  %2086 = vmatpush.bf16.msrb.mxu0 %v3519_v23  ;;  %v1646_v35 = vld [vmem:[#allocation4 + $0x20] sm:$0x3]  ;;  %v3949_v22 = vld [vmem:[%s5307_s13 + $0xe0] sm:$0xff] }
 0x6d3   : > { %v1650_v17 = vpack.c.bf16 %v1645_v21, %v1644_v12  ;;  %v1670_v43 = vpack.c.bf16 %v1646_v35, %v1646_v35  ;;  %2405 = vmatpush.bf16.msrb.mxu1 %v3943_v19  ;;  %v3921_v23 = vld [vmem:[%s5307_s13] sm:$0xff]  ;;  %2426 = vmatpush.bf16.msrb.mxu2 %v3949_v22  ;;  %v3960_v19 = vld [vmem:[%s5307_s13 + $0x138] sm:$0xff] }
 0x6d5   : > { %1925 = vmatmul.bf16.gmra.mxu1 %v1650_v17  ;;  %1944 = vmatmul.bf16.gmra.mxu2 %v1650_v17  ;;  %v1700_v30 = vshll.u32 %v1650_v17, 16  ;;  %v1704_v46 = vshrl.u32 %v1650_v17, 16  ;;  %v1708_v48 = vshll.u32 %v1670_v43, 16  ;;  %v1975_v52 = vrot.slane %v1650_v17, 1  ;;  %v3942_v17 = vld [vmem:[%s5307_s13 + $0xa8] sm:$0xff] }
 0x6d6   : > { %2068 = vmatpush.bf16.msrb.mxu3 %v3507_v34  ;;  %2087 = vmatpush.bf16.msrb.mxu0 %v3511_v45  ;;  %v1977_v57 = vrot.slane %v1670_v43, 1  ;;  %v3946_v43 = vld [vmem:[%s5307_s13 + $0xc8] sm:$0xff] }
 0x6d7   : > { %v1702_v32 = vrot.slane %v1700_v30, 1  ;;  %v1710_v50 = vrot.slane %v1708_v48, 1  ;;  %v1976_v56 = vsel %vm1973_vm7, %v1974_v53, %v1975_v52  ;;  %2406 = vmatpush.bf16.msrb.mxu1 %v3942_v17  ;;  %2427 = vmatpush.bf16.msrb.mxu2 %v3948_v26  ;;  %v5345_v30 = vperm.slane %v1648_v20, 1  ;;  %v3959_v26 = vld [vmem:[%s5307_s13 + $0x130] sm:$0xff] }
 0x6d8   : > { %v1978_v60 = vsel %vm1973_vm7, %v1975_v52, %v1977_v57 }
 0x6d9   : > { %v1703_v47 = vsel %vm1691_vm6, %v1698_v31, %v1702_v32  ;;  %v1706_v49 = vor.u32 %v1704_v46, %v1702_v32  ;;  %v3947_v32 = vld [vmem:[%s5307_s13 + $0xd0] sm:$0xff] }
 0x6da   : > { %1802 = vmatmul.bf16.vlgmr.msra.gmra.mxu3 %v1703_v47  ;;  %1821 = vmatmul.bf16.vlgmr.msra.gmra.mxu0 %v1703_v47  ;;  %v3940_v47 = vld [vmem:[%s5307_s13 + $0x98] sm:$0xff] }
 0x6db   : > { %v1711_v44 = vsel %vm1691_vm6, %v1706_v49, %v1710_v50  ;;  %2557 = vmatpush.bf16.msra.mxu0 %v3936_v61  ;;  %2538 = vmatpush.bf16.msra.mxu3 %v3928_v59  ;;  %v5351_v49 = vperm.slane %v1648_v20, 0  ;;  %v3945_v61 = vld [vmem:[%s5307_s13 + $0xc0] sm:$0xff] }
 0x6dc   : > { %2407 = vmatpush.bf16.msrb.mxu1 %v3941_v28  ;;  %2428 = vmatpush.bf16.msrb.mxu2 %v3947_v32 }
 0x6df   : > { %2558 = vmatpush.bf16.msra.mxu0 %v3935_v62  ;;  %2539 = vmatpush.bf16.msra.mxu3 %v3927_v1 }
 0x6e0   : > { %2408 = vmatpush.bf16.msrb.mxu1 %v3940_v47  ;;  %2429 = vmatpush.bf16.msrb.mxu2 %v3946_v43 }
 0x6e3   : > { %2559 = vmatpush.bf16.msra.mxu0 %v3934_v63  ;;  %2540 = vmatpush.bf16.msra.mxu3 %v3926_v51 }
 0x6e4   : > { %2430 = vmatpush.bf16.msrb.mxu2 %v3945_v61 }
 0x6e7   : > { %2560 = vmatpush.bf16.msra.mxu0 %v3933_v2  ;;  %2541 = vmatpush.bf16.msra.mxu3 %v3925_v55 }
 0x6ea   : > { %1807 = vmatmul.bf16.gmra.mxu3 %v1711_v44  ;;  %1826 = vmatmul.bf16.gmra.mxu0 %v1711_v44  ;;  %v3939_v44 = vld [vmem:[%s5307_s13 + $0x90] sm:$0xff] }
 0x6eb   : > { %2561 = vmatpush.bf16.msra.mxu0 %v3932_v24  ;;  %2542 = vmatpush.bf16.msra.mxu3 %v3924_v7  ;;  %v3937_v24 = vld [vmem:[%s5307_s13 + $0x80] sm:$0xff]  ;;  %v3967_v7 = vld [vmem:[%s5307_s13 + $0x170] sm:$0xff] }
 0x6ec   : > { %2409 = vmatpush.bf16.msrb.mxu1 %v3939_v44 }
 0x6ef   : > { %2562 = vmatpush.bf16.msra.mxu0 %v3931_v5  ;;  %2543 = vmatpush.bf16.msra.mxu3 %v3923_v11 }
 0x6f3   : > { %2563 = vmatpush.bf16.msra.mxu0 %v3930_v9  ;;  %2544 = vmatpush.bf16.msra.mxu3 %v3922_v16 }
 0x6f7   : > { %2564 = vmatpush.bf16.msra.mxu0 %v3929_v40  ;;  %2545 = vmatpush.bf16.msra.mxu3 %v3921_v23  ;;  %v3966_v23 = vld [vmem:[%s5307_s13 + $0x168] sm:$0xff] }
 0x6fa   : > { %2069 = vmatmul.bf16.vlgmr.msrb.gmra.mxu3 %v1976_v56  ;;  %2088 = vmatmul.bf16.vlgmr.msrb.gmra.mxu0 %v1976_v56 }
 0x70a   : > { %2074 = vmatmul.bf16.gmra.mxu3 %v1978_v60  ;;  %2093 = vmatmul.bf16.gmra.mxu0 %v1978_v60 }
 0x742   : > { %v1921_v27 = vpop.f32.mrf.mxu1 }
 0x748   : > { %v1940_v12 = vpop.f32.mrf.mxu2 }
 0x74a   : > { %v1923_v57 = vpop.f32.mrf.mxu1 }
 0x750   : > { %v1942_v45 = vpop.f32.mrf.mxu2 }
 0x757   : > { %v1822_v0 = vpop.f32.mrf.mxu0 }
 0x758   : > { %v1941_v29 = vadd.f32 %v1940_v12, %v1822_v0  ;;  %v3938_v0 = vld [vmem:[%s5307_s13 + $0x88] sm:$0xff]  ;;  %v1945_v51 = vpop.f32.mrf.mxu2  ;;  %v1926_v12 = vpop.f32.mrf.mxu1 }
 0x759   : > { %2410 = vmatpush.bf16.msrb.mxu1 %v3938_v0 }
 0x75d   : > { %v1803_v4 = vpop.f32.mrf.mxu3  ;;  %2411 = vmatpush.bf16.msrb.mxu1 %v3937_v24 }
 0x75e   : > { %v1922_v46 = vadd.f32 %v1921_v27, %v1803_v4  ;;  %v3968_v4 = vld [vmem:[%s5307_s13 + $0x178] sm:$0xff] }
 0x75f   : > { %v1824_v54 = vpop.f32.mrf.mxu0  ;;  %2745 = vmatpush.bf16.msra.mxu2 %v3968_v4  ;;  %v3963_v4 = vld [vmem:[%s5307_s13 + $0x150] sm:$0xff] }
 0x760   : > { %v1943_v52 = vadd.f32 %v1942_v45, %v1824_v54  ;;  %v1947_v32 = vpop.f32.mrf.mxu2  ;;  %v3965_v45 = vld [vmem:[%s5307_s13 + $0x160] sm:$0xff] }
 0x761   : > { %2726 = vmatpush.bf16.msra.mxu1 %v3960_v19 }
 0x763   : > { %2746 = vmatpush.bf16.msra.mxu2 %v3967_v7  ;;  %v3956_v7 = vld [vmem:[%s5307_s13 + $0x118] sm:$0xff] }
 0x765   : > { %v5321_v8 = vpop.f32.mrf.mxu3  ;;  %2727 = vmatpush.bf16.msra.mxu1 %v3959_v26 }
 0x766   : > { %v1924_v54 = vadd.f32 %v1923_v57, %v5321_v8 }
 0x767   : > { %v5324_v25 = vpop.f32.mrf.mxu0  ;;  %2747 = vmatpush.bf16.msra.mxu2 %v3966_v23  ;;  %v3954_v23 = vld [vmem:[%s5307_s13 + $0x108] sm:$0xff] }
 0x768   : > { %v1946_v9 = vadd.f32 %v1945_v51, %v5324_v25 }
 0x76b   : > { %2748 = vmatpush.bf16.msra.mxu2 %v3965_v45 }
 0x76d   : > { %v5332_v18 = vpop.f32.mrf.mxu3 }
 0x76e   : > { %v1927_v28 = vadd.f32 %v1926_v12, %v5332_v18  ;;  %v3961_v12 = vld [vmem:[%s5307_s13 + $0x140] sm:$0xff] }
 0x76f   : > { %v5335_v21 = vpop.f32.mrf.mxu0 }
 0x770   : > { %v1948_v47 = vadd.f32 %v1947_v32, %v5335_v21  ;;  %v3953_v32 = vld [vmem:[%s5307_s13 + $0x100] sm:$0xff] }
 0x775   : > { %v5342_v37 = vpop.f32.mrf.mxu3 }
 0x777   : > { %v2089_v31 = vpop.f32.mrf.mxu0 }
 0x778   : > { %v2100_v34 = vadd.f32 %v2089_v31, %v1941_v29 }
 0x77a   : > { %v2113_v35 = vadd.f32 %v5345_v30, %v2100_v34 }
 0x77c   : > { %v2121_v48 = vmax.f32 %v2113_v35, 0.0 }
 0x77d   : > { %v2070_v50 = vpop.f32.mrf.mxu3 }
 0x77e   : > { %v2129_v53 = vmul.f32 %v2121_v48, %v5017_v33  ;;  %v2099_v56 = vadd.f32 %v2070_v50, %v1922_v46  ;;  %v3958_v48 = vld [vmem:[%s5307_s13 + $0x128] sm:$0xff] }
 0x77f   : > { %v2091_v60 = vpop.f32.mrf.mxu0  ;;  %2728 = vmatpush.bf16.msra.mxu1 %v3958_v48 }
 0x780   : > { %v2146_v62 = vrot.slane %v2129_v53, 7  ;;  %v2112_v59 = vadd.f32 %v5351_v49, %v2099_v56  ;;  %v2102_v63 = vadd.f32 %v2091_v60, %v1943_v52 }
 0x782   : > { %2170 = vst [vmem:[#allocation5] sm:$0xfe] %v2146_v62  ;;  %v2120_v1 = vmax.f32 %v2112_v59, 0.0  ;;  %v2115_v2 = vadd.f32 %v5345_v30, %v2102_v63  ;;  %v3957_v59 = vld [vmem:[%s5307_s13 + $0x120] sm:$0xff]  ;;  %v1928_v63 = vpop.f32.mrf.mxu1 }
 0x783   : > { %v1929_v0 = vadd.f32 %v1928_v63, %v5342_v37  ;;  %2729 = vmatpush.bf16.msra.mxu1 %v3957_v59 }
 0x784   : > { %v2128_v55 = vmul.f32 %v2120_v1, %v5017_v33  ;;  %v2123_v5 = vmax.f32 %v2115_v2, 0.0 }
 0x785   : > { %v2072_v6 = vpop.f32.mrf.mxu3 }
 0x786   : > { %v2145_v10 = vrot.slane %v2128_v55, 7  ;;  %v2131_v11 = vmul.f32 %v2123_v5, %v5021_v36  ;;  %v2101_v13 = vadd.f32 %v2072_v6, %v1924_v54 }
 0x787   : > { %v2094_v40 = vpop.f32.mrf.mxu0  ;;  %2730 = vmatpush.bf16.msra.mxu1 %v3956_v7 }
 0x788   : > { %2169 = vst [vmem:[#allocation5 + $0x30] sm:$0xfe] %v2145_v10  ;;  %v2149_v8 = vrot.slane %v2131_v11, 7  ;;  %v2114_v15 = vadd.f32 %v5351_v49, %v2101_v13  ;;  %v2104_v16 = vadd.f32 %v2094_v40, %v1946_v9  ;;  %v3962_v9 = vld [vmem:[%s5307_s13 + $0x148] sm:$0xff]  ;;  %v3955_v13 = vld [vmem:[%s5307_s13 + $0x110] sm:$0xff] }
 0x789   : > { %v2180_v22 = vld [vmem:[#allocation5] sm:$0xff] }
 0x78a   : > { %v2150_v25 = vsel %vm2144_vm8, %v2146_v62, %v2149_v8  ;;  %v2122_v17 = vmax.f32 %v2114_v15, 0.0  ;;  %v2117_v20 = vadd.f32 %v5345_v30, %v2104_v16  ;;  %v3964_v62 = vld [vmem:[%s5307_s13 + $0x158] sm:$0xff] }
 0x78b   : > { %v5372_v27 = vpack.c.bf16 %v2150_v25, %v2180_v22  ;;  %2749 = vmatpush.bf16.msra.mxu2 %v3964_v62  ;;  %2731 = vmatpush.bf16.msra.mxu1 %v3955_v13 }
 0x78c   : > { %v2130_v29 = vmul.f32 %v2122_v17, %v5021_v36  ;;  %v2125_v31 = vmax.f32 %v2117_v20, 0.0 }
 0x78d   : > { %v2075_v34 = vpop.f32.mrf.mxu3  ;;  %2565 = vmatmul.bf16.vlgmr.msra.gmra.mxu0 %v5372_v27  ;;  %v2279_v55 = vshll.u32 %v5372_v27, 16  ;;  %v2277_v16 = vshrl.u32 %v5372_v27, 16 }
 0x78e   : > { %v2147_v35 = vrot.slane %v2130_v29, 7  ;;  %v2133_v43 = vmul.f32 %v2125_v31, %v5029_v39  ;;  %v2103_v46 = vadd.f32 %v2075_v34, %v1927_v28 }
 0x78f   : > { %v2096_v18 = vpop.f32.mrf.mxu0  ;;  %v2179_v50 = vld [vmem:[#allocation5 + $0x30] sm:$0xff]  ;;  %2750 = vmatpush.bf16.msra.mxu2 %v3963_v4  ;;  %2732 = vmatpush.bf16.msra.mxu1 %v3954_v23  ;;  %v4146_v23 = vld [vmem:[%s777_s18] ss:$0 sm:$0xff] }
 0x790   : > { %v2148_v44 = vsel %vm2144_vm8, %v2145_v10, %v2147_v35  ;;  %v2153_v52 = vrot.slane %v2133_v43, 7  ;;  %v2116_v53 = vadd.f32 %v5351_v49, %v2103_v46  ;;  %v2106_v56 = vadd.f32 %v2096_v18, %v1948_v47 }
 0x791   : > { %v5383_v57 = vpack.c.bf16 %v2148_v44, %v2179_v50 }
 0x792   : > { %v2154_v21 = vsel %vm2144_vm8, %v2149_v8, %v2153_v52  ;;  %v2124_v60 = vmax.f32 %v2116_v53, 0.0  ;;  %v2119_v61 = vadd.f32 %v5345_v30, %v2106_v56  ;;  %v2281_v8 = vrot.slane %v2279_v55, 1 }
 0x793   : > { %2546 = vmatmul.bf16.vlgmr.msra.gmra.mxu3 %v5383_v57  ;;  %2751 = vmatpush.bf16.msra.mxu2 %v3962_v9  ;;  %v2265_v34 = vshrl.u32 %v5383_v57, 16 }
 0x794   : > { %v2132_v1 = vmul.f32 %v2124_v60, %v5029_v39  ;;  %v2127_v2 = vmax.f32 %v2119_v61, 0.0  ;;  %v2282_v25 = vor.u32 %v2281_v8, %v2277_v16  ;;  %2733 = vmatpush.bf16.msra.mxu1 %v3953_v32 }
 0x795   : > { %v2077_v51 = vpop.f32.mrf.mxu3 }
 0x796   : > { %v2151_v24 = vrot.slane %v2132_v1, 7  ;;  %v2135_v30 = vmul.f32 %v2127_v2, %v5033_v41  ;;  %v2105_v54 = vadd.f32 %v2077_v51, %v1929_v0  ;;  %v2619_v0 = vrot.slane %v5372_v27, 1 }
 0x797   : > { %2752 = vmatpush.bf16.msra.mxu2 %v3961_v12  ;;  %v2616_v51 = vrot.slane %v5383_v57, 1 }
 0x798   : > { %v2152_v5 = vsel %vm2144_vm8, %v2147_v35, %v2151_v24  ;;  %v2157_v6 = vrot.slane %v2135_v30, 7  ;;  %v2118_v37 = vadd.f32 %v5351_v49, %v2105_v54  ;;  %v2267_v49 = vshll.u32 %v5383_v57, 16 }
 0x79a   : > { %v2158_v10 = vsel %vm2144_vm8, %v2153_v52, %v2157_v6  ;;  %2178 = vst [vmem:[#allocation5 + $0x38] sm:$0x1] %v2157_v6  ;;  %v2126_v11 = vmax.f32 %v2118_v37, 0.0  ;;  %v2269_v29 = vrot.slane %v2267_v49, 1 }
 0x79b   : > { %v2193_v40 = vpack.c.bf16 %v2158_v10, %v2154_v21 }
 0x79c   : > { %v2134_v15 = vmul.f32 %v2126_v11, %v5033_v41  ;;  %v2270_v47 = vor.u32 %v2269_v29, %v2265_v34 }
 0x79d   : > { %2570 = vmatmul.bf16.gmra.mxu0 %v2193_v40  ;;  %v2284_v19 = vshll.u32 %v2193_v40, 16  ;;  %v2296_v44 = vshrl.u32 %v2193_v40, 16  ;;  %v2620_v63 = vrot.slane %v2193_v40, 1 }
 0x79e   : > { %v2155_v22 = vrot.slane %v2134_v15, 7 }
 0x79f   : > { %v2286_v17 = vrot.slane %v2284_v19, 1  ;;  %v2621_v1 = vsel %vm1973_vm7, %v2619_v0, %v2620_v63 }
 0x7a0   : > { %v2156_v20 = vsel %vm2144_vm8, %v2151_v24, %v2155_v22  ;;  %2177 = vst [vmem:[#allocation5 + $0x40] sm:$0x1] %v2155_v22 }
 0x7a1   : > { %v2287_v26 = vsel %vm1691_vm6, %v2282_v25, %v2286_v17  ;;  %v2192_v28 = vpack.c.bf16 %v2156_v20, %v2152_v5  ;;  %v2188_v31 = vld [vmem:[#allocation5 + $0x38] sm:$0x3]  ;;  %v2298_v53 = vor.u32 %v2296_v44, %v2286_v17 }
 0x7a2   : > { %2431 = vmatmul.bf16.vlgmr.msrb.gmra.mxu2 %v2287_v26  ;;  %v2229_v43 = vpack.c.bf16 %v2188_v31, %v2188_v31 }
 0x7a3   : > { %2551 = vmatmul.bf16.gmra.mxu3 %v2192_v28  ;;  %v2272_v45 = vshll.u32 %v2192_v28, 16  ;;  %v2288_v60 = vshrl.u32 %v2192_v28, 16  ;;  %v2617_v2 = vrot.slane %v2192_v28, 1 }
 0x7a4   : > { %v2300_v18 = vshll.u32 %v2229_v43, 16  ;;  %v2624_v24 = vrot.slane %v2229_v43, 1 }
 0x7a5   : > { %v2274_v35 = vrot.slane %v2272_v45, 1  ;;  %v2618_v4 = vsel %vm1973_vm7, %v2616_v51, %v2617_v2 }
 0x7a6   : > { %v2302_v52 = vrot.slane %v2300_v18, 1  ;;  %v2625_v30 = vsel %vm1973_vm7, %v2620_v63, %v2624_v24 }
 0x7a7   : > { %v2275_v46 = vsel %vm1691_vm6, %v2270_v47, %v2274_v35  ;;  %v2187_v48 = vld [vmem:[#allocation5 + $0x40] sm:$0x3]  ;;  %v2290_v62 = vor.u32 %v2288_v60, %v2274_v35 }
 0x7a8   : > { %2412 = vmatmul.bf16.vlgmr.msrb.gmra.mxu1 %v2275_v46  ;;  %v2228_v50 = vpack.c.bf16 %v2187_v48, %v2187_v48  ;;  %v2303_v21 = vsel %vm1691_vm6, %v2298_v53, %v2302_v52 }
 0x7aa   : > { %v2292_v56 = vshll.u32 %v2228_v50, 16  ;;  %v2622_v54 = vrot.slane %v2228_v50, 1 }
 0x7ac   : > { %v2294_v61 = vrot.slane %v2292_v56, 1  ;;  %v2623_v55 = vsel %vm1973_vm7, %v2617_v2, %v2622_v54 }
 0x7ae   : > { %v2295_v59 = vsel %vm1691_vm6, %v2290_v62, %v2294_v61 }
 0x7b2   : > { %2436 = vmatmul.bf16.gmra.mxu2 %v2303_v21 }
 0x7b8   : > { %2417 = vmatmul.bf16.gmra.mxu1 %v2295_v59 }
 0x7c2   : > { %2753 = vmatmul.bf16.vlgmr.msra.gmra.mxu2 %v2621_v1 }
 0x7c8   : > { %2734 = vmatmul.bf16.vlgmr.msra.gmra.mxu1 %v2618_v4 }
 0x7d2   : > { %2758 = vmatmul.bf16.gmra.mxu2 %v2625_v30 }
 0x7d8   : > { %2739 = vmatmul.bf16.gmra.mxu1 %v2623_v55 }
 0x80a   : > { %v2566_v13 = vpop.f32.mrf.mxu0 }
 0x812   : > { %v2568_v25 = vpop.f32.mrf.mxu0 }
 0x816   : > { %v2547_v10 = vpop.f32.mrf.mxu3 }
 0x81a   : > { %v2571_v46 = vpop.f32.mrf.mxu0 }
 0x81e   : > { %v2549_v15 = vpop.f32.mrf.mxu3 }
 0x822   : > { %v2573_v63 = vpop.f32.mrf.mxu0 }
 0x825   : > { %v2413_v5 = vpop.f32.mrf.mxu1  ;;  %v2432_v6 = vpop.f32.mrf.mxu2 }
 0x826   : > { %v2433_v40 = vadd.f32 %v2432_v6, %v2413_v5  ;;  %v2552_v35 = vpop.f32.mrf.mxu3 }
 0x828   : > { %v2548_v8 = vadd.f32 %v2547_v10, %v2433_v40 }
 0x82a   : > { %v2567_v12 = vadd.f32 %v2566_v13, %v2548_v8 }
 0x82d   : > { %v2415_v27 = vpop.f32.mrf.mxu1  ;;  %v2434_v37 = vpop.f32.mrf.mxu2 }
 0x82e   : > { %v2435_v49 = vadd.f32 %v2434_v37, %v2415_v27  ;;  %v2554_v62 = vpop.f32.mrf.mxu3 }
 0x830   : > { %v2550_v20 = vadd.f32 %v2549_v15, %v2435_v49 }
 0x832   : > { %v2569_v34 = vadd.f32 %v2568_v25, %v2550_v20 }
 0x835   : > { %v2418_v7 = vpop.f32.mrf.mxu1  ;;  %v2437_v9 = vpop.f32.mrf.mxu2 }
 0x836   : > { %v2438_v32 = vadd.f32 %v2437_v9, %v2418_v7 }
 0x838   : > { %v2553_v48 = vadd.f32 %v2552_v35, %v2438_v32 }
 0x83a   : > { %v2572_v56 = vadd.f32 %v2571_v46, %v2553_v48 }
 0x83d   : > { %v2420_v57 = vpop.f32.mrf.mxu1  ;;  %v2439_v11 = vpop.f32.mrf.mxu2 }
 0x83e   : > { %v2440_v53 = vadd.f32 %v2439_v11, %v2420_v57 }
 0x840   : > { %v2555_v59 = vadd.f32 %v2554_v62, %v2440_v53 }
 0x842   : > { %v2574_v51 = vadd.f32 %v2573_v63, %v2555_v59 }
 0x845   : > { %v2735_v16 = vpop.f32.mrf.mxu1  ;;  %v2754_v19 = vpop.f32.mrf.mxu2 }
 0x846   : > { %v2755_v22 = vadd.f32 %v2754_v19, %v2735_v16 }
 0x848   : > { %v2764_v17 = vadd.f32 %v2755_v22, %v2567_v12 }
 0x84a   : > { %v2771_v26 = vadd.f32 %v4146_v23, %v2764_v17 }
 0x84c   : > { %v2775_v28 = vmul.f32 %v2771_v26, %v5017_v33 }
 0x84d   : > { %v2737_v29 = vpop.f32.mrf.mxu1  ;;  %v2756_v31 = vpop.f32.mrf.mxu2 }
 0x84e   : > { %v2757_v45 = vadd.f32 %v2756_v31, %v2737_v29  ;;  %v2779_v47 = vadd.f32 %v2775_v28, %v5222_v58 }
 0x850   : > { %v2765_v43 = vadd.f32 %v2757_v45, %v2569_v34  ;;  %2785 = vadd.xlane.f32.xlu1 %v2779_v47 }
 0x852   : > { %v2772_v18 = vadd.f32 %v4146_v23, %v2765_v43  ;;  %v4147_v43 = vld [vmem:[%s780_s9] ss:$0 sm:$0xff] }
 0x854   : > { %v2776_v50 = vmul.f32 %v2772_v18, %v5021_v36  ;;  %v4148_v18 = vld [vmem:[%s783_s23] ss:$0 sm:$0xff] }
 0x855   : > { %v2740_v44 = vpop.f32.mrf.mxu1  ;;  %v2759_v52 = vpop.f32.mrf.mxu2 }
 0x856   : > { %v2760_v21 = vadd.f32 %v2759_v52, %v2740_v44  ;;  %v2780_v60 = vadd.f32 %v2776_v50, %v5241_v14 }
 0x858   : > { %v2766_v61 = vadd.f32 %v2760_v21, %v2572_v56  ;;  %2787 = vadd.xlane.f32.xlu0 %v2780_v60 }
 0x85a   : > { %v2773_v58 = vadd.f32 %v4146_v23, %v2766_v61 }
 0x85c   : > { %v2777_v0 = vmul.f32 %v2773_v58, %v5029_v39 }
 0x85d   : > { %v2742_v1 = vpop.f32.mrf.mxu1  ;;  %v2761_v2 = vpop.f32.mrf.mxu2 }
 0x85e   : > { %v2762_v4 = vadd.f32 %v2761_v2, %v2742_v1  ;;  %v2781_v24 = vadd.f32 %v2777_v0, %v5259_v42 }
 0x860   : > { %v2767_v30 = vadd.f32 %v2762_v4, %v2574_v51  ;;  %2789 = vadd.xlane.f32.xlu2 %v2781_v24 }
 0x862   : > { %v2774_v54 = vadd.f32 %v4146_v23, %v2767_v30 }
 0x864   : > { %v2778_v55 = vmul.f32 %v2774_v54, %v5033_v41 }
 0x866   : > { %v2782_v14 = vadd.f32 %v2778_v55, %v5278_v3 }
 0x868   : > { %2791 = vadd.xlane.f32.xlu1 %v2782_v14 }
 0x8c3   : > { %v2786_v5 = vpop.xlane.xlu1 %2785 }
 0x8c4   : > { %v2793_v6 = vmul.f32 %v2786_v5, %v5107_v38 }
 0x8c6   : > { %v2797_v27 = vsub.f32 %v2779_v47, %v2793_v6 }
 0x8c8   : > { %v2801_v37 = vmul.f32 %v2797_v27, %v2797_v27 }
 0x8ca   : > { %2805 = vadd.xlane.f32.xlu0 %v2801_v37 }
 0x8cb   : > { %v2788_v7 = vpop.xlane.xlu0 %2787 }
 0x8cc   : > { %v2794_v9 = vmul.f32 %v2788_v7, %v5107_v38 }
 0x8ce   : > { %v2798_v10 = vsub.f32 %v2780_v60, %v2794_v9 }
 0x8d0   : > { %v2802_v57 = vmul.f32 %v2798_v10, %v2798_v10 }
 0x8d2   : > { %2807 = vadd.xlane.f32.xlu2 %v2802_v57 }
 0x8d3   : > { %v2790_v42 = vpop.xlane.xlu2 %2789 }
 0x8d4   : > { %v2795_v11 = vmul.f32 %v2790_v42, %v5107_v38 }
 0x8d6   : > { %v5435_v13 = vsub.f32 %v2781_v24, %v2795_v11 }
 0x8d8   : > { %v2803_v3 = vmul.f32 %v5435_v13, %v5435_v13 }
 0x8da   : > { %2809 = vadd.xlane.f32.xlu1 %v2803_v3 }
 0x8db   : > { %v2792_v40 = vpop.xlane.xlu1 %2791 }
 0x8dc   : > { %v2796_v8 = vmul.f32 %v2792_v40, %v5107_v38 }
 0x8de   : > { %v5440_v15 = vsub.f32 %v2782_v14, %v2796_v8 }
 0x8e0   : > { %v2804_v16 = vmul.f32 %v5440_v15, %v5440_v15 }
 0x8e2   : > { %2811 = vadd.xlane.f32.xlu0 %v2804_v16 }
 0x93d   : > { %v2806_v19 = vpop.xlane.xlu0 %2805 }
 0x93e   : > { %v2813_v49 = vmul.f32 %v2806_v19, %v5107_v38 }
 0x940   : > { %v2817_v12 = vadd.f32 0.0001, %v2813_v49 }
 0x942   : > { %4191 = vrsqrt.f32 %v2817_v12  ;;  %vm2827_vm10 = vweird.f32 %v2817_v12 }
 0x945   : > { %v2808_v22 = vpop.xlane.xlu2 %2807 }
 0x946   : > { %v2814_v23 = vmul.f32 %v2808_v22, %v5107_v38 }
 0x948   : > { %v4192_v25 = vpop.eup %4191  ;;  %v2818_v17 = vadd.f32 0.0001, %v2814_v23 }
 0x949   : > { %v2822_v20 = vmul.f32 %v4192_v25, %v2817_v12  ;;  %vm2828_vm9 = vweird.f32 %v4192_v25 }
 0x94a   : > { %4193 = vrsqrt.f32 %v2818_v17  ;;  %vm2829_vm11 = vmor %vm2827_vm10, %vm2828_vm9  ;;  %vm2837_vm13 = vweird.f32 %v2818_v17 }
 0x94b   : > { %v2823_v26 = vmul.f32 %v4192_v25, %v2822_v20 }
 0x94d   : > { %v2824_v28 = vmul.f32 0.5, %v2823_v26  ;;  %v2810_v29 = vpop.xlane.xlu1 %2809 }
 0x94e   : > { %v2815_v31 = vmul.f32 %v2810_v29, %v5107_v38 }
 0x94f   : > { %v2825_v32 = vsub.f32 1.5, %v2824_v28 }
 0x950   : > { %v4194_v34 = vpop.eup %4193  ;;  %v2819_v45 = vadd.f32 0.0001, %v2815_v31 }
 0x951   : > { %v2826_v47 = vmul.f32 %v4192_v25, %v2825_v32  ;;  %v2832_v35 = vmul.f32 %v4194_v34, %v2818_v17  ;;  %vm2838_vm12 = vweird.f32 %v4194_v34 }
 0x952   : > { %4195 = vrsqrt.f32 %v2819_v45  ;;  %vm2839_vm14 = vmor %vm2837_vm13, %vm2838_vm12  ;;  %vm2847_vm0 = vweird.f32 %v2819_v45 }
 0x953   : > { %v2830_v46 = vsel %vm2829_vm11, %v4192_v25, %v2826_v47  ;;  %v2833_v48 = vmul.f32 %v4194_v34, %v2832_v35 }
 0x954   : > { %v2861_v50 = vmul.f32 %v2830_v46, %v2797_v27 }
 0x955   : > { %v2834_v44 = vmul.f32 0.5, %v2833_v48  ;;  %v2812_v52 = vpop.xlane.xlu0 %2811 }
 0x956   : > { %v2868_v53 = vmul.f32 %v4147_v43, %v2861_v50  ;;  %v2816_v56 = vmul.f32 %v2812_v52, %v5107_v38 }
 0x957   : > { %v2835_v21 = vsub.f32 1.5, %v2834_v44 }
 0x958   : > { %v4196_v60 = vpop.eup %4195  ;;  %v2875_v61 = vadd.f32 %v4148_v18, %v2868_v53  ;;  %v2820_v62 = vadd.f32 0.0001, %v2816_v56 }
 0x959   : > { %v2836_v59 = vmul.f32 %v4194_v34, %v2835_v21  ;;  %v2842_v58 = vmul.f32 %v4196_v60, %v2819_v45  ;;  %vm2848_vm15 = vweird.f32 %v4196_v60 }
 0x95a   : > { %2879 = vst [vmem:[%s4943_s22] sm:$0xff] %v2875_v61  ;;  %4197 = vrsqrt.f32 %v2820_v62  ;;  %vm2849_vm1 = vmor %vm2847_vm0, %vm2848_vm15  ;;  %vm2857_vm3 = vweird.f32 %v2820_v62 }
 0x95b   : > { %v2840_v63 = vsel %vm2839_vm14, %v4194_v34, %v2836_v59  ;;  %v2843_v0 = vmul.f32 %v4196_v60, %v2842_v58 }
 0x95c   : > { %v2862_v1 = vmul.f32 %v2840_v63, %v2798_v10 }
 0x95d   : > { %v2844_v2 = vmul.f32 0.5, %v2843_v0 }
 0x95e   : > { %v2869_v51 = vmul.f32 %v4147_v43, %v2862_v1 }
 0x95f   : > { %v2845_v4 = vsub.f32 1.5, %v2844_v2 }
 0x960   : > { %v4198_v38 = vpop.eup %4197  ;;  %v2876_v24 = vadd.f32 %v4148_v18, %v2869_v51 }
 0x961   : > { %v2846_v30 = vmul.f32 %v4196_v60, %v2845_v4  ;;  %v2852_v54 = vmul.f32 %v4198_v38, %v2820_v62  ;;  %vm2858_vm2 = vweird.f32 %v4198_v38 }
 0x962   : > { %2880 = vst [vmem:[%s4943_s22 + $0x8] sm:$0xff] %v2876_v24  ;;  %vm2859_vm4 = vmor %vm2857_vm3, %vm2858_vm2 }
 0x963   : > { %v2850_v55 = vsel %vm2849_vm1, %v4196_v60, %v2846_v30  ;;  %v2853_v14 = vmul.f32 %v4198_v38, %v2852_v54 }
 0x964   : > { %v2863_v5 = vmul.f32 %v2850_v55, %v5435_v13 }
 0x965   : > { %v2854_v6 = vmul.f32 0.5, %v2853_v14 }
 0x966   : > { %v2870_v27 = vmul.f32 %v4147_v43, %v2863_v5 }
 0x967   : > { %v2855_v37 = vsub.f32 1.5, %v2854_v6 }
 0x968   : > { %v2877_v7 = vadd.f32 %v4148_v18, %v2870_v27 }
 0x969   : > { %v2856_v9 = vmul.f32 %v4198_v38, %v2855_v37 }
 0x96a   : > { %2881 = vst [vmem:[%s4943_s22 + $0x10] sm:$0xff] %v2877_v7 }
 0x96b   : > { %v2860_v10 = vsel %vm2859_vm4, %v4198_v38, %v2856_v9 }
 0x96c   : > { %v2864_v57 = vmul.f32 %v2860_v10, %v5440_v15 }
 0x96e   : > { %v2871_v42 = vmul.f32 %v4147_v43, %v2864_v57  ;;  %2886 = sbr.rel (%p3827_p4) target bundleno = 2425 (0x979), region = 116 }
 0x970   : > { %v2878_v11 = vadd.f32 %v4148_v18, %v2871_v42 }
 0x972   : > { %2882 = vst [vmem:[%s4943_s22 + $0x18] sm:$0xff] %v2878_v11 }
 0x973   : > { %v2887_v13 = vmul.f32 %v2875_v61, %v5017_v33  ;;  %v2888_v3 = vmul.f32 %v2876_v24, %v5021_v36  ;;  %v2889_v40 = vmul.f32 %v2877_v7, %v5029_v39  ;;  %v2890_v8 = vmul.f32 %v2878_v11, %v5033_v41 }
 0x975   : > { %2891 = vst [vmem:[%s4943_s22] sm:$0xff] %v2887_v13 }
 0x976   : > { %2892 = vst [vmem:[%s4943_s22 + $0x8] sm:$0xff] %v2888_v3 }
 0x977   : > { %2893 = vst [vmem:[%s4943_s22 + $0x10] sm:$0xff] %v2889_v40 }
 0x978   : > { %2894 = vst [vmem:[%s4943_s22 + $0x18] sm:$0xff] %v2890_v8 }
 0x979 PF: > { %s5631_s23 = sld [smem:[#allocation31_spill]]  ;;  %s2908_s30 = sshll.u32 %s4943_s22, 4  ;;  %s2909_s30 = int_to_ptr.vmem [resolvable:$true] %s2908_s30 }
 0x97a   : > { %s5633_s0 = sld [smem:[#allocation54_spill]]  ;;  %s2896_s5 = scalar_lea.sflag [#allocation8], %s4855_s14 }
 0x97f   : > { %s3969_s9 = sshll.u32 %s5631_s23, 5 }
 0x980   : > { %s2907_s17 = scalar_lea.hbm %s5633_s0, %s3969_s9  ;;  %s4429_s27 = scalar_lea.hbm %s5633_s0, 64 }
 0x981   : > { %s2910_s7 = sshll.u32 %s2907_s17, 4  ;;  %s2911_s7 = int_to_ptr.hbm [resolvable:$true] %s2910_s7 }
 0x982   : > { %s4423_s29 = sshra.s32 %s2911_s7, 4  ;;  %s4424_s29 = int_to_ptr.hbm [resolvable:$true] %s4423_s29 }
 0x983   : > { %s4425_s15 = scalar_lea.hbm %s4424_s29, 32  ;;  %p4430_p8 = scmp.lt.s32.totalorder %s4424_s29, %s5633_s0 }
 0x984   : > { %p4426_p3 = scmp.ne.s32.totalorder %s4424_s29, %s4425_s15  ;;  %p4431_p10 = scmp.lt.s32.totalorder %s4429_s27, %s4425_s15 }
 0x986   : > { %p4427_p9 = pnand %p4426_p3, %p4778_p5  ;;  %p4432_p11 = por %p4431_p10, %p4430_p8 }
 0x988   : > { %p4428_p6 = pneg %p4427_p9 }
 0x98a   : > { %p4433_p13 = pnand %p4432_p11, %p4428_p6 }
 0x98c   : > { %4436 = shalt.err (!%p4433_p13)
}
 0x98d   : > { %s4572_s22 = smov 128   ;;  %s4573_s14 = smov 8  }
 0x98e   : > { %3995 = dma.vmem_to_hbm [thread:$0]  (%p4778_p5), %s2909_s30, 512, %s2911_s7, %s2896_s5, %s4572_s22, %s4572_s22, %s4573_s14  }
 0x98f PF: > { %s5634_s24 = sld [smem:[#allocation27_spill]]  ;;  %p4033_p2 = scmp.ge.s32.totalorder %s4555_s28, 2 }
 0x991   : > { %p4021_p12 = pnand %p4033_p2, %p4782_p7 }
 0x993   : > { %p4022_p0 = pneg %p4021_p12 }
 0x995   : > { %s2925_s18 = sand.u32 1, %s5634_s24  }
 0x996   : > { %s2926_s25 = scalar_lea.sflag [#allocation8], %s2925_s18 }
 0x997   : > { %4510 = dma.done.wait (%p4022_p0), %s2926_s25, 512  }
 0x998   : > { %4512 = vsyncadd (%p4022_p0), %s2926_s25, 4294966784  ;;  %s36_s28 = sadd.s32 1, %s4555_s28   ;;  %s5636_s21 = sld [smem:[#allocation28_spill]] }
 0x999   : > { %p33_p1 = scmp.ge.s32.totalorder %s36_s28, 6   ;;  %s5637_s22 = sld [smem:[#allocation29_spill]] }
 0x99a   : > { %s5638_s23 = sld [smem:[#allocation38_spill]]  ;;  %s5643_s18 = smov %s4519_s19 }
 0x99b   : > { %s5639_s24 = sld [smem:[#allocation32_spill]]  ;;  %s5644_s19 = smov %s4523_s20 }
 0x99c   : > { %s5640_s25 = sld [smem:[#allocation33_spill]]  ;;  %s5645_s20 = smov %s4831_s16 }
 0x99d   : > { %s5641_s26 = sld [smem:[#allocation36_spill]]  ;;  %35 = sbr.rel (!%p33_p1) target bundleno = 30 (0x1e), region = 205 }
 0x99e   : > { %s5642_s27 = sld [smem:[#allocation37_spill]] }
 0x9a2   :  { %2932 = vsyncpa [#allocation7], 1 }
 0x9a3   :  { %2934 = vsyncpa [#allocation7 + $0x1], 1 }
 0x9a4   :  { %2935 = vsyncpa [#allocation10], 1 }
 0x9a5   :  { %2936 = vsyncpa [#allocation14], 1 }
 0x9a6   :  { %2938 = vsyncpa [#allocation14 + $0x1], 1 }
 0x9a7   :  { %2939 = vsyncpa [#allocation17], 1 }
 0x9a8   :  { %2940 = vsyncpa [#allocation8], 1 }
 0x9a9   :  { %2942 = vsyncpa [#allocation8 + $0x1], 1 }

</bundles_post_ra>
